<compile_context>
chip_gen: v6e
topology: v6e:2x2x1
jax: 0.10.0
libtpu: 0.0.40
codegen_flags: <defaults>
</compile_context>

<pallas_src>
import math

import jax
import jax.numpy as jnp
from jax.experimental import pallas as pl
from jax.experimental.pallas import tpu as pltpu

# Model hyper-parameters (small, consistent with the PyTorch constructor).
DIM = 4
NUM_OBJ = 8
NUM_HEAD = 4
NUM_BLOCK = 2
NUM_CLS = 3
NUM_REG = 1
HIST_LEN = 8
BATCH = 2

D_MODEL = DIM * NUM_OBJ            # 32  (dim_model inside the extractor blocks)
DIM_K = D_MODEL // NUM_HEAD        # 8
SEQ = HIST_LEN                     # 8   (sequence length)
D_FF = 4 * D_MODEL                 # 128 (block feed-forward width)
FLAT = SEQ * D_MODEL               # 256 (flattened features for the classifier)
CLS_FF = 4 * FLAT                  # 1024 (classifier feed-forward width)
N_OUT = 3 * NUM_CLS + NUM_REG      # 10  (packed kernel output: cls0|cls1|cls2|reg)
EPS = 1e-6


def _layer_norm(x, a, b):
    """PyTorch-style LayerNorm: a*(x-mean)/(std+eps)+b with unbiased std."""
    n = x.shape[-1]
    mu = jnp.mean(x, axis=-1, keepdims=True)
    d = x - mu
    var = jnp.sum(d * d, axis=-1, keepdims=True) * (1.0 / (n - 1))
    return a * d / (jnp.sqrt(var) + EPS) + b


def behavior_model_kernel(x_ref, ln_ref, wqkv_ref, bqkv_ref, woh_ref,
                          wf1_ref, wf2_ref, bblk_ref,
                          lnf_ref, wc1_ref, wc2_ref, wh_ref, cb_ref,
                          out_ref):
    # One grid step == one batch element.  x_ref is (SEQ, D_MODEL), f32.
    x = x_ref[...]

    for blk in range(NUM_BLOCK):                       # static unroll over encoder blocks
        ln_blk = ln_ref[blk]                           # (2, D)
        ln_a = ln_blk[0:1, :]
        ln_b = ln_blk[1:2, :]
        bias_blk = bblk_ref[blk]                       # (3, D_FF): [bo | bf1 | bf2] (zero padded)

        # ---------------- multi-head self-attention sub-layer ----------------
        y = _layer_norm(x, ln_a, ln_b)
        # Fused, head-major QKV projection: one batched contraction over the
        # 3*H head-weights; 1/sqrt(dk) is already folded into the Q part.
        yb = jnp.broadcast_to(y[None, :, :], (3 * NUM_HEAD, SEQ, D_MODEL))
        qkv = jnp.einsum("hsd,hdk->hsk", yb, wqkv_ref[blk],
                         preferred_element_type=jnp.float32) + bqkv_ref[blk]   # (3H, S, dk)
        qh = qkv[0:NUM_HEAD]                            # leading-axis slices (free)
        kh = qkv[NUM_HEAD:2 * NUM_HEAD]
        vh = qkv[2 * NUM_HEAD:3 * NUM_HEAD]

        scores = jnp.einsum("hqd,hkd->hqk", qh, kh,
                            preferred_element_type=jnp.float32)                # (H, S, S)
        scores = scores - jnp.max(scores, axis=-1, keepdims=True)
        e = jnp.exp(scores)
        att = e * pl.reciprocal(jnp.sum(e, axis=-1, keepdims=True), approx=True)
        # TODO(synk): nn.Dropout(p=0.2) on attention weights / sub-layer outputs omitted (inference).
        ctx = jnp.einsum("hqk,hkd->hqd", att, vh,
                         preferred_element_type=jnp.float32)                   # (H, S, dk)
        # Concat-free output projection: per-head partials accumulated over heads.
        heads = jnp.einsum("hqd,hdf->hqf", ctx, woh_ref[blk],
                           preferred_element_type=jnp.float32)                 # (H, S, D)
        x = x + jnp.sum(heads, axis=0) + bias_blk[0:1, :D_MODEL]

        # ---------------- position-wise feed-forward sub-layer ----------------
        y = _layer_norm(x, ln_a, ln_b)
        h = jnp.dot(y, wf1_ref[blk], preferred_element_type=jnp.float32) + bias_blk[1:2, :]
        h = jnp.maximum(h, 0.0)
        x = x + jnp.dot(h, wf2_ref[blk], preferred_element_type=jnp.float32) + bias_blk[2:3, :D_MODEL]

    # -------- final LayerNorm over all SEQ*D_MODEL features (flat layout kept as (S, D)) --------
    lnf = lnf_ref[...]                                  # (2, SEQ, D): a / b reshaped to (S, D)
    tot = jnp.sum(jnp.sum(x, axis=-1, keepdims=True), axis=0, keepdims=True)
    mu = tot * (1.0 / FLAT)
    d = x - mu
    ssq = jnp.sum(jnp.sum(d * d, axis=-1, keepdims=True), axis=0, keepdims=True)
    std = jnp.sqrt(ssq * (1.0 / (FLAT - 1)))
    xn = lnf[0] * d / (std + EPS) + lnf[1]              # (SEQ, D)

    # -------- classifier: FFN(FLAT -> 4*FLAT -> FLAT), then 3 softmax heads + regression --------
    cb = cb_ref[...]                                    # (3, CLS_FF): [bc1 | bc2 | head biases] (padded)
    # Flatten folded into the weight: accumulate row blocks of wc1 (no in-kernel relayout).
    acc = cb[0:1, :]                                    # start at bias bc1, shape (1, CLS_FF)
    for s in range(SEQ):                                # static unroll, 8 aligned (32, CLS_FF) slabs
        acc = acc + jnp.dot(xn[s:s + 1, :],
                            wc1_ref[s * D_MODEL:(s + 1) * D_MODEL, :],
                            preferred_element_type=jnp.float32)
    h = jnp.maximum(acc, 0.0)
    f = jnp.dot(h, wc2_ref[...], preferred_element_type=jnp.float32) + cb[1:2, :FLAT]
    # TODO(synk): dropout inside/after the classifier feed-forward omitted (inference).
    logits = jnp.dot(f, wh_ref[...], preferred_element_type=jnp.float32) + cb[2:3, :N_OUT]

    def _softmax(z):
        z = z - jnp.max(z, axis=-1, keepdims=True)
        ez = jnp.exp(z)
        return ez * pl.reciprocal(jnp.sum(ez, axis=-1, keepdims=True), approx=True)

    parts = [_softmax(logits[:, i * NUM_CLS:(i + 1) * NUM_CLS]) for i in range(3)]
    parts.append(logits[:, 3 * NUM_CLS:])
    out_ref[...] = jnp.concatenate(parts, axis=-1)      # (1, N_OUT), single lane-packed store


def _pack_params(p):
    """Host-side, one-time repacking of the natural parameter dict into the
    few packed arrays the kernel consumes (scale folded into Q, heads split)."""
    scale = 1.0 / math.sqrt(DIM_K)

    def heads_w(w, s=1.0):        # (D, D) -> (H, D, dk): split output features per head
        return (w * s).reshape(D_MODEL, NUM_HEAD, DIM_K).transpose(1, 0, 2)

    def heads_b(b, s=1.0):        # (D,) -> (H, 1, dk)
        return (b * s).reshape(NUM_HEAD, 1, DIM_K)

    def pad_row(v, n):
        return jnp.pad(v, (0, n - v.shape[0]))

    blocks = p["blocks"]
    ln_ab = jnp.stack([jnp.stack([blk["ln_a"], blk["ln_b"]]) for blk in blocks])          # (NB, 2, D)
    wqkvh = jnp.stack([jnp.concatenate([heads_w(blk["wq"], scale),
                                        heads_w(blk["wk"]),
                                        heads_w(blk["wv"])], axis=0) for blk in blocks])  # (NB, 3H, D, dk)
    bqkvh = jnp.stack([jnp.concatenate([heads_b(blk["bq"], scale),
                                        heads_b(blk["bk"]),
                                        heads_b(blk["bv"])], axis=0) for blk in blocks])  # (NB, 3H, 1, dk)
    woh = jnp.stack([blk["wo"].reshape(NUM_HEAD, DIM_K, D_MODEL) for blk in blocks])      # (NB, H, dk, D)
    wf1 = jnp.stack([blk["wf1"] for blk in blocks])                                       # (NB, D, D_FF)
    wf2 = jnp.stack([blk["wf2"] for blk in blocks])                                       # (NB, D_FF, D)
    bblk = jnp.stack([jnp.stack([pad_row(blk["bo"], D_FF),
                                 blk["bf1"],
                                 pad_row(blk["bf2"], D_FF)]) for blk in blocks])          # (NB, 3, D_FF)
    lnf = jnp.stack([p["final_ln_a"].reshape(SEQ, D_MODEL),
                     p["final_ln_b"].reshape(SEQ, D_MODEL)])                              # (2, S, D)
    wheads = jnp.concatenate([p["wcls0"], p["wcls1"], p["wcls2"], p["wreg"]], axis=1)     # (FLAT, N_OUT)
    bheads = jnp.concatenate([p["bcls0"], p["bcls1"], p["bcls2"], p["breg"]])             # (N_OUT,)
    cbias = jnp.stack([p["bc1"],
                       pad_row(p["bc2"], CLS_FF),
                       pad_row(bheads, CLS_FF)])                                          # (3, CLS_FF)
    return (ln_ab, wqkvh, bqkvh, woh, wf1, wf2, bblk, lnf,
            p["wc1"], p["wc2"], wheads, cbias)


def object_behavior_forward(x, params):
    B = x.shape[0]
    packed = _pack_params(params)

    def const_spec(a):
        nd = a.ndim
        return pl.BlockSpec(a.shape, lambda b, nd=nd: (0,) * nd)

    out = pl.pallas_call(
        behavior_model_kernel,
        out_shape=jax.ShapeDtypeStruct((B, 1, N_OUT), jnp.float32),
        grid=(B,),
        in_specs=[pl.BlockSpec((None, SEQ, D_MODEL), lambda b: (b, 0, 0))]
                 + [const_spec(a) for a in packed],
        out_specs=pl.BlockSpec((None, 1, N_OUT), lambda b: (b, 0, 0)),
        compiler_params=pltpu.CompilerParams(
            dimension_semantics=("parallel",),
            vmem_limit_bytes=32 * 1024 * 1024,
        ),
    )(x, *packed)

    cls0 = out[:, 0, 0:NUM_CLS]
    cls1 = out[:, 0, NUM_CLS:2 * NUM_CLS]
    cls2 = out[:, 0, 2 * NUM_CLS:3 * NUM_CLS]
    reg = out[:, :, 3 * NUM_CLS:]
    return cls0, cls1, cls2, reg


def model_reference(x, p):
    """Pure-JAX reference mirroring the PyTorch forward (dropout disabled)."""
    def layer_norm(z, a, b):
        n = z.shape[-1]
        mu = jnp.mean(z, axis=-1, keepdims=True)
        var = jnp.sum((z - mu) ** 2, axis=-1, keepdims=True) / (n - 1)
        return a * (z - mu) / (jnp.sqrt(var) + EPS) + b

    B = x.shape[0]
    for blk in p["blocks"]:
        y = layer_norm(x, blk["ln_a"], blk["ln_b"])
        q = (y @ blk["wq"] + blk["bq"]).reshape(B, SEQ, NUM_HEAD, DIM_K).transpose(0, 2, 1, 3)
        k = (y @ blk["wk"] + blk["bk"]).reshape(B, SEQ, NUM_HEAD, DIM_K).transpose(0, 2, 1, 3)
        v = (y @ blk["wv"] + blk["bv"]).reshape(B, SEQ, NUM_HEAD, DIM_K).transpose(0, 2, 1, 3)
        scores = jnp.einsum("bhqd,bhkd->bhqk", q, k) / math.sqrt(DIM_K)
        att = jax.nn.softmax(scores, axis=-1)
        ctx = jnp.einsum("bhqk,bhkd->bhqd", att, v).transpose(0, 2, 1, 3).reshape(B, SEQ, D_MODEL)
        x = x + ctx @ blk["wo"] + blk["bo"]
        y = layer_norm(x, blk["ln_a"], blk["ln_b"])
        h = jnp.maximum(y @ blk["wf1"] + blk["bf1"], 0.0)
        x = x + h @ blk["wf2"] + blk["bf2"]

    xf = x.reshape(B, 1, FLAT)
    xf = layer_norm(xf, p["final_ln_a"], p["final_ln_b"])
    h = jnp.maximum(xf @ p["wc1"] + p["bc1"], 0.0)
    f = h @ p["wc2"] + p["bc2"]
    cls0 = jax.nn.softmax(f @ p["wcls0"] + p["bcls0"], axis=-1)[:, 0, :]
    cls1 = jax.nn.softmax(f @ p["wcls1"] + p["bcls1"], axis=-1)[:, 0, :]
    cls2 = jax.nn.softmax(f @ p["wcls2"] + p["bcls2"], axis=-1)[:, 0, :]
    reg = f @ p["wreg"] + p["breg"]
    return cls0, cls1, cls2, reg


def init_params(key):
    s = 0.05
    keys = iter(jax.random.split(key, 64))

    def nrm(shape):
        return s * jax.random.normal(next(keys), shape, jnp.float32)

    blocks = []
    for _ in range(NUM_BLOCK):
        blocks.append({
            "ln_a": jnp.ones((D_MODEL,), jnp.float32),
            "ln_b": jnp.zeros((D_MODEL,), jnp.float32),
            "wq": nrm((D_MODEL, D_MODEL)), "bq": nrm((D_MODEL,)),
            "wk": nrm((D_MODEL, D_MODEL)), "bk": nrm((D_MODEL,)),
            "wv": nrm((D_MODEL, D_MODEL)), "bv": nrm((D_MODEL,)),
            "wo": nrm((D_MODEL, D_MODEL)), "bo": nrm((D_MODEL,)),
            "wf1": nrm((D_MODEL, D_FF)), "bf1": nrm((D_FF,)),
            "wf2": nrm((D_FF, D_MODEL)), "bf2": nrm((D_MODEL,)),
        })
    return {
        "blocks": blocks,
        "final_ln_a": jnp.ones((FLAT,), jnp.float32),
        "final_ln_b": jnp.zeros((FLAT,), jnp.float32),
        "wc1": nrm((FLAT, CLS_FF)), "bc1": nrm((CLS_FF,)),
        "wc2": nrm((CLS_FF, FLAT)), "bc2": nrm((FLAT,)),
        "wcls0": nrm((FLAT, NUM_CLS)), "bcls0": nrm((NUM_CLS,)),
        "wcls1": nrm((FLAT, NUM_CLS)), "bcls1": nrm((NUM_CLS,)),
        "wcls2": nrm((FLAT, NUM_CLS)), "bcls2": nrm((NUM_CLS,)),
        "wreg": nrm((FLAT, NUM_REG)), "breg": nrm((NUM_REG,)),
    }


if __name__ == "__main__":
    key = jax.random.PRNGKey(0)
    kx, kp = jax.random.split(key)
    x = jax.random.normal(kx, (BATCH, HIST_LEN, D_MODEL), jnp.float32)
    params = init_params(kp)

    outs = object_behavior_forward(x, params)
    outs = jax.block_until_ready(outs)

    refs = model_reference(x, params)
    for name, o, r in zip(("cls0", "cls1", "cls2", "reg"), outs, refs):
        assert o.shape == r.shape, (name, o.shape, r.shape)
        assert jnp.allclose(o, r, atol=3e-3, rtol=3e-3), (
            name, float(jnp.max(jnp.abs(o - r))))

    print("KERNEL_OK")
</pallas_src>

<mosaic_0001>
module attributes {stable_mosaic.version = 11 : i64} {
  func.func @behavior_model_kernel(%arg0: i32, %arg1: memref<1x8x32xf32, #tpu.memory_space<vmem>>, %arg2: memref<2x2x32xf32, #tpu.memory_space<vmem>>, %arg3: memref<2x12x32x8xf32, #tpu.memory_space<vmem>>, %arg4: memref<2x12x1x8xf32, #tpu.memory_space<vmem>>, %arg5: memref<2x4x8x32xf32, #tpu.memory_space<vmem>>, %arg6: memref<2x32x128xf32, #tpu.memory_space<vmem>>, %arg7: memref<2x128x32xf32, #tpu.memory_space<vmem>>, %arg8: memref<2x3x128xf32, #tpu.memory_space<vmem>>, %arg9: memref<2x8x32xf32, #tpu.memory_space<vmem>>, %arg10: memref<256x1024xf32, #tpu.memory_space<vmem>>, %arg11: memref<1024x256xf32, #tpu.memory_space<vmem>>, %arg12: memref<256x10xf32, #tpu.memory_space<vmem>>, %arg13: memref<3x1024xf32, #tpu.memory_space<vmem>>, %arg14: memref<1x1x10xf32, #tpu.memory_space<vmem>>) attributes {dimension_semantics = [#tpu.dimension_semantics<parallel>], iteration_bounds = array<i64: 2>, scalar_prefetch = 0 : i64, scratch_operands = 0 : i64, tpu.core_type = #tpu.core_type<tc>, window_params = [{transform_indices = @transform_0, window_bounds = array<i64: 1, 8, 32>}, {pipeline_mode = #tpu.pipeline_mode<synchronous>, transform_indices = @transform_1, window_bounds = array<i64: 2, 2, 32>}, {pipeline_mode = #tpu.pipeline_mode<synchronous>, transform_indices = @transform_2, window_bounds = array<i64: 2, 12, 32, 8>}, {pipeline_mode = #tpu.pipeline_mode<synchronous>, transform_indices = @transform_3, window_bounds = array<i64: 2, 12, 1, 8>}, {pipeline_mode = #tpu.pipeline_mode<synchronous>, transform_indices = @transform_4, window_bounds = array<i64: 2, 4, 8, 32>}, {pipeline_mode = #tpu.pipeline_mode<synchronous>, transform_indices = @transform_5, window_bounds = array<i64: 2, 32, 128>}, {pipeline_mode = #tpu.pipeline_mode<synchronous>, transform_indices = @transform_6, window_bounds = array<i64: 2, 128, 32>}, {pipeline_mode = #tpu.pipeline_mode<synchronous>, transform_indices = @transform_7, window_bounds = array<i64: 2, 3, 128>}, {pipeline_mode = #tpu.pipeline_mode<synchronous>, transform_indices = @transform_8, window_bounds = array<i64: 2, 8, 32>}, {pipeline_mode = #tpu.pipeline_mode<synchronous>, transform_indices = @transform_9, window_bounds = array<i64: 256, 1024>}, {pipeline_mode = #tpu.pipeline_mode<synchronous>, transform_indices = @transform_10, window_bounds = array<i64: 1024, 256>}, {pipeline_mode = #tpu.pipeline_mode<synchronous>, transform_indices = @transform_11, window_bounds = array<i64: 256, 10>}, {pipeline_mode = #tpu.pipeline_mode<synchronous>, transform_indices = @transform_12, window_bounds = array<i64: 3, 1024>}, {transform_indices = @transform_13, window_bounds = array<i64: 1, 1, 10>}]} {
    %c0 = arith.constant 0 : index
    %c0_0 = arith.constant 0 : index
    %c0_1 = arith.constant 0 : index
    %0 = vector.load %arg1[%c0, %c0_0, %c0_1] : memref<1x8x32xf32, #tpu.memory_space<vmem>>, vector<1x8x32xf32>
    %1 = vector.shape_cast %0 : vector<1x8x32xf32> to vector<8x32xf32>
    %c0_2 = arith.constant 0 : index
    %c0_3 = arith.constant 0 : index
    %c0_4 = arith.constant 0 : index
    %2 = vector.load %arg2[%c0_2, %c0_3, %c0_4] : memref<2x2x32xf32, #tpu.memory_space<vmem>>, vector<1x2x32xf32>
    %3 = vector.shape_cast %2 : vector<1x2x32xf32> to vector<2x32xf32>
    %4 = vector.extract_strided_slice %3 {offsets = [0, 0], sizes = [1, 32], strides = [1, 1]} : vector<2x32xf32> to vector<1x32xf32>
    %5 = vector.extract_strided_slice %3 {offsets = [1, 0], sizes = [1, 32], strides = [1, 1]} : vector<2x32xf32> to vector<1x32xf32>
    %c0_5 = arith.constant 0 : index
    %c0_6 = arith.constant 0 : index
    %c0_7 = arith.constant 0 : index
    %6 = vector.load %arg8[%c0_5, %c0_6, %c0_7] : memref<2x3x128xf32, #tpu.memory_space<vmem>>, vector<1x3x128xf32>
    %7 = vector.shape_cast %6 : vector<1x3x128xf32> to vector<3x128xf32>
    %cst = arith.constant dense<0.000000e+00> : vector<8xf32>
    %8 = vector.multi_reduction <add>, %1, %cst [1] : vector<8x32xf32> to vector<8xf32>
    %9 = vector.shape_cast %8 : vector<8xf32> to vector<8x1xf32>
    %cst_8 = arith.constant 3.200000e+01 : f32
    %10 = vector.broadcast %cst_8 : f32 to vector<8x1xf32>
    %11 = arith.divf %9, %10 : vector<8x1xf32>
    %12 = vector.broadcast %11 : vector<8x1xf32> to vector<8x32xf32>
    %13 = arith.subf %1, %12 : vector<8x32xf32>
    %14 = arith.mulf %13, %13 : vector<8x32xf32>
    %cst_9 = arith.constant dense<0.000000e+00> : vector<8xf32>
    %15 = vector.multi_reduction <add>, %14, %cst_9 [1] : vector<8x32xf32> to vector<8xf32>
    %16 = vector.shape_cast %15 : vector<8xf32> to vector<8x1xf32>
    %cst_10 = arith.constant 0.0322580636 : f32
    %17 = vector.broadcast %cst_10 : f32 to vector<8x1xf32>
    %18 = arith.mulf %16, %17 : vector<8x1xf32>
    %19 = vector.broadcast %4 : vector<1x32xf32> to vector<8x32xf32>
    %20 = arith.mulf %19, %13 : vector<8x32xf32>
    %21 = math.sqrt %18 : vector<8x1xf32>
    %cst_11 = arith.constant 9.99999997E-7 : f32
    %22 = vector.broadcast %cst_11 : f32 to vector<8x1xf32>
    %23 = arith.addf %21, %22 : vector<8x1xf32>
    %24 = vector.broadcast %23 : vector<8x1xf32> to vector<8x32xf32>
    %25 = arith.divf %20, %24 : vector<8x32xf32>
    %26 = vector.broadcast %5 : vector<1x32xf32> to vector<8x32xf32>
    %27 = arith.addf %25, %26 : vector<8x32xf32>
    %28 = vector.shape_cast %27 : vector<8x32xf32> to vector<1x8x32xf32>
    %29 = vector.shape_cast %28 : vector<1x8x32xf32> to vector<1x8x32xf32>
    %30 = vector.broadcast %29 : vector<1x8x32xf32> to vector<12x8x32xf32>
    %c0_12 = arith.constant 0 : index
    %c0_13 = arith.constant 0 : index
    %c0_14 = arith.constant 0 : index
    %c0_15 = arith.constant 0 : index
    %31 = vector.load %arg3[%c0_12, %c0_13, %c0_14, %c0_15] : memref<2x12x32x8xf32, #tpu.memory_space<vmem>>, vector<1x12x32x8xf32>
    %32 = vector.shape_cast %31 : vector<1x12x32x8xf32> to vector<12x32x8xf32>
    "tpu.trace_start"() <{level = 10 : i32, message = "hsd,hdk->hsk"}> : () -> ()
    %cst_16 = arith.constant dense<0.000000e+00> : vector<12x8x8xf32>
    %33 = tpu.matmul %30, %32, %cst_16 {dimension_numbers = #tpu.dot_dimension_numbers<[2], [1], [1], [2], [0, 0, 0, 1, 1, 2], [0], [0]>} : vector<12x8x32xf32>, vector<12x32x8xf32>, vector<12x8x8xf32> -> vector<12x8x8xf32>
    "tpu.trace_stop"() : () -> ()
    %c0_17 = arith.constant 0 : index
    %c0_18 = arith.constant 0 : index
    %c0_19 = arith.constant 0 : index
    %c0_20 = arith.constant 0 : index
    %34 = vector.load %arg4[%c0_17, %c0_18, %c0_19, %c0_20] : memref<2x12x1x8xf32, #tpu.memory_space<vmem>>, vector<1x12x1x8xf32>
    %35 = vector.shape_cast %34 : vector<1x12x1x8xf32> to vector<12x1x8xf32>
    %36 = vector.broadcast %35 : vector<12x1x8xf32> to vector<12x8x8xf32>
    %37 = arith.addf %33, %36 : vector<12x8x8xf32>
    %38 = vector.extract_strided_slice %37 {offsets = [0, 0, 0], sizes = [4, 8, 8], strides = [1, 1, 1]} : vector<12x8x8xf32> to vector<4x8x8xf32>
    %39 = vector.extract_strided_slice %37 {offsets = [4, 0, 0], sizes = [4, 8, 8], strides = [1, 1, 1]} : vector<12x8x8xf32> to vector<4x8x8xf32>
    %40 = vector.extract_strided_slice %37 {offsets = [8, 0, 0], sizes = [4, 8, 8], strides = [1, 1, 1]} : vector<12x8x8xf32> to vector<4x8x8xf32>
    "tpu.trace_start"() <{level = 10 : i32, message = "hqd,hkd->hqk"}> : () -> ()
    %cst_21 = arith.constant dense<0.000000e+00> : vector<4x8x8xf32>
    %41 = tpu.matmul %38, %39, %cst_21 {dimension_numbers = #tpu.dot_dimension_numbers<[2], [2], [1], [1], [0, 0, 0, 1, 1, 1], [0], [0]>} : vector<4x8x8xf32>, vector<4x8x8xf32>, vector<4x8x8xf32> -> vector<4x8x8xf32>
    "tpu.trace_stop"() : () -> ()
    %cst_22 = arith.constant dense<0xFF800000> : vector<4x8xf32>
    %42 = vector.multi_reduction <maximumf>, %41, %cst_22 [2] : vector<4x8x8xf32> to vector<4x8xf32>
    %43 = vector.shape_cast %42 : vector<4x8xf32> to vector<4x8x1xf32>
    %44 = vector.broadcast %43 : vector<4x8x1xf32> to vector<4x8x8xf32>
    %45 = arith.subf %41, %44 : vector<4x8x8xf32>
    %46 = math.exp %45 : vector<4x8x8xf32>
    %cst_23 = arith.constant dense<0.000000e+00> : vector<4x8xf32>
    %47 = vector.multi_reduction <add>, %46, %cst_23 [2] : vector<4x8x8xf32> to vector<4x8xf32>
    %48 = vector.shape_cast %47 : vector<4x8xf32> to vector<4x8x1xf32>
    %49 = tpu.reciprocal %48 {approx = true} : vector<4x8x1xf32> -> vector<4x8x1xf32>
    %50 = vector.broadcast %49 : vector<4x8x1xf32> to vector<4x8x8xf32>
    %51 = arith.mulf %46, %50 : vector<4x8x8xf32>
    "tpu.trace_start"() <{level = 10 : i32, message = "hqk,hkd->hqd"}> : () -> ()
    %cst_24 = arith.constant dense<0.000000e+00> : vector<4x8x8xf32>
    %52 = tpu.matmul %51, %40, %cst_24 {dimension_numbers = #tpu.dot_dimension_numbers<[2], [1], [1], [2], [0, 0, 0, 1, 1, 2], [0], [0]>} : vector<4x8x8xf32>, vector<4x8x8xf32>, vector<4x8x8xf32> -> vector<4x8x8xf32>
    "tpu.trace_stop"() : () -> ()
    %c0_25 = arith.constant 0 : index
    %c0_26 = arith.constant 0 : index
    %c0_27 = arith.constant 0 : index
    %c0_28 = arith.constant 0 : index
    %53 = vector.load %arg5[%c0_25, %c0_26, %c0_27, %c0_28] : memref<2x4x8x32xf32, #tpu.memory_space<vmem>>, vector<1x4x8x32xf32>
    %54 = vector.shape_cast %53 : vector<1x4x8x32xf32> to vector<4x8x32xf32>
    "tpu.trace_start"() <{level = 10 : i32, message = "hqd,hdf->hqf"}> : () -> ()
    %cst_29 = arith.constant dense<0.000000e+00> : vector<4x8x32xf32>
    %55 = tpu.matmul %52, %54, %cst_29 {dimension_numbers = #tpu.dot_dimension_numbers<[2], [1], [1], [2], [0, 0, 0, 1, 1, 2], [0], [0]>} : vector<4x8x8xf32>, vector<4x8x32xf32>, vector<4x8x32xf32> -> vector<4x8x32xf32>
    "tpu.trace_stop"() : () -> ()
    %cst_30 = arith.constant dense<0.000000e+00> : vector<8x32xf32>
    %56 = vector.multi_reduction <add>, %55, %cst_30 [0] : vector<4x8x32xf32> to vector<8x32xf32>
    %57 = arith.addf %1, %56 : vector<8x32xf32>
    %58 = vector.extract_strided_slice %7 {offsets = [0, 0], sizes = [1, 32], strides = [1, 1]} : vector<3x128xf32> to vector<1x32xf32>
    %59 = vector.broadcast %58 : vector<1x32xf32> to vector<8x32xf32>
    %60 = arith.addf %57, %59 : vector<8x32xf32>
    %cst_31 = arith.constant dense<0.000000e+00> : vector<8xf32>
    %61 = vector.multi_reduction <add>, %60, %cst_31 [1] : vector<8x32xf32> to vector<8xf32>
    %62 = vector.shape_cast %61 : vector<8xf32> to vector<8x1xf32>
    %cst_32 = arith.constant 3.200000e+01 : f32
    %63 = vector.broadcast %cst_32 : f32 to vector<8x1xf32>
    %64 = arith.divf %62, %63 : vector<8x1xf32>
    %65 = vector.broadcast %64 : vector<8x1xf32> to vector<8x32xf32>
    %66 = arith.subf %60, %65 : vector<8x32xf32>
    %67 = arith.mulf %66, %66 : vector<8x32xf32>
    %cst_33 = arith.constant dense<0.000000e+00> : vector<8xf32>
    %68 = vector.multi_reduction <add>, %67, %cst_33 [1] : vector<8x32xf32> to vector<8xf32>
    %69 = vector.shape_cast %68 : vector<8xf32> to vector<8x1xf32>
    %cst_34 = arith.constant 0.0322580636 : f32
    %70 = vector.broadcast %cst_34 : f32 to vector<8x1xf32>
    %71 = arith.mulf %69, %70 : vector<8x1xf32>
    %72 = vector.broadcast %4 : vector<1x32xf32> to vector<8x32xf32>
    %73 = arith.mulf %72, %66 : vector<8x32xf32>
    %74 = math.sqrt %71 : vector<8x1xf32>
    %cst_35 = arith.constant 9.99999997E-7 : f32
    %75 = vector.broadcast %cst_35 : f32 to vector<8x1xf32>
    %76 = arith.addf %74, %75 : vector<8x1xf32>
    %77 = vector.broadcast %76 : vector<8x1xf32> to vector<8x32xf32>
    %78 = arith.divf %73, %77 : vector<8x32xf32>
    %79 = vector.broadcast %5 : vector<1x32xf32> to vector<8x32xf32>
    %80 = arith.addf %78, %79 : vector<8x32xf32>
    %c0_36 = arith.constant 0 : index
    %c0_37 = arith.constant 0 : index
    %c0_38 = arith.constant 0 : index
    %81 = vector.load %arg6[%c0_36, %c0_37, %c0_38] : memref<2x32x128xf32, #tpu.memory_space<vmem>>, vector<1x32x128xf32>
    %82 = vector.shape_cast %81 : vector<1x32x128xf32> to vector<32x128xf32>
    %cst_39 = arith.constant dense<0.000000e+00> : vector<8x128xf32>
    %83 = tpu.matmul %80, %82, %cst_39 {dimension_numbers = #tpu.dot_dimension_numbers<[1], [0], [0], [1], [0, 0, 1, 1], [], []>} : vector<8x32xf32>, vector<32x128xf32>, vector<8x128xf32> -> vector<8x128xf32>
    %84 = vector.extract_strided_slice %7 {offsets = [1, 0], sizes = [1, 128], strides = [1, 1]} : vector<3x128xf32> to vector<1x128xf32>
    %85 = vector.broadcast %84 : vector<1x128xf32> to vector<8x128xf32>
    %86 = arith.addf %83, %85 : vector<8x128xf32>
    %cst_40 = arith.constant 0.000000e+00 : f32
    %87 = vector.broadcast %cst_40 : f32 to vector<8x128xf32>
    %88 = arith.maximumf %86, %87 : vector<8x128xf32>
    %c0_41 = arith.constant 0 : index
    %c0_42 = arith.constant 0 : index
    %c0_43 = arith.constant 0 : index
    %89 = vector.load %arg7[%c0_41, %c0_42, %c0_43] : memref<2x128x32xf32, #tpu.memory_space<vmem>>, vector<1x128x32xf32>
    %90 = vector.shape_cast %89 : vector<1x128x32xf32> to vector<128x32xf32>
    %cst_44 = arith.constant dense<0.000000e+00> : vector<8x32xf32>
    %91 = tpu.matmul %88, %90, %cst_44 {dimension_numbers = #tpu.dot_dimension_numbers<[1], [0], [0], [1], [0, 0, 1, 1], [], []>} : vector<8x128xf32>, vector<128x32xf32>, vector<8x32xf32> -> vector<8x32xf32>
    %92 = arith.addf %60, %91 : vector<8x32xf32>
    %93 = vector.extract_strided_slice %7 {offsets = [2, 0], sizes = [1, 32], strides = [1, 1]} : vector<3x128xf32> to vector<1x32xf32>
    %94 = vector.broadcast %93 : vector<1x32xf32> to vector<8x32xf32>
    %95 = arith.addf %92, %94 : vector<8x32xf32>
    %c1 = arith.constant 1 : index
    %c0_45 = arith.constant 0 : index
    %c0_46 = arith.constant 0 : index
    %96 = vector.load %arg2[%c1, %c0_45, %c0_46] : memref<2x2x32xf32, #tpu.memory_space<vmem>>, vector<1x2x32xf32>
    %97 = vector.shape_cast %96 : vector<1x2x32xf32> to vector<2x32xf32>
    %98 = vector.extract_strided_slice %97 {offsets = [0, 0], sizes = [1, 32], strides = [1, 1]} : vector<2x32xf32> to vector<1x32xf32>
    %99 = vector.extract_strided_slice %97 {offsets = [1, 0], sizes = [1, 32], strides = [1, 1]} : vector<2x32xf32> to vector<1x32xf32>
    %c1_47 = arith.constant 1 : index
    %c0_48 = arith.constant 0 : index
    %c0_49 = arith.constant 0 : index
    %100 = vector.load %arg8[%c1_47, %c0_48, %c0_49] : memref<2x3x128xf32, #tpu.memory_space<vmem>>, vector<1x3x128xf32>
    %101 = vector.shape_cast %100 : vector<1x3x128xf32> to vector<3x128xf32>
    %cst_50 = arith.constant dense<0.000000e+00> : vector<8xf32>
    %102 = vector.multi_reduction <add>, %95, %cst_50 [1] : vector<8x32xf32> to vector<8xf32>
    %103 = vector.shape_cast %102 : vector<8xf32> to vector<8x1xf32>
    %cst_51 = arith.constant 3.200000e+01 : f32
    %104 = vector.broadcast %cst_51 : f32 to vector<8x1xf32>
    %105 = arith.divf %103, %104 : vector<8x1xf32>
    %106 = vector.broadcast %105 : vector<8x1xf32> to vector<8x32xf32>
    %107 = arith.subf %95, %106 : vector<8x32xf32>
    %108 = arith.mulf %107, %107 : vector<8x32xf32>
    %cst_52 = arith.constant dense<0.000000e+00> : vector<8xf32>
    %109 = vector.multi_reduction <add>, %108, %cst_52 [1] : vector<8x32xf32> to vector<8xf32>
    %110 = vector.shape_cast %109 : vector<8xf32> to vector<8x1xf32>
    %cst_53 = arith.constant 0.0322580636 : f32
    %111 = vector.broadcast %cst_53 : f32 to vector<8x1xf32>
    %112 = arith.mulf %110, %111 : vector<8x1xf32>
    %113 = vector.broadcast %98 : vector<1x32xf32> to vector<8x32xf32>
    %114 = arith.mulf %113, %107 : vector<8x32xf32>
    %115 = math.sqrt %112 : vector<8x1xf32>
    %cst_54 = arith.constant 9.99999997E-7 : f32
    %116 = vector.broadcast %cst_54 : f32 to vector<8x1xf32>
    %117 = arith.addf %115, %116 : vector<8x1xf32>
    %118 = vector.broadcast %117 : vector<8x1xf32> to vector<8x32xf32>
    %119 = arith.divf %114, %118 : vector<8x32xf32>
    %120 = vector.broadcast %99 : vector<1x32xf32> to vector<8x32xf32>
    %121 = arith.addf %119, %120 : vector<8x32xf32>
    %122 = vector.shape_cast %121 : vector<8x32xf32> to vector<1x8x32xf32>
    %123 = vector.shape_cast %122 : vector<1x8x32xf32> to vector<1x8x32xf32>
    %124 = vector.broadcast %123 : vector<1x8x32xf32> to vector<12x8x32xf32>
    %c1_55 = arith.constant 1 : index
    %c0_56 = arith.constant 0 : index
    %c0_57 = arith.constant 0 : index
    %c0_58 = arith.constant 0 : index
    %125 = vector.load %arg3[%c1_55, %c0_56, %c0_57, %c0_58] : memref<2x12x32x8xf32, #tpu.memory_space<vmem>>, vector<1x12x32x8xf32>
    %126 = vector.shape_cast %125 : vector<1x12x32x8xf32> to vector<12x32x8xf32>
    "tpu.trace_start"() <{level = 10 : i32, message = "hsd,hdk->hsk"}> : () -> ()
    %cst_59 = arith.constant dense<0.000000e+00> : vector<12x8x8xf32>
    %127 = tpu.matmul %124, %126, %cst_59 {dimension_numbers = #tpu.dot_dimension_numbers<[2], [1], [1], [2], [0, 0, 0, 1, 1, 2], [0], [0]>} : vector<12x8x32xf32>, vector<12x32x8xf32>, vector<12x8x8xf32> -> vector<12x8x8xf32>
    "tpu.trace_stop"() : () -> ()
    %c1_60 = arith.constant 1 : index
    %c0_61 = arith.constant 0 : index
    %c0_62 = arith.constant 0 : index
    %c0_63 = arith.constant 0 : index
    %128 = vector.load %arg4[%c1_60, %c0_61, %c0_62, %c0_63] : memref<2x12x1x8xf32, #tpu.memory_space<vmem>>, vector<1x12x1x8xf32>
    %129 = vector.shape_cast %128 : vector<1x12x1x8xf32> to vector<12x1x8xf32>
    %130 = vector.broadcast %129 : vector<12x1x8xf32> to vector<12x8x8xf32>
    %131 = arith.addf %127, %130 : vector<12x8x8xf32>
    %132 = vector.extract_strided_slice %131 {offsets = [0, 0, 0], sizes = [4, 8, 8], strides = [1, 1, 1]} : vector<12x8x8xf32> to vector<4x8x8xf32>
    %133 = vector.extract_strided_slice %131 {offsets = [4, 0, 0], sizes = [4, 8, 8], strides = [1, 1, 1]} : vector<12x8x8xf32> to vector<4x8x8xf32>
    %134 = vector.extract_strided_slice %131 {offsets = [8, 0, 0], sizes = [4, 8, 8], strides = [1, 1, 1]} : vector<12x8x8xf32> to vector<4x8x8xf32>
    "tpu.trace_start"() <{level = 10 : i32, message = "hqd,hkd->hqk"}> : () -> ()
    %cst_64 = arith.constant dense<0.000000e+00> : vector<4x8x8xf32>
    %135 = tpu.matmul %132, %133, %cst_64 {dimension_numbers = #tpu.dot_dimension_numbers<[2], [2], [1], [1], [0, 0, 0, 1, 1, 1], [0], [0]>} : vector<4x8x8xf32>, vector<4x8x8xf32>, vector<4x8x8xf32> -> vector<4x8x8xf32>
    "tpu.trace_stop"() : () -> ()
    %cst_65 = arith.constant dense<0xFF800000> : vector<4x8xf32>
    %136 = vector.multi_reduction <maximumf>, %135, %cst_65 [2] : vector<4x8x8xf32> to vector<4x8xf32>
    %137 = vector.shape_cast %136 : vector<4x8xf32> to vector<4x8x1xf32>
    %138 = vector.broadcast %137 : vector<4x8x1xf32> to vector<4x8x8xf32>
    %139 = arith.subf %135, %138 : vector<4x8x8xf32>
    %140 = math.exp %139 : vector<4x8x8xf32>
    %cst_66 = arith.constant dense<0.000000e+00> : vector<4x8xf32>
    %141 = vector.multi_reduction <add>, %140, %cst_66 [2] : vector<4x8x8xf32> to vector<4x8xf32>
    %142 = vector.shape_cast %141 : vector<4x8xf32> to vector<4x8x1xf32>
    %143 = tpu.reciprocal %142 {approx = true} : vector<4x8x1xf32> -> vector<4x8x1xf32>
    %144 = vector.broadcast %143 : vector<4x8x1xf32> to vector<4x8x8xf32>
    %145 = arith.mulf %140, %144 : vector<4x8x8xf32>
    "tpu.trace_start"() <{level = 10 : i32, message = "hqk,hkd->hqd"}> : () -> ()
    %cst_67 = arith.constant dense<0.000000e+00> : vector<4x8x8xf32>
    %146 = tpu.matmul %145, %134, %cst_67 {dimension_numbers = #tpu.dot_dimension_numbers<[2], [1], [1], [2], [0, 0, 0, 1, 1, 2], [0], [0]>} : vector<4x8x8xf32>, vector<4x8x8xf32>, vector<4x8x8xf32> -> vector<4x8x8xf32>
    "tpu.trace_stop"() : () -> ()
    %c1_68 = arith.constant 1 : index
    %c0_69 = arith.constant 0 : index
    %c0_70 = arith.constant 0 : index
    %c0_71 = arith.constant 0 : index
    %147 = vector.load %arg5[%c1_68, %c0_69, %c0_70, %c0_71] : memref<2x4x8x32xf32, #tpu.memory_space<vmem>>, vector<1x4x8x32xf32>
    %148 = vector.shape_cast %147 : vector<1x4x8x32xf32> to vector<4x8x32xf32>
    "tpu.trace_start"() <{level = 10 : i32, message = "hqd,hdf->hqf"}> : () -> ()
    %cst_72 = arith.constant dense<0.000000e+00> : vector<4x8x32xf32>
    %149 = tpu.matmul %146, %148, %cst_72 {dimension_numbers = #tpu.dot_dimension_numbers<[2], [1], [1], [2], [0, 0, 0, 1, 1, 2], [0], [0]>} : vector<4x8x8xf32>, vector<4x8x32xf32>, vector<4x8x32xf32> -> vector<4x8x32xf32>
    "tpu.trace_stop"() : () -> ()
    %cst_73 = arith.constant dense<0.000000e+00> : vector<8x32xf32>
    %150 = vector.multi_reduction <add>, %149, %cst_73 [0] : vector<4x8x32xf32> to vector<8x32xf32>
    %151 = arith.addf %95, %150 : vector<8x32xf32>
    %152 = vector.extract_strided_slice %101 {offsets = [0, 0], sizes = [1, 32], strides = [1, 1]} : vector<3x128xf32> to vector<1x32xf32>
    %153 = vector.broadcast %152 : vector<1x32xf32> to vector<8x32xf32>
    %154 = arith.addf %151, %153 : vector<8x32xf32>
    %cst_74 = arith.constant dense<0.000000e+00> : vector<8xf32>
    %155 = vector.multi_reduction <add>, %154, %cst_74 [1] : vector<8x32xf32> to vector<8xf32>
    %156 = vector.shape_cast %155 : vector<8xf32> to vector<8x1xf32>
    %cst_75 = arith.constant 3.200000e+01 : f32
    %157 = vector.broadcast %cst_75 : f32 to vector<8x1xf32>
    %158 = arith.divf %156, %157 : vector<8x1xf32>
    %159 = vector.broadcast %158 : vector<8x1xf32> to vector<8x32xf32>
    %160 = arith.subf %154, %159 : vector<8x32xf32>
    %161 = arith.mulf %160, %160 : vector<8x32xf32>
    %cst_76 = arith.constant dense<0.000000e+00> : vector<8xf32>
    %162 = vector.multi_reduction <add>, %161, %cst_76 [1] : vector<8x32xf32> to vector<8xf32>
    %163 = vector.shape_cast %162 : vector<8xf32> to vector<8x1xf32>
    %cst_77 = arith.constant 0.0322580636 : f32
    %164 = vector.broadcast %cst_77 : f32 to vector<8x1xf32>
    %165 = arith.mulf %163, %164 : vector<8x1xf32>
    %166 = vector.broadcast %98 : vector<1x32xf32> to vector<8x32xf32>
    %167 = arith.mulf %166, %160 : vector<8x32xf32>
    %168 = math.sqrt %165 : vector<8x1xf32>
    %cst_78 = arith.constant 9.99999997E-7 : f32
    %169 = vector.broadcast %cst_78 : f32 to vector<8x1xf32>
    %170 = arith.addf %168, %169 : vector<8x1xf32>
    %171 = vector.broadcast %170 : vector<8x1xf32> to vector<8x32xf32>
    %172 = arith.divf %167, %171 : vector<8x32xf32>
    %173 = vector.broadcast %99 : vector<1x32xf32> to vector<8x32xf32>
    %174 = arith.addf %172, %173 : vector<8x32xf32>
    %c1_79 = arith.constant 1 : index
    %c0_80 = arith.constant 0 : index
    %c0_81 = arith.constant 0 : index
    %175 = vector.load %arg6[%c1_79, %c0_80, %c0_81] : memref<2x32x128xf32, #tpu.memory_space<vmem>>, vector<1x32x128xf32>
    %176 = vector.shape_cast %175 : vector<1x32x128xf32> to vector<32x128xf32>
    %cst_82 = arith.constant dense<0.000000e+00> : vector<8x128xf32>
    %177 = tpu.matmul %174, %176, %cst_82 {dimension_numbers = #tpu.dot_dimension_numbers<[1], [0], [0], [1], [0, 0, 1, 1], [], []>} : vector<8x32xf32>, vector<32x128xf32>, vector<8x128xf32> -> vector<8x128xf32>
    %178 = vector.extract_strided_slice %101 {offsets = [1, 0], sizes = [1, 128], strides = [1, 1]} : vector<3x128xf32> to vector<1x128xf32>
    %179 = vector.broadcast %178 : vector<1x128xf32> to vector<8x128xf32>
    %180 = arith.addf %177, %179 : vector<8x128xf32>
    %cst_83 = arith.constant 0.000000e+00 : f32
    %181 = vector.broadcast %cst_83 : f32 to vector<8x128xf32>
    %182 = arith.maximumf %180, %181 : vector<8x128xf32>
    %c1_84 = arith.constant 1 : index
    %c0_85 = arith.constant 0 : index
    %c0_86 = arith.constant 0 : index
    %183 = vector.load %arg7[%c1_84, %c0_85, %c0_86] : memref<2x128x32xf32, #tpu.memory_space<vmem>>, vector<1x128x32xf32>
    %184 = vector.shape_cast %183 : vector<1x128x32xf32> to vector<128x32xf32>
    %cst_87 = arith.constant dense<0.000000e+00> : vector<8x32xf32>
    %185 = tpu.matmul %182, %184, %cst_87 {dimension_numbers = #tpu.dot_dimension_numbers<[1], [0], [0], [1], [0, 0, 1, 1], [], []>} : vector<8x128xf32>, vector<128x32xf32>, vector<8x32xf32> -> vector<8x32xf32>
    %186 = arith.addf %154, %185 : vector<8x32xf32>
    %187 = vector.extract_strided_slice %101 {offsets = [2, 0], sizes = [1, 32], strides = [1, 1]} : vector<3x128xf32> to vector<1x32xf32>
    %188 = vector.broadcast %187 : vector<1x32xf32> to vector<8x32xf32>
    %189 = arith.addf %186, %188 : vector<8x32xf32>
    %c0_88 = arith.constant 0 : index
    %c0_89 = arith.constant 0 : index
    %c0_90 = arith.constant 0 : index
    %190 = vector.load %arg9[%c0_88, %c0_89, %c0_90] : memref<2x8x32xf32, #tpu.memory_space<vmem>>, vector<2x8x32xf32>
    %cst_91 = arith.constant dense<0.000000e+00> : vector<8xf32>
    %191 = vector.multi_reduction <add>, %189, %cst_91 [1] : vector<8x32xf32> to vector<8xf32>
    %192 = vector.shape_cast %191 : vector<8xf32> to vector<8x1xf32>
    %cst_92 = arith.constant dense<0.000000e+00> : vector<1xf32>
    %193 = vector.multi_reduction <add>, %192, %cst_92 [0] : vector<8x1xf32> to vector<1xf32>
    %194 = vector.shape_cast %193 : vector<1xf32> to vector<1x1xf32>
    %cst_93 = arith.constant 3.906250e-03 : f32
    %195 = vector.broadcast %cst_93 : f32 to vector<1x1xf32>
    %196 = arith.mulf %194, %195 : vector<1x1xf32>
    %197 = vector.broadcast %196 : vector<1x1xf32> to vector<8x32xf32>
    %198 = arith.subf %189, %197 : vector<8x32xf32>
    %199 = arith.mulf %198, %198 : vector<8x32xf32>
    %cst_94 = arith.constant dense<0.000000e+00> : vector<8xf32>
    %200 = vector.multi_reduction <add>, %199, %cst_94 [1] : vector<8x32xf32> to vector<8xf32>
    %201 = vector.shape_cast %200 : vector<8xf32> to vector<8x1xf32>
    %cst_95 = arith.constant dense<0.000000e+00> : vector<1xf32>
    %202 = vector.multi_reduction <add>, %201, %cst_95 [0] : vector<8x1xf32> to vector<1xf32>
    %203 = vector.shape_cast %202 : vector<1xf32> to vector<1x1xf32>
    %cst_96 = arith.constant 0.00392156886 : f32
    %204 = vector.broadcast %cst_96 : f32 to vector<1x1xf32>
    %205 = arith.mulf %203, %204 : vector<1x1xf32>
    %206 = math.sqrt %205 : vector<1x1xf32>
    %207 = vector.extract_strided_slice %190 {offsets = [0, 0, 0], sizes = [1, 8, 32], strides = [1, 1, 1]} : vector<2x8x32xf32> to vector<1x8x32xf32>
    %208 = vector.shape_cast %207 : vector<1x8x32xf32> to vector<8x32xf32>
    %209 = arith.mulf %208, %198 : vector<8x32xf32>
    %cst_97 = arith.constant 9.99999997E-7 : f32
    %210 = vector.broadcast %cst_97 : f32 to vector<1x1xf32>
    %211 = arith.addf %206, %210 : vector<1x1xf32>
    %212 = vector.broadcast %211 : vector<1x1xf32> to vector<8x32xf32>
    %213 = arith.divf %209, %212 : vector<8x32xf32>
    %214 = vector.extract_strided_slice %190 {offsets = [1, 0, 0], sizes = [1, 8, 32], strides = [1, 1, 1]} : vector<2x8x32xf32> to vector<1x8x32xf32>
    %215 = vector.shape_cast %214 : vector<1x8x32xf32> to vector<8x32xf32>
    %216 = arith.addf %213, %215 : vector<8x32xf32>
    %c0_98 = arith.constant 0 : index
    %c0_99 = arith.constant 0 : index
    %217 = vector.load %arg13[%c0_98, %c0_99] : memref<3x1024xf32, #tpu.memory_space<vmem>>, vector<3x1024xf32>
    %218 = vector.extract_strided_slice %217 {offsets = [0, 0], sizes = [1, 1024], strides = [1, 1]} : vector<3x1024xf32> to vector<1x1024xf32>
    %219 = vector.extract_strided_slice %216 {offsets = [0, 0], sizes = [1, 32], strides = [1, 1]} : vector<8x32xf32> to vector<1x32xf32>
    %c0_100 = arith.constant 0 : index
    %c0_101 = arith.constant 0 : index
    %220 = vector.load %arg10[%c0_100, %c0_101] : memref<256x1024xf32, #tpu.memory_space<vmem>>, vector<32x1024xf32>
    %cst_102 = arith.constant dense<0.000000e+00> : vector<1x1024xf32>
    %221 = tpu.matmul %219, %220, %cst_102 {dimension_numbers = #tpu.dot_dimension_numbers<[1], [0], [0], [1], [0, 0, 1, 1], [], []>} : vector<1x32xf32>, vector<32x1024xf32>, vector<1x1024xf32> -> vector<1x1024xf32>
    %222 = arith.addf %218, %221 : vector<1x1024xf32>
    %223 = vector.extract_strided_slice %216 {offsets = [1, 0], sizes = [1, 32], strides = [1, 1]} : vector<8x32xf32> to vector<1x32xf32>
    %c32 = arith.constant 32 : index
    %c0_103 = arith.constant 0 : index
    %224 = vector.load %arg10[%c32, %c0_103] : memref<256x1024xf32, #tpu.memory_space<vmem>>, vector<32x1024xf32>
    %cst_104 = arith.constant dense<0.000000e+00> : vector<1x1024xf32>
    %225 = tpu.matmul %223, %224, %cst_104 {dimension_numbers = #tpu.dot_dimension_numbers<[1], [0], [0], [1], [0, 0, 1, 1], [], []>} : vector<1x32xf32>, vector<32x1024xf32>, vector<1x1024xf32> -> vector<1x1024xf32>
    %226 = arith.addf %222, %225 : vector<1x1024xf32>
    %227 = vector.extract_strided_slice %216 {offsets = [2, 0], sizes = [1, 32], strides = [1, 1]} : vector<8x32xf32> to vector<1x32xf32>
    %c64 = arith.constant 64 : index
    %c0_105 = arith.constant 0 : index
    %228 = vector.load %arg10[%c64, %c0_105] : memref<256x1024xf32, #tpu.memory_space<vmem>>, vector<32x1024xf32>
    %cst_106 = arith.constant dense<0.000000e+00> : vector<1x1024xf32>
    %229 = tpu.matmul %227, %228, %cst_106 {dimension_numbers = #tpu.dot_dimension_numbers<[1], [0], [0], [1], [0, 0, 1, 1], [], []>} : vector<1x32xf32>, vector<32x1024xf32>, vector<1x1024xf32> -> vector<1x1024xf32>
    %230 = arith.addf %226, %229 : vector<1x1024xf32>
    %231 = vector.extract_strided_slice %216 {offsets = [3, 0], sizes = [1, 32], strides = [1, 1]} : vector<8x32xf32> to vector<1x32xf32>
    %c96 = arith.constant 96 : index
    %c0_107 = arith.constant 0 : index
    %232 = vector.load %arg10[%c96, %c0_107] : memref<256x1024xf32, #tpu.memory_space<vmem>>, vector<32x1024xf32>
    %cst_108 = arith.constant dense<0.000000e+00> : vector<1x1024xf32>
    %233 = tpu.matmul %231, %232, %cst_108 {dimension_numbers = #tpu.dot_dimension_numbers<[1], [0], [0], [1], [0, 0, 1, 1], [], []>} : vector<1x32xf32>, vector<32x1024xf32>, vector<1x1024xf32> -> vector<1x1024xf32>
    %234 = arith.addf %230, %233 : vector<1x1024xf32>
    %235 = vector.extract_strided_slice %216 {offsets = [4, 0], sizes = [1, 32], strides = [1, 1]} : vector<8x32xf32> to vector<1x32xf32>
    %c128 = arith.constant 128 : index
    %c0_109 = arith.constant 0 : index
    %236 = vector.load %arg10[%c128, %c0_109] : memref<256x1024xf32, #tpu.memory_space<vmem>>, vector<32x1024xf32>
    %cst_110 = arith.constant dense<0.000000e+00> : vector<1x1024xf32>
    %237 = tpu.matmul %235, %236, %cst_110 {dimension_numbers = #tpu.dot_dimension_numbers<[1], [0], [0], [1], [0, 0, 1, 1], [], []>} : vector<1x32xf32>, vector<32x1024xf32>, vector<1x1024xf32> -> vector<1x1024xf32>
    %238 = arith.addf %234, %237 : vector<1x1024xf32>
    %239 = vector.extract_strided_slice %216 {offsets = [5, 0], sizes = [1, 32], strides = [1, 1]} : vector<8x32xf32> to vector<1x32xf32>
    %c160 = arith.constant 160 : index
    %c0_111 = arith.constant 0 : index
    %240 = vector.load %arg10[%c160, %c0_111] : memref<256x1024xf32, #tpu.memory_space<vmem>>, vector<32x1024xf32>
    %cst_112 = arith.constant dense<0.000000e+00> : vector<1x1024xf32>
    %241 = tpu.matmul %239, %240, %cst_112 {dimension_numbers = #tpu.dot_dimension_numbers<[1], [0], [0], [1], [0, 0, 1, 1], [], []>} : vector<1x32xf32>, vector<32x1024xf32>, vector<1x1024xf32> -> vector<1x1024xf32>
    %242 = arith.addf %238, %241 : vector<1x1024xf32>
    %243 = vector.extract_strided_slice %216 {offsets = [6, 0], sizes = [1, 32], strides = [1, 1]} : vector<8x32xf32> to vector<1x32xf32>
    %c192 = arith.constant 192 : index
    %c0_113 = arith.constant 0 : index
    %244 = vector.load %arg10[%c192, %c0_113] : memref<256x1024xf32, #tpu.memory_space<vmem>>, vector<32x1024xf32>
    %cst_114 = arith.constant dense<0.000000e+00> : vector<1x1024xf32>
    %245 = tpu.matmul %243, %244, %cst_114 {dimension_numbers = #tpu.dot_dimension_numbers<[1], [0], [0], [1], [0, 0, 1, 1], [], []>} : vector<1x32xf32>, vector<32x1024xf32>, vector<1x1024xf32> -> vector<1x1024xf32>
    %246 = arith.addf %242, %245 : vector<1x1024xf32>
    %247 = vector.extract_strided_slice %216 {offsets = [7, 0], sizes = [1, 32], strides = [1, 1]} : vector<8x32xf32> to vector<1x32xf32>
    %c224 = arith.constant 224 : index
    %c0_115 = arith.constant 0 : index
    %248 = vector.load %arg10[%c224, %c0_115] : memref<256x1024xf32, #tpu.memory_space<vmem>>, vector<32x1024xf32>
    %cst_116 = arith.constant dense<0.000000e+00> : vector<1x1024xf32>
    %249 = tpu.matmul %247, %248, %cst_116 {dimension_numbers = #tpu.dot_dimension_numbers<[1], [0], [0], [1], [0, 0, 1, 1], [], []>} : vector<1x32xf32>, vector<32x1024xf32>, vector<1x1024xf32> -> vector<1x1024xf32>
    %250 = arith.addf %246, %249 : vector<1x1024xf32>
    %cst_117 = arith.constant 0.000000e+00 : f32
    %251 = vector.broadcast %cst_117 : f32 to vector<1x1024xf32>
    %252 = arith.maximumf %250, %251 : vector<1x1024xf32>
    %c0_118 = arith.constant 0 : index
    %c0_119 = arith.constant 0 : index
    %253 = vector.load %arg11[%c0_118, %c0_119] : memref<1024x256xf32, #tpu.memory_space<vmem>>, vector<1024x256xf32>
    %cst_120 = arith.constant dense<0.000000e+00> : vector<1x256xf32>
    %254 = tpu.matmul %252, %253, %cst_120 {dimension_numbers = #tpu.dot_dimension_numbers<[1], [0], [0], [1], [0, 0, 1, 1], [], []>} : vector<1x1024xf32>, vector<1024x256xf32>, vector<1x256xf32> -> vector<1x256xf32>
    %255 = vector.extract_strided_slice %217 {offsets = [1, 0], sizes = [1, 256], strides = [1, 1]} : vector<3x1024xf32> to vector<1x256xf32>
    %256 = arith.addf %254, %255 : vector<1x256xf32>
    %c0_121 = arith.constant 0 : index
    %c0_122 = arith.constant 0 : index
    %257 = vector.load %arg12[%c0_121, %c0_122] : memref<256x10xf32, #tpu.memory_space<vmem>>, vector<256x10xf32>
    %cst_123 = arith.constant dense<0.000000e+00> : vector<1x10xf32>
    %258 = tpu.matmul %256, %257, %cst_123 {dimension_numbers = #tpu.dot_dimension_numbers<[1], [0], [0], [1], [0, 0, 1, 1], [], []>} : vector<1x256xf32>, vector<256x10xf32>, vector<1x10xf32> -> vector<1x10xf32>
    %259 = vector.extract_strided_slice %217 {offsets = [2, 0], sizes = [1, 10], strides = [1, 1]} : vector<3x1024xf32> to vector<1x10xf32>
    %260 = arith.addf %258, %259 : vector<1x10xf32>
    %261 = vector.extract_strided_slice %260 {offsets = [0, 0], sizes = [1, 3], strides = [1, 1]} : vector<1x10xf32> to vector<1x3xf32>
    %cst_124 = arith.constant dense<0xFF800000> : vector<1xf32>
    %262 = vector.multi_reduction <maximumf>, %261, %cst_124 [1] : vector<1x3xf32> to vector<1xf32>
    %263 = vector.shape_cast %262 : vector<1xf32> to vector<1x1xf32>
    %264 = vector.broadcast %263 : vector<1x1xf32> to vector<1x3xf32>
    %265 = arith.subf %261, %264 : vector<1x3xf32>
    %266 = math.exp %265 : vector<1x3xf32>
    %cst_125 = arith.constant dense<0.000000e+00> : vector<1xf32>
    %267 = vector.multi_reduction <add>, %266, %cst_125 [1] : vector<1x3xf32> to vector<1xf32>
    %268 = vector.shape_cast %267 : vector<1xf32> to vector<1x1xf32>
    %269 = tpu.reciprocal %268 {approx = true} : vector<1x1xf32> -> vector<1x1xf32>
    %270 = vector.broadcast %269 : vector<1x1xf32> to vector<1x3xf32>
    %271 = arith.mulf %266, %270 : vector<1x3xf32>
    %272 = vector.extract_strided_slice %260 {offsets = [0, 3], sizes = [1, 3], strides = [1, 1]} : vector<1x10xf32> to vector<1x3xf32>
    %cst_126 = arith.constant dense<0xFF800000> : vector<1xf32>
    %273 = vector.multi_reduction <maximumf>, %272, %cst_126 [1] : vector<1x3xf32> to vector<1xf32>
    %274 = vector.shape_cast %273 : vector<1xf32> to vector<1x1xf32>
    %275 = vector.broadcast %274 : vector<1x1xf32> to vector<1x3xf32>
    %276 = arith.subf %272, %275 : vector<1x3xf32>
    %277 = math.exp %276 : vector<1x3xf32>
    %cst_127 = arith.constant dense<0.000000e+00> : vector<1xf32>
    %278 = vector.multi_reduction <add>, %277, %cst_127 [1] : vector<1x3xf32> to vector<1xf32>
    %279 = vector.shape_cast %278 : vector<1xf32> to vector<1x1xf32>
    %280 = tpu.reciprocal %279 {approx = true} : vector<1x1xf32> -> vector<1x1xf32>
    %281 = vector.broadcast %280 : vector<1x1xf32> to vector<1x3xf32>
    %282 = arith.mulf %277, %281 : vector<1x3xf32>
    %283 = vector.extract_strided_slice %260 {offsets = [0, 6], sizes = [1, 3], strides = [1, 1]} : vector<1x10xf32> to vector<1x3xf32>
    %cst_128 = arith.constant dense<0xFF800000> : vector<1xf32>
    %284 = vector.multi_reduction <maximumf>, %283, %cst_128 [1] : vector<1x3xf32> to vector<1xf32>
    %285 = vector.shape_cast %284 : vector<1xf32> to vector<1x1xf32>
    %286 = vector.broadcast %285 : vector<1x1xf32> to vector<1x3xf32>
    %287 = arith.subf %283, %286 : vector<1x3xf32>
    %288 = math.exp %287 : vector<1x3xf32>
    %cst_129 = arith.constant dense<0.000000e+00> : vector<1xf32>
    %289 = vector.multi_reduction <add>, %288, %cst_129 [1] : vector<1x3xf32> to vector<1xf32>
    %290 = vector.shape_cast %289 : vector<1xf32> to vector<1x1xf32>
    %291 = tpu.reciprocal %290 {approx = true} : vector<1x1xf32> -> vector<1x1xf32>
    %292 = vector.broadcast %291 : vector<1x1xf32> to vector<1x3xf32>
    %293 = arith.mulf %288, %292 : vector<1x3xf32>
    %294 = vector.extract_strided_slice %260 {offsets = [0, 9], sizes = [1, 1], strides = [1, 1]} : vector<1x10xf32> to vector<1x1xf32>
    %295 = tpu.concatenate %271, %282, %293, %294 in 1 : vector<1x3xf32>, vector<1x3xf32>, vector<1x3xf32>, vector<1x1xf32> -> vector<1x10xf32>
    %c0_130 = arith.constant 0 : index
    %c0_131 = arith.constant 0 : index
    %c0_132 = arith.constant 0 : index
    %296 = vector.load %arg14[%c0_130, %c0_131, %c0_132] : memref<1x1x10xf32, #tpu.memory_space<vmem>>, vector<1x1x10xf32>
    %297 = vector.shape_cast %296 : vector<1x1x10xf32> to vector<1x10xf32>
    %298 = vector.shape_cast %295 : vector<1x10xf32> to vector<1x1x10xf32>
    tpu.vector_store %arg14[%c0_130, %c0_131, %c0_132], %298 {strides = array<i32>} : memref<1x1x10xf32, #tpu.memory_space<vmem>>, vector<1x1x10xf32>,
    return
  }
  func.func @transform_0(%arg0: i32) -> (i32, i32, i32) {
    %c0_i32 = arith.constant 0 : i32
    %c0_i32_0 = arith.constant 0 : i32
    %c0_i32_1 = arith.constant 0 : i32
    return %arg0, %c0_i32, %c0_i32_0 : i32, i32, i32
  }
  func.func @transform_1(%arg0: i32) -> (i32, i32, i32) {
    %c0_i32 = arith.constant 0 : i32
    %c0_i32_0 = arith.constant 0 : i32
    %c0_i32_1 = arith.constant 0 : i32
    %c0_i32_2 = arith.constant 0 : i32
    return %c0_i32, %c0_i32_0, %c0_i32_1 : i32, i32, i32
  }
  func.func @transform_2(%arg0: i32) -> (i32, i32, i32, i32) {
    %c0_i32 = arith.constant 0 : i32
    %c0_i32_0 = arith.constant 0 : i32
    %c0_i32_1 = arith.constant 0 : i32
    %c0_i32_2 = arith.constant 0 : i32
    %c0_i32_3 = arith.constant 0 : i32
    return %c0_i32, %c0_i32_0, %c0_i32_1, %c0_i32_2 : i32, i32, i32, i32
  }
  func.func @transform_3(%arg0: i32) -> (i32, i32, i32, i32) {
    %c0_i32 = arith.constant 0 : i32
    %c0_i32_0 = arith.constant 0 : i32
    %c0_i32_1 = arith.constant 0 : i32
    %c0_i32_2 = arith.constant 0 : i32
    %c0_i32_3 = arith.constant 0 : i32
    return %c0_i32, %c0_i32_0, %c0_i32_1, %c0_i32_2 : i32, i32, i32, i32
  }
  func.func @transform_4(%arg0: i32) -> (i32, i32, i32, i32) {
    %c0_i32 = arith.constant 0 : i32
    %c0_i32_0 = arith.constant 0 : i32
    %c0_i32_1 = arith.constant 0 : i32
    %c0_i32_2 = arith.constant 0 : i32
    %c0_i32_3 = arith.constant 0 : i32
    return %c0_i32, %c0_i32_0, %c0_i32_1, %c0_i32_2 : i32, i32, i32, i32
  }
  func.func @transform_5(%arg0: i32) -> (i32, i32, i32) {
    %c0_i32 = arith.constant 0 : i32
    %c0_i32_0 = arith.constant 0 : i32
    %c0_i32_1 = arith.constant 0 : i32
    %c0_i32_2 = arith.constant 0 : i32
    return %c0_i32, %c0_i32_0, %c0_i32_1 : i32, i32, i32
  }
  func.func @transform_6(%arg0: i32) -> (i32, i32, i32) {
    %c0_i32 = arith.constant 0 : i32
    %c0_i32_0 = arith.constant 0 : i32
    %c0_i32_1 = arith.constant 0 : i32
    %c0_i32_2 = arith.constant 0 : i32
    return %c0_i32, %c0_i32_0, %c0_i32_1 : i32, i32, i32
  }
  func.func @transform_7(%arg0: i32) -> (i32, i32, i32) {
    %c0_i32 = arith.constant 0 : i32
    %c0_i32_0 = arith.constant 0 : i32
    %c0_i32_1 = arith.constant 0 : i32
    %c0_i32_2 = arith.constant 0 : i32
    return %c0_i32, %c0_i32_0, %c0_i32_1 : i32, i32, i32
  }
  func.func @transform_8(%arg0: i32) -> (i32, i32, i32) {
    %c0_i32 = arith.constant 0 : i32
    %c0_i32_0 = arith.constant 0 : i32
    %c0_i32_1 = arith.constant 0 : i32
    %c0_i32_2 = arith.constant 0 : i32
    return %c0_i32, %c0_i32_0, %c0_i32_1 : i32, i32, i32
  }
  func.func @transform_9(%arg0: i32) -> (i32, i32) {
    %c0_i32 = arith.constant 0 : i32
    %c0_i32_0 = arith.constant 0 : i32
    %c0_i32_1 = arith.constant 0 : i32
    return %c0_i32, %c0_i32_0 : i32, i32
  }
  func.func @transform_10(%arg0: i32) -> (i32, i32) {
    %c0_i32 = arith.constant 0 : i32
    %c0_i32_0 = arith.constant 0 : i32
    %c0_i32_1 = arith.constant 0 : i32
    return %c0_i32, %c0_i32_0 : i32, i32
  }
  func.func @transform_11(%arg0: i32) -> (i32, i32) {
    %c0_i32 = arith.constant 0 : i32
    %c0_i32_0 = arith.constant 0 : i32
    %c0_i32_1 = arith.constant 0 : i32
    return %c0_i32, %c0_i32_0 : i32, i32
  }
  func.func @transform_12(%arg0: i32) -> (i32, i32) {
    %c0_i32 = arith.constant 0 : i32
    %c0_i32_0 = arith.constant 0 : i32
    %c0_i32_1 = arith.constant 0 : i32
    return %c0_i32, %c0_i32_0 : i32, i32
  }
  func.func @transform_13(%arg0: i32) -> (i32, i32, i32) {
    %c0_i32 = arith.constant 0 : i32
    %c0_i32_0 = arith.constant 0 : i32
    %c0_i32_1 = arith.constant 0 : i32
    return %arg0, %c0_i32, %c0_i32_0 : i32, i32, i32
  }
}

</mosaic_0001>

<bundles_post_ra>
// kernel: tpu_custom_call.1
= control target key start
LH: loop header
LB: loop body
LE: loop exit
PB: predicated region body
PF: predicated region fallthrough
CT: control target
= control target key end

     0   :  { %18 = vsyncpa [#allocation3], 0  ;;  %s11125_s0 = inlined_call_operand.vmem [shape: f32[2,8,32], index: 0, kind: input, shape index: {}]   ;;  %s11126_s1 = inlined_call_operand.vmem [shape: f32[2,2,32], index: 1, kind: input, shape index: {}]   ;;  %s11127_s2 = inlined_call_operand.vmem [shape: f32[2,12,32,8], index: 2, kind: input, shape index: {}]   ;;  %s11128_s3 = inlined_call_operand.vmem [shape: f32[2,12,1,8], index: 3, kind: input, shape index: {}]   ;;  %s11129_s4 = inlined_call_operand.vmem [shape: f32[2,4,8,32], index: 4, kind: input, shape index: {}]   ;;  %s11130_s5 = inlined_call_operand.vmem [shape: f32[2,32,128], index: 5, kind: input, shape index: {}]   ;;  %s11131_s6 = inlined_call_operand.vmem [shape: f32[2,128,32], index: 6, kind: input, shape index: {}]   ;;  %s11132_s7 = inlined_call_operand.vmem [shape: f32[2,3,128], index: 7, kind: input, shape index: {}]   ;;  %s11133_s8 = inlined_call_operand.vmem [shape: f32[2,8,32], index: 8, kind: input, shape index: {}]   ;;  %s11134_s9 = inlined_call_operand.hbm [shape: f32[256,1024], index: 9, kind: input, shape index: {}]   ;;  %s11135_s10 = inlined_call_operand.hbm [shape: f32[1024,256], index: 10, kind: input, shape index: {}]   ;;  %s11136_s11 = inlined_call_operand.vmem [shape: f32[256,10], index: 11, kind: input, shape index: {}]   ;;  %s11137_s12 = inlined_call_operand.vmem [shape: f32[3,1024], index: 12, kind: input, shape index: {}]   ;;  %s11138_s13 = inlined_call_operand.hbm [shape: f32[2,1,10], index: 13, kind: output, shape index: {}]  }
   0x1   :  { %19 = vsyncpa [#allocation6], 0 }
   0x2   :  { %20 = vsyncpa [#allocation4], 0 }
   0x3   :  { %22 = vsyncpa [#allocation4 + $0x1], 0  ;;  %s9650_s25 = smov 0   ;;  %s9652_s26 = smov 0  }
   0x4   :  { %s9654_s27 = smov 0   ;;  %s9656_s28 = smov 0  }
   0x5 LB: > { %11145 = sst [smem:[#allocation11_spill]] %s9555_s25  ;;  %s9671_s29 = sadd.s32 4294967295, %s9567_s28   ;;  %s9567_s28 = sphi %s9656_s28, %s11161_s28   ;;  %s9563_s27 = sphi %s9654_s27, %s11163_s27   ;;  %s9559_s26 = sphi %s9652_s26, %s11165_s26   ;;  %s9555_s25 = sphi %s9650_s25, %s11164_s25  }
   0x6   : > { %11146 = sst [smem:[#allocation12_spill]] %s9563_s27  ;;  %s8380_s30 = sadd.s32 4294967294, %s9567_s28  }
   0x7   : > { %s9675_s14 = sadd.s32 1, %s9567_s28   ;;  %s313_s15 = sadd.s32 1, %s9563_s27 }
   0x8   : > { %11147 = sst [smem:[#allocation13_spill]] %s9675_s14  ;;  %s310_s16 = ssub.s32 %s9567_s28, %s9675_s14 }
   0x9   : > { %p323_p0 = scmp.ne.s32.totalorder %s9563_s27, %s9559_s26  ;;  %p311_p1 = scmp.eq.s32.totalorder %s310_s16, 0 }
   0xa   : > { %p324_p2 = scmp.eq.s32.totalorder %s9671_s29, 1  ;;  %p329_p3 = scmp.ne.s32.totalorder %s9559_s26, %s9555_s25 }
   0xb   : > { %p330_p4 = scmp.eq.s32.totalorder %s8380_s30, 1  ;;  %p8381_p7 = scmp.ge.s32.totalorder %s9567_s28, 1 }
   0xc   : > { %s9686_s17 = scalar_select %p311_p1, %s9563_s27, %s313_s15  }
   0xd   : > { %p9688_p5 = por %p324_p2, %p323_p0  ;;  %p9692_p6 = por %p330_p4, %p329_p3 }
   0xe   : > { %11148 = sst [smem:[#allocation14_spill]] %s9686_s17  ;;  %p337_p8 = scmp.lt.s32.totalorder %s9567_s28, 3 }
   0xf   : > { %s11150_s19 = scalar_select %p9692_p6, 1, 0 }
  0x10   : > { %p11140_p9 = scmp.eq.s32.totalorder %s9671_s29, 0  ;;  %p9699_p10 = pnand %p8381_p7, %p337_p8 }
  0x11   : > { %11151 = sst [smem:[#allocation15_spill]] %s11150_s19  ;;  %s9569_s21 = smov [#allocation2]  }
  0x12   : > { %s373_s22 = sshll.u32 %s9569_s21, 4  ;;  %p9325_p11 = pneg %p9699_p10  ;;  %s374_s22 = int_to_ptr.vmem [resolvable:$true] %s373_s22 }
  0x13   : > { %s9570_s24 = smov [#allocation5]   ;;  %s9458_s15 = scalar_lea.vmem %s374_s22, 32768 }
  0x14   : > { %p9707_p12 = pnand %p11140_p9, %p9325_p11  ;;  %s386_s30 = sshll.u32 %s9570_s24, 4  ;;  %s387_s30 = int_to_ptr.vmem [resolvable:$true] %s386_s30 }
  0x15   : > { %p9459_p0 = scmp.ne.s32.totalorder %s374_s22, %s9458_s15  ;;  %p9466_p3 = scmp.lt.s32.totalorder %s374_s22, %s374_s22 }
  0x16   : > { %p9449_p13 = pneg %p9707_p12  ;;  %p9467_p4 = scmp.lt.s32.totalorder %s9458_s15, %s9458_s15 }
  0x18   : > { %p9461_p1 = pnand %p9459_p0, %p9449_p13  ;;  %p9468_p7 = por %p9467_p4, %p9466_p3 }
  0x1a   : > { %p9462_p2 = pneg %p9461_p1 }
  0x1c   : > { %p9469_p8 = pnand %p9468_p7, %p9462_p2 }
  0x1e   : > { %9472 = shalt.err (!%p9469_p8)
}
  0x1f   : > { %s9571_s16 = smov 1024   ;;  %s9572_s21 = smov 64  }
  0x20   : > { %9328 = dma.hbm_to_vmem [thread:$0]  (!%p9707_p12), %s11134_s9, 32768, %s374_s22, [#allocation3], %s9571_s16, %s9571_s16, %s9572_s21  }
  0x21   : > { %s9484_s27 = scalar_lea.vmem %s387_s30, 32768  ;;  %p9492_p9 = scmp.lt.s32.totalorder %s387_s30, %s387_s30 }
  0x22   : > { %p9485_p11 = scmp.ne.s32.totalorder %s387_s30, %s9484_s27  ;;  %p9493_p6 = scmp.lt.s32.totalorder %s9484_s27, %s9484_s27 }
  0x24   : > { %p9487_p0 = pnand %p9485_p11, %p9449_p13  ;;  %p9494_p3 = por %p9493_p6, %p9492_p9 }
  0x26   : > { %p9488_p1 = pneg %p9487_p0 }
  0x28   : > { %p9495_p2 = pnand %p9494_p3, %p9488_p1 }
  0x2a   : > { %9498 = shalt.err (!%p9495_p2)
}
  0x2b   : > { %s9573_s15 = smov 256   ;;  %s9574_s14 = smov 16  }
  0x2c   : > { %9331 = dma.hbm_to_vmem [thread:$0]  (!%p9707_p12), %s11135_s10, 32768, %s387_s30, [#allocation6], %s9573_s15, %s9573_s15, %s9574_s14  }
  0x2d   : > { %415 = sbr.rel (%p9699_p10) target bundleno = 6033 (0x1791), region = 72  ;;  %p11154_p4 = scmp.eq.s32.totalorder (!%p9699_p10), %s9671_s29, 0 }
  0x32   : > { %9542 = dma.done.wait (%p11154_p4), [#allocation3], 32768   ;;  %p11155_p13 = pmov %p11154_p4 }
  0x33   : > { %p11156_p6 = pmov %p11154_p4 }
  0x34   : > { %9544 = vsyncadd (%p11155_p13), [#allocation3], 4294934528 }
  0x35   : > { %9546 = dma.done.wait (%p11156_p6), [#allocation6], 32768   ;;  %p11157_p9 = pmov %p11154_p4 }
  0x36   : > { %p461_p7 = scmp.lt.s32.totalorder %s9671_s29, 1  ;;  %vm468_vm0 = vcmask 261120   ;;  %v9575_v7 = vmov 0.0   ;;  %v503_v8 = vld [vmem:[%s11127_s2 + $0x18] sm:$0xff]  ;;  %v502_v10 = vld [vmem:[%s11127_s2 + $0x10] sm:$0xff]  ;;  %v501_v12 = vld [vmem:[%s11127_s2 + $0x8] sm:$0xff]  ;;  %v480_v21 = vlaneseq }
  0x37   : > { %9548 = vsyncadd (%p11157_p9), [#allocation6], 4294934528  ;;  %8839 = vmatprep.subr.mxu0 %v9575_v7  ;;  %8872 = vmatprep.subr.mxu1 %v9575_v7  ;;  %v515_v9 = vld [vmem:[%s11127_s2 + $0x78] sm:$0xff]  ;;  %v514_v11 = vld [vmem:[%s11127_s2 + $0x70] sm:$0xff]  ;;  %vm9576_vm1 = vmmov 0   ;;  %vm1475_vm4 = vcmask 64512  }
  0x38   : > { %s462_s25 = scalar_select %p461_p7, %s9671_s29, 1  ;;  %8840 = vmatpush3.msra.mxu0 %v503_v8  ;;  %8873 = vmatpush3.msra.mxu1 %v515_v9  ;;  %v513_v13 = vld [vmem:[%s11127_s2 + $0x68] sm:$0xff]  ;;  %v500_v14 = vld [vmem:[%s11127_s2] sm:$0xff]  ;;  %v9788_v25 = vshrl.u32 %v480_v21, 7  ;;  %v507_v35 = vld [vmem:[%s11127_s2 + $0x38] sm:$0xff]  ;;  %vm8266_vm13 = vcmask 65584  }
  0x39   : > { %8841 = vmatprep.subr.mxu0 %v9575_v7  ;;  %8874 = vmatprep.subr.mxu1 %v9575_v7  ;;  %v512_v15 = vld [vmem:[%s11127_s2 + $0x60] sm:$0xff]  ;;  %v523_v36 = vld [vmem:[%s11127_s2 + $0xb8] sm:$0xff]  ;;  %v506_v37 = vld [vmem:[%s11127_s2 + $0x30] sm:$0xff]  ;;  %vm8250_vm14 = vcmask 40984   ;;  %vm8238_vm15 = vcmask 16384   ;;  %s9577_s16 = smov 122  }
  0x3a   : > { %s8388_s27 = sshll.u32 %s462_s25, 3  ;;  %8842 = vmatpush3.msra.mxu0 %v502_v10  ;;  %8875 = vmatpush3.msra.mxu1 %v514_v11  ;;  %v9791_v26 = vsub.s32 0, %v9788_v25  ;;  %v466_v27 = vld [vmem:[%s11126_s1] sm:$0x3]  ;;  %v9800_v29 = vsub.s32 1, %v9788_v25  ;;  %v522_v38 = vld [vmem:[%s11127_s2 + $0xb0] sm:$0xff] }
  0x3b   : > { %s464_s19 = scalar_lea.vmem %s11125_s0, %s8388_s27  ;;  %8843 = vmatprep.subr.mxu0 %v9575_v7  ;;  %8876 = vmatprep.subr.mxu1 %v9575_v7  ;;  %v505_v39 = vld [vmem:[%s11127_s2 + $0x28] sm:$0xff]  ;;  %v504_v41 = vld [vmem:[%s11127_s2 + $0x20] sm:$0xff]  ;;  %v511_v43 = vld [vmem:[%s11127_s2 + $0x58] sm:$0xff]  ;;  %s9578_s21 = smov 125  }
  0x3c   : > { %v9744_v0 = vld [vmem:[%s464_s19] sm:$0xff]  ;;  %8844 = vmatpush3.msra.mxu0 %v501_v12  ;;  %8877 = vmatpush3.msra.mxu1 %v513_v13  ;;  %v9797_v28 = vrot.slane %v466_v27, %v9791_v26  ;;  %v9803_v30 = vrot.slane %v466_v27, %v9800_v29  ;;  %v521_v40 = vld [vmem:[%s11127_s2 + $0xa8] sm:$0xff]  ;;  %v531_v44 = vld [vmem:[%s11127_s2 + $0xf8] sm:$0xff]  ;;  %s459_s24 = sand.u32 1, %s9559_s26   ;;  %s8589_s15 = sshll.u32 %s9671_s29, 4 }
  0x3d   : > { %v469_v1 = vsel %vm468_vm0, %v9744_v0, 0.0  ;;  %8845 = vmatprep.subr.mxu0 %v9575_v7  ;;  %8878 = vmatprep.subr.mxu1 %v9575_v7  ;;  %v520_v42 = vld [vmem:[%s11127_s2 + $0xa0] sm:$0xff]  ;;  %v510_v45 = vld [vmem:[%s11127_s2 + $0x50] sm:$0xff]  ;;  %v509_v47 = vld [vmem:[%s11127_s2 + $0x48] sm:$0xff]  ;;  %s460_s25 = scalar_lea.vmem [#allocation7], %s459_s24  ;;  %s11090_s19 = scalar_lea.hbm %s11138_s13, %s8589_s15 }
  0x3e   : > { %470 = vadd.xlane.f32.xlu0 %v469_v1  ;;  %8846 = vmatpush3.msra.mxu0 %v500_v14  ;;  %v530_v46 = vld [vmem:[%s11127_s2 + $0xf0] sm:$0xff]  ;;  %v529_v48 = vld [vmem:[%s11127_s2 + $0xe8] sm:$0xff]  ;;  %v508_v49 = vld [vmem:[%s11127_s2 + $0x40] sm:$0xff]  ;;  %s8303_s27 = sshll.u32 %s460_s25, 4  ;;  %s8291_s20 = scalar_lea.sflag [#allocation4], %s459_s24  ;;  %s8304_s27 = int_to_ptr.vmem [resolvable:$true] %s8303_s27 }
  0x3f   : > { %8879 = vmatpush3.msra.mxu1 %v512_v15  ;;  %8847 = vmatprep.mubr.msk.f32.mxu0 %vm9576_vm1, %v9575_v7  ;;  %v528_v50 = vld [vmem:[%s11127_s2 + $0xe0] sm:$0xff]  ;;  %v519_v51 = vld [vmem:[%s11127_s2 + $0x98] sm:$0xff]  ;;  %v518_v53 = vld [vmem:[%s11127_s2 + $0x90] sm:$0xff]  ;;  %s9499_s22 = scalar_lea.vmem %s8304_s27, 16  ;;  %s9579_s29 = smov [#allocation7]  }
  0x40   : > { %8850 = vmatprep.subr.mxu0 %v9575_v7  ;;  %8880 = vmatprep.mubr.msk.f32.mxu1 %vm9576_vm1, %v9575_v7  ;;  %v539_v52 = vld [vmem:[%s11127_s2 + $0x138] sm:$0xff]  ;;  %v538_v54 = vld [vmem:[%s11127_s2 + $0x130] sm:$0xff]  ;;  %v517_v55 = vld [vmem:[%s11127_s2 + $0x88] sm:$0xff]  ;;  %p9500_p10 = scmp.ne.s32.totalorder %s8304_s27, %s9499_s22  ;;  %s9503_s23 = sshll.u32 %s9579_s29, 4  ;;  %s9504_s23 = int_to_ptr.vmem [resolvable:$false] %s9503_s23 }
  0x41   : > { %8894 = vmatprep.subr.mxu1 %v9575_v7  ;;  %v537_v56 = vld [vmem:[%s11127_s2 + $0x128] sm:$0xff]  ;;  %v516_v57 = vld [vmem:[%s11127_s2 + $0x80] sm:$0xff]  ;;  %v527_v59 = vld [vmem:[%s11127_s2 + $0xd8] sm:$0xff]  ;;  %s9505_s30 = scalar_lea.vmem %s9504_s23, 32  ;;  %p9506_p11 = scmp.lt.s32.totalorder %s8304_s27, %s9504_s23 }
  0x42   : > { %v536_v58 = vld [vmem:[%s11127_s2 + $0x120] sm:$0xff]  ;;  %v547_v60 = vld [vmem:[%s11127_s2 + $0x178] sm:$0xff]  ;;  %v526_v61 = vld [vmem:[%s11127_s2 + $0xd0] sm:$0xff]  ;;  %p9501_p12 = pnand %p9500_p10, %p9688_p5  ;;  %p9507_p0 = scmp.lt.s32.totalorder %s9505_s30, %s9499_s22 }
  0x43   : > { %v546_v62 = vld [vmem:[%s11127_s2 + $0x170] sm:$0xff]  ;;  %v525_v63 = vld [vmem:[%s11127_s2 + $0xc8] sm:$0xff]  ;;  %v532_v8 = vld [vmem:[%s11127_s2 + $0x100] sm:$0xff] }
  0x44   : > { %v545_v1 = vld [vmem:[%s11127_s2 + $0x168] sm:$0xff]  ;;  %v543_v9 = vld [vmem:[%s11127_s2 + $0x158] sm:$0xff]  ;;  %v542_v10 = vld [vmem:[%s11127_s2 + $0x150] sm:$0xff]  ;;  %p9502_p8 = pneg %p9501_p12  ;;  %p9508_p1 = por %p9507_p0, %p9506_p11 }
  0x45   : > { %v541_v11 = vld [vmem:[%s11127_s2 + $0x148] sm:$0xff]  ;;  %v540_v12 = vld [vmem:[%s11127_s2 + $0x140] sm:$0xff] }
  0x46   : > { %v8396_v21 = vld [vmem:[%s11128_s3 + $0x7] ss:$0 sm:$0xff]  ;;  %p9509_p3 = pnand %p9508_p1, %p9502_p8 }
  0xc7   : > { %v471_v2 = vpop.xlane.xlu0 %470 }
  0xc8   : > { %v473_v3 = vmul.f32 0.03125, %v471_v2  ;;  %v524_v2 = vld [vmem:[%s11127_s2 + $0xc0] sm:$0xff] }
  0xca   : > { %v474_v4 = vsub.f32 %v9744_v0, %v473_v3  ;;  %v544_v3 = vld [vmem:[%s11127_s2 + $0x160] sm:$0xff] }
  0xcc   : > { %v475_v5 = vmul.f32 %v474_v4, %v474_v4  ;;  %v484_v31 = vmul.f32 %v9797_v28, %v474_v4  ;;  %v535_v4 = vld [vmem:[%s11127_s2 + $0x118] sm:$0xff] }
  0xce   : > { %v476_v6 = vsel %vm468_vm0, %v475_v5, 0.0  ;;  %v534_v5 = vld [vmem:[%s11127_s2 + $0x110] sm:$0xff] }
  0xcf   : > { %477 = vadd.xlane.f32.xlu0 %v476_v6  ;;  %v533_v6 = vld [vmem:[%s11127_s2 + $0x108] sm:$0xff] }
 0x158   : > { %v478_v16 = vpop.xlane.xlu0 %477 }
 0x159   : > { %v479_v17 = vmul.f32 0.032258064, %v478_v16 }
 0x15b   : > { %9383 = vrsqrt.f32 %v479_v17  ;;  %vm487_vm2 = vcmp.eq.f32.partialorder %v479_v17, inf  ;;  %v490_v20 = vand.u32 2147483648, %v479_v17  ;;  %vm489_vm3 = vcmp.eq.f32.partialorder %v479_v17, 0.0 }
 0x168   : > { %v9384_v18 = vpop.eup %9383 }
 0x169   : > { %v486_v19 = vmul.f32 %v9384_v18, %v479_v17 }
 0x16b   : > { %v488_v22 = vsel %vm487_vm2, %v479_v17, %v486_v19  ;;  %vm8286_vm2 = vcmask 72704  }
 0x16c   : > { %v491_v23 = vsel %vm489_vm3, %v490_v20, %v488_v22  ;;  %vm8288_vm3 = vcmask 73728  }
 0x16d   : > { %v492_v24 = vadd.f32 1e-06, %v491_v23 }
 0x16f   : > { %9385 = vrcp.f32 %v492_v24  ;;  %v8392_v24 = vld [vmem:[%s11128_s3 + $0x3] ss:$0 sm:$0xff] }
 0x17c   : > { %v9386_v32 = vpop.eup %9385 }
 0x17d   : > { %v494_v33 = vmul.f32 %v9386_v32, %v484_v31 }
 0x17f   : > { %v9807_v34 = vadd.f32 %v9803_v30, %v494_v33 }
 0x181   : > { %8848 = vmatmul.mubr.msk.f32.vlgmr.msra.gmra.mxu0 %vm468_vm0, %v9807_v34  ;;  %8881 = vmatmul.mubr.msk.f32.vlgmr.msra.gmra.mxu1 %vm468_vm0, %v9807_v34 }
 0x182   : > { %8851 = vmatpush3.msra.mxu0 %v507_v35  ;;  %8895 = vmatpush3.msra.mxu1 %v523_v36  ;;  %v8398_v35 = vld [vmem:[%s11128_s3 + $0x9] ss:$0 sm:$0xff] }
 0x183   : > { %8852 = vmatprep.subr.mxu0 %v9575_v7  ;;  %8896 = vmatprep.subr.mxu1 %v9575_v7 }
 0x184   : > { %8853 = vmatpush3.msra.mxu0 %v506_v37  ;;  %8897 = vmatpush3.msra.mxu1 %v522_v38  ;;  %v8389_v37 = vld [vmem:[%s11128_s3] ss:$0 sm:$0xff] }
 0x185   : > { %8854 = vmatprep.subr.mxu0 %v9575_v7  ;;  %8898 = vmatprep.subr.mxu1 %v9575_v7 }
 0x186   : > { %8855 = vmatpush3.msra.mxu0 %v505_v39  ;;  %8899 = vmatpush3.msra.mxu1 %v521_v40  ;;  %v8394_v40 = vld [vmem:[%s11128_s3 + $0x5] ss:$0 sm:$0xff] }
 0x187   : > { %8856 = vmatprep.subr.mxu0 %v9575_v7  ;;  %8900 = vmatprep.subr.mxu1 %v9575_v7 }
 0x188   : > { %8857 = vmatpush3.msra.mxu0 %v504_v41  ;;  %8858 = vmatprep.mubr.msk.f32.mxu0 %vm9576_vm1, %v9575_v7 }
 0x189   : > { %8901 = vmatpush3.msra.mxu1 %v520_v42  ;;  %8902 = vmatprep.mubr.msk.f32.mxu1 %vm9576_vm1, %v9575_v7 }
 0x18a   : > { %8859 = vmatmul.mubr.msk.f32.vlgmr.msra.gmra.mxu0 %vm468_vm0, %v9807_v34  ;;  %8861 = vmatprep.subr.mxu0 %v9575_v7 }
 0x18b   : > { %8903 = vmatmul.mubr.msk.f32.vlgmr.msra.gmra.mxu1 %vm468_vm0, %v9807_v34  ;;  %8916 = vmatprep.subr.mxu1 %v9575_v7 }
 0x18c   : > { %8862 = vmatpush3.msra.mxu0 %v511_v43  ;;  %8917 = vmatpush3.msra.mxu1 %v531_v44 }
 0x18d   : > { %8863 = vmatprep.subr.mxu0 %v9575_v7  ;;  %8918 = vmatprep.subr.mxu1 %v9575_v7 }
 0x18e   : > { %8864 = vmatpush3.msra.mxu0 %v510_v45  ;;  %8919 = vmatpush3.msra.mxu1 %v530_v46  ;;  %v8390_v45 = vld [vmem:[%s11128_s3 + $0x1] ss:$0 sm:$0xff] }
 0x18f   : > { %8865 = vmatprep.subr.mxu0 %v9575_v7  ;;  %8920 = vmatprep.subr.mxu1 %v9575_v7 }
 0x190   : > { %8866 = vmatpush3.msra.mxu0 %v509_v47  ;;  %8921 = vmatpush3.msra.mxu1 %v529_v48  ;;  %v8395_v48 = vld [vmem:[%s11128_s3 + $0x6] ss:$0 sm:$0xff] }
 0x191   : > { %8867 = vmatprep.subr.mxu0 %v9575_v7  ;;  %8922 = vmatprep.subr.mxu1 %v9575_v7 }
 0x192   : > { %8868 = vmatpush3.msra.mxu0 %v508_v49  ;;  %8869 = vmatprep.mubr.msk.f32.mxu0 %vm9576_vm1, %v9575_v7 }
 0x193   : > { %8923 = vmatpush3.msra.mxu1 %v528_v50  ;;  %8924 = vmatprep.mubr.msk.f32.mxu1 %vm9576_vm1, %v9575_v7  ;;  %v8391_v50 = vld [vmem:[%s11128_s3 + $0x2] ss:$0 sm:$0xff] }
 0x194   : > { %8870 = vmatmul.mubr.msk.f32.vlgmr.msra.gmra.mxu0 %vm468_vm0, %v9807_v34  ;;  %8883 = vmatprep.subr.mxu0 %v9575_v7 }
 0x195   : > { %8925 = vmatmul.mubr.msk.f32.vlgmr.msra.gmra.mxu1 %vm468_vm0, %v9807_v34  ;;  %8938 = vmatprep.subr.mxu1 %v9575_v7 }
 0x196   : > { %8884 = vmatpush3.msra.mxu0 %v519_v51  ;;  %8939 = vmatpush3.msra.mxu1 %v539_v52 }
 0x197   : > { %8885 = vmatprep.subr.mxu0 %v9575_v7  ;;  %8940 = vmatprep.subr.mxu1 %v9575_v7 }
 0x198   : > { %8886 = vmatpush3.msra.mxu0 %v518_v53  ;;  %8941 = vmatpush3.msra.mxu1 %v538_v54 }
 0x199   : > { %8887 = vmatprep.subr.mxu0 %v9575_v7  ;;  %8942 = vmatprep.subr.mxu1 %v9575_v7 }
 0x19a   : > { %8888 = vmatpush3.msra.mxu0 %v517_v55  ;;  %8943 = vmatpush3.msra.mxu1 %v537_v56  ;;  %v8397_v56 = vld [vmem:[%s11128_s3 + $0x8] ss:$0 sm:$0xff] }
 0x19b   : > { %8889 = vmatprep.subr.mxu0 %v9575_v7  ;;  %8944 = vmatprep.subr.mxu1 %v9575_v7 }
 0x19c   : > { %8890 = vmatpush3.msra.mxu0 %v516_v57  ;;  %8891 = vmatprep.mubr.msk.f32.mxu0 %vm9576_vm1, %v9575_v7 }
 0x19d   : > { %8945 = vmatpush3.msra.mxu1 %v536_v58  ;;  %8946 = vmatprep.mubr.msk.f32.mxu1 %vm9576_vm1, %v9575_v7 }
 0x19e   : > { %8892 = vmatmul.mubr.msk.f32.vlgmr.msra.gmra.mxu0 %vm468_vm0, %v9807_v34  ;;  %8905 = vmatprep.subr.mxu0 %v9575_v7 }
 0x19f   : > { %8947 = vmatmul.mubr.msk.f32.vlgmr.msra.gmra.mxu1 %vm468_vm0, %v9807_v34  ;;  %8960 = vmatprep.subr.mxu1 %v9575_v7 }
 0x1a0   : > { %8906 = vmatpush3.msra.mxu0 %v527_v59  ;;  %8961 = vmatpush3.msra.mxu1 %v547_v60 }
 0x1a1   : > { %8907 = vmatprep.subr.mxu0 %v9575_v7  ;;  %8962 = vmatprep.subr.mxu1 %v9575_v7 }
 0x1a2   : > { %8908 = vmatpush3.msra.mxu0 %v526_v61  ;;  %8963 = vmatpush3.msra.mxu1 %v546_v62 }
 0x1a3   : > { %8909 = vmatprep.subr.mxu0 %v9575_v7  ;;  %8964 = vmatprep.subr.mxu1 %v9575_v7 }
 0x1a4   : > { %8910 = vmatpush3.msra.mxu0 %v525_v63  ;;  %8965 = vmatpush3.msra.mxu1 %v545_v1 }
 0x1a5   : > { %8911 = vmatprep.subr.mxu0 %v9575_v7  ;;  %8966 = vmatprep.subr.mxu1 %v9575_v7 }
 0x1a6   : > { %8912 = vmatpush3.msra.mxu0 %v524_v2  ;;  %8913 = vmatprep.mubr.msk.f32.mxu0 %vm9576_vm1, %v9575_v7 }
 0x1a7   : > { %8967 = vmatpush3.msra.mxu1 %v544_v3  ;;  %8968 = vmatprep.mubr.msk.f32.mxu1 %vm9576_vm1, %v9575_v7 }
 0x1a8   : > { %8914 = vmatmul.mubr.msk.f32.vlgmr.msra.gmra.mxu0 %vm468_vm0, %v9807_v34  ;;  %8927 = vmatprep.subr.mxu0 %v9575_v7 }
 0x1a9   : > { %8969 = vmatmul.mubr.msk.f32.vlgmr.msra.gmra.mxu1 %vm468_vm0, %v9807_v34  ;;  %8928 = vmatpush3.msra.mxu0 %v535_v4 }
 0x1aa   : > { %8929 = vmatprep.subr.mxu0 %v9575_v7  ;;  %8935 = vmatprep.mubr.msk.f32.mxu0 %vm9576_vm1, %v9575_v7 }
 0x1ab   : > { %8930 = vmatpush3.msra.mxu0 %v534_v5  ;;  %8986 = vmatprep.subr.mxu1 %v9575_v7 }
 0x1ac   : > { %8931 = vmatprep.subr.mxu0 %v9575_v7  ;;  %8988 = vmatprep.mubr.msk.f32.mxu1 %vm9576_vm1, %v9575_v7 }
 0x1ad   : > { %8932 = vmatpush3.msra.mxu0 %v533_v6 }
 0x1ae   : > { %8933 = vmatprep.subr.mxu0 %v9575_v7 }
 0x1af   : > { %8934 = vmatpush3.msra.mxu0 %v532_v8 }
 0x1b0   : > { %8936 = vmatmul.mubr.msk.f32.vlgmr.msra.gmra.mxu0 %vm468_vm0, %v9807_v34  ;;  %8949 = vmatprep.subr.mxu0 %v9575_v7 }
 0x1b1   : > { %8950 = vmatpush3.msra.mxu0 %v543_v9  ;;  %8957 = vmatprep.mubr.msk.f32.mxu0 %vm9576_vm1, %v9575_v7 }
 0x1b2   : > { %8951 = vmatprep.subr.mxu0 %v9575_v7 }
 0x1b3   : > { %8952 = vmatpush3.msra.mxu0 %v542_v10 }
 0x1b4   : > { %8953 = vmatprep.subr.mxu0 %v9575_v7 }
 0x1b5   : > { %8954 = vmatpush3.msra.mxu0 %v541_v11 }
 0x1b6   : > { %8955 = vmatprep.subr.mxu0 %v9575_v7 }
 0x1b7   : > { %8956 = vmatpush3.msra.mxu0 %v540_v12 }
 0x1b8   : > { %8958 = vmatmul.mubr.msk.f32.vlgmr.msra.gmra.mxu0 %vm468_vm0, %v9807_v34  ;;  %8971 = vmatprep.subr.mxu0 %v9575_v7  ;;  %v8393_v34 = vld [vmem:[%s11128_s3 + $0x4] ss:$0 sm:$0xff] }
 0x1b9   : > { %8973 = vmatprep.mubr.msk.f32.mxu0 %vm9576_vm1, %v9575_v7 }
 0x241   : > { %v701_v13 = vpop.f32.mrf.mxu0  ;;  %v911_v14 = vpop.f32.mrf.mxu1 }
 0x242   : > { %v912_v33 = vadd.f32 %v8392_v24, %v911_v14  ;;  %v702_v44 = vadd.f32 %v8389_v37, %v701_v13 }
 0x243   : > { %v8849_v15 = vpop.f32.mrf.mxu0  ;;  %v8882_v16 = vpop.f32.mrf.mxu1 }
 0x24a   : > { %v771_v17 = vpop.f32.mrf.mxu0 }
 0x24b   : > { %v1051_v18 = vpop.f32.mrf.mxu1  ;;  %v772_v47 = vadd.f32 %v8390_v45, %v771_v17  ;;  %v8400_v45 = vld [vmem:[%s11128_s3 + $0xb] ss:$0 sm:$0xff] }
 0x24c   : > { %v8860_v19 = vpop.f32.mrf.mxu0  ;;  %v1052_v46 = vadd.f32 %v8394_v40, %v1051_v18 }
 0x24d   : > { %v8904_v20 = vpop.f32.mrf.mxu1 }
 0x254   : > { %v841_v22 = vpop.f32.mrf.mxu0 }
 0x255   : > { %v1191_v23 = vpop.f32.mrf.mxu1  ;;  %v842_v55 = vadd.f32 %v8391_v50, %v841_v22 }
 0x256   : > { %v1192_v27 = vadd.f32 %v8396_v21, %v1191_v23  ;;  %v8871_v31 = vpop.f32.mrf.mxu0 }
 0x257   : > { %v8926_v32 = vpop.f32.mrf.mxu1 }
 0x258   : > { %8987 = vmatpush3.xpose.msk.msra.mxu1 %vm1475_vm4, %v1192_v27 }
 0x259   : > { %8996 = vmatprep.subr.mxu1 %v9575_v7 }
 0x25b   : > { %8989 = vmatmul.mubr.msk.f32.vlgmr.msra.gmra.mxu1 %vm1475_vm4, %v912_v33 }
 0x25c   : > { %8998 = vmatprep.mubr.msk.f32.mxu1 %vm9576_vm1, %v9575_v7 }
 0x25e   : > { %v981_v36 = vpop.f32.mrf.mxu0 }
 0x25f   : > { %v982_v38 = vadd.f32 %v8393_v34, %v981_v36  ;;  %v1331_v39 = vpop.f32.mrf.mxu1 }
 0x260   : > { %v1332_v41 = vadd.f32 %v8398_v35, %v1331_v39  ;;  %v8893_v42 = vpop.f32.mrf.mxu0 }
 0x261   : > { %v8948_v43 = vpop.f32.mrf.mxu1  ;;  %8972 = vmatpush3.xpose.msk.msra.mxu0 %vm1475_vm4, %v982_v38 }
 0x262   : > { %8997 = vmatpush3.msra.mxu1 %v1332_v41  ;;  %8976 = vmatprep.subr.mxu0 %v9575_v7  ;;  %v8399_v41 = vld [vmem:[%s11128_s3 + $0xa] ss:$0 sm:$0xff] }
 0x263   : > { %9006 = vmatprep.subr.mxu1 %v9575_v7 }
 0x264   : > { %8974 = vmatmul.mubr.msk.f32.vlgmr.msra.gmra.mxu0 %vm1475_vm4, %v702_v44 }
 0x265   : > { %8977 = vmatpush3.xpose.msk.msra.mxu0 %vm1475_vm4, %v1052_v46  ;;  %8978 = vmatprep.mubr.msk.f32.mxu0 %vm9576_vm1, %v9575_v7 }
 0x266   : > { %8981 = vmatprep.subr.mxu0 %v9575_v7 }
 0x268   : > { %v1121_v49 = vpop.f32.mrf.mxu0  ;;  %8979 = vmatmul.mubr.msk.f32.vlgmr.msra.gmra.mxu0 %vm1475_vm4, %v772_v47 }
 0x269   : > { %v1122_v51 = vadd.f32 %v8395_v48, %v1121_v49  ;;  %v10058_v52 = vpop.f32.mrf.mxu1  ;;  %8983 = vmatprep.mubr.msk.f32.mxu0 %vm9576_vm1, %v9575_v7 }
 0x26a   : > { %v8915_v53 = vpop.f32.mrf.mxu0  ;;  %v1472_v48 = vadd.f32 %v8400_v45, %v10058_v52  ;;  %v2116_v52 = vld [vmem:[%s11129_s4] sm:$0xff]  ;;  %v2535_v45 = vld [vmem:[%s11131_s6 + $0x30] sm:$0xff] }
 0x26b   : > { %v8970_v54 = vpop.f32.mrf.mxu1  ;;  %8982 = vmatpush3.xpose.msk.msra.mxu0 %vm1475_vm4, %v1122_v51 }
 0x26c   : > { %8991 = vmatprep.subr.mxu0 %v9575_v7  ;;  %v2117_v54 = vld [vmem:[%s11129_s4 + $0x8] sm:$0xff] }
 0x26e   : > { %8984 = vmatmul.mubr.msk.f32.vlgmr.msra.gmra.mxu0 %vm1475_vm4, %v842_v55  ;;  %v2118_v55 = vld [vmem:[%s11129_s4 + $0x10] sm:$0xff] }
 0x26f   : > { %8993 = vmatprep.mubr.msk.f32.mxu0 %vm9576_vm1, %v9575_v7 }
 0x270   : > { %v1261_v57 = vpop.f32.mrf.mxu0 }
 0x271   : > { %v1262_v58 = vadd.f32 %v8397_v56, %v1261_v57 }
 0x272   : > { %v8937_v59 = vpop.f32.mrf.mxu0 }
 0x273   : > { %8992 = vmatpush3.msra.mxu0 %v1262_v58  ;;  %v2119_v58 = vld [vmem:[%s11129_s4 + $0x18] sm:$0xff] }
 0x274   : > { %9001 = vmatprep.subr.mxu0 %v9575_v7 }
 0x278   : > { %v1401_v60 = vpop.f32.mrf.mxu0 }
 0x279   : > { %v1402_v44 = vadd.f32 %v8399_v41, %v1401_v60  ;;  %v2539_v41 = vld [vmem:[%s11131_s6 + $0x50] sm:$0xff] }
 0x27a   : > { %v8959_v61 = vpop.f32.mrf.mxu0 }
 0x31b   : > { %v1776_v62 = vpop.f32.mrf.mxu1 }
 0x31c   : > { %v1789_v8 = vsel %vm1475_vm4, %v1776_v62, -inf }
 0x31d   : > { %v8990_v63 = vpop.f32.mrf.mxu1 }
 0x324   : > { %v1548_v1 = vpop.f32.mrf.mxu0 }
 0x325   : > { %v1780_v2 = vsel %vm1475_vm4, %v1548_v1, -inf }
 0x326   : > { %1781 = vmax.xlane.f32.xlu1 %v1780_v2  ;;  %v8975_v3 = vpop.f32.mrf.mxu0 }
 0x328   : > { %v1624_v4 = vpop.f32.mrf.mxu0 }
 0x329   : > { %v1783_v5 = vsel %vm1475_vm4, %v1624_v4, -inf }
 0x32a   : > { %1784 = vmax.xlane.f32.xlu1 %v1783_v5  ;;  %v8980_v6 = vpop.f32.mrf.mxu0 }
 0x32e   : > { %v1700_v9 = vpop.f32.mrf.mxu0  ;;  %1790 = vmax.xlane.f32.xlu1 %v1789_v8 }
 0x32f   : > { %v1786_v10 = vsel %vm1475_vm4, %v1700_v9, -inf }
 0x330   : > { %1787 = vmax.xlane.f32.xlu0 %v1786_v10  ;;  %v8985_v11 = vpop.f32.mrf.mxu0 }
 0x3af   : > { %v1782_v12 = vpop.xlane.xlu1 %1781 }
 0x3b0   : > { %v1792_v13 = vsub.f32 %v1548_v1, %v1782_v12 }
 0x3b2   : > { %v1796_v14 = vmul.f32 1.442695, %v1792_v13 }
 0x3b3   : > { %v1785_v15 = vpop.xlane.xlu1 %1784 }
 0x3b4   : > { %9387 = vpow2.f32 %v1796_v14  ;;  %v1793_v16 = vsub.f32 %v1624_v4, %v1785_v15  ;;  %v10134_v14 = vld [vmem:[%s11132_s7] sm:$0x7] }
 0x3b6   : > { %v1798_v17 = vmul.f32 1.442695, %v1793_v16 }
 0x3b7   : > { %v1791_v18 = vpop.xlane.xlu1 %1790 }
 0x3b8   : > { %9389 = vpow2.f32 %v1798_v17  ;;  %v1795_v19 = vsub.f32 %v1776_v62, %v1791_v18 }
 0x3b9   : > { %v1788_v20 = vpop.xlane.xlu0 %1787 }
 0x3ba   : > { %v1802_v21 = vmul.f32 1.442695, %v1795_v19  ;;  %v1794_v22 = vsub.f32 %v1700_v9, %v1788_v20  ;;  %v2423_v19 = vrot.slane %v10134_v14, %v9791_v26 }
 0x3bc   : > { %9391 = vpow2.f32 %v1802_v21  ;;  %v1800_v23 = vmul.f32 1.442695, %v1794_v22 }
 0x3be   : > { %9393 = vpow2.f32 %v1800_v23 }
 0x3c1   : > { %v9388_v24 = vpop.eup %9387 }
 0x3c2   : > { %v1804_v27 = vsel %vm1475_vm4, %v9388_v24, 0.0 }
 0x3c3   : > { %1805 = vadd.xlane.f32.xlu0 %v1804_v27 }
 0x3c5   : > { %v9390_v31 = vpop.eup %9389 }
 0x3c6   : > { %v1807_v32 = vsel %vm1475_vm4, %v9390_v31, 0.0 }
 0x3c7   : > { %1808 = vadd.xlane.f32.xlu1 %v1807_v32 }
 0x3c9   : > { %v9392_v33 = vpop.eup %9391 }
 0x3ca   : > { %v1813_v34 = vsel %vm1475_vm4, %v9392_v33, 0.0 }
 0x3cb   : > { %v9394_v35 = vpop.eup %9393  ;;  %1814 = vadd.xlane.f32.xlu1 %v1813_v34  ;;  %v2448_v34 = vld [vmem:[%s11130_s5 + $0x8] sm:$0xff] }
 0x3cc   : > { %v1810_v36 = vsel %vm1475_vm4, %v9394_v35, 0.0 }
 0x3cd   : > { %1811 = vadd.xlane.f32.xlu0 %v1810_v36  ;;  %v2544_v36 = vld [vmem:[%s11131_s6 + $0x78] sm:$0xff] }
 0x44c   : > { %v1806_v37 = vpop.xlane.xlu0 %1805 }
 0x44d   : > { %9395 = vrcp.f32 %v1806_v37  ;;  %v2543_v37 = vld [vmem:[%s11131_s6 + $0x70] sm:$0xff] }
 0x450   : > { %v1809_v38 = vpop.xlane.xlu1 %1808 }
 0x451   : > { %9397 = vrcp.f32 %v1809_v38  ;;  %v2542_v38 = vld [vmem:[%s11131_s6 + $0x68] sm:$0xff] }
 0x454   : > { %v1815_v39 = vpop.xlane.xlu1 %1814 }
 0x455   : > { %9399 = vrcp.f32 %v1815_v39  ;;  %v2541_v39 = vld [vmem:[%s11131_s6 + $0x60] sm:$0xff] }
 0x456   : > { %v1812_v40 = vpop.xlane.xlu0 %1811 }
 0x457   : > { %9401 = vrcp.f32 %v1812_v40  ;;  %v2540_v40 = vld [vmem:[%s11131_s6 + $0x58] sm:$0xff] }
 0x45a   : > { %v9396_v42 = vpop.eup %9395 }
 0x45b   : > { %v1820_v43 = vmul.f32 %v9396_v42, %v9388_v24  ;;  %v2538_v42 = vld [vmem:[%s11131_s6 + $0x48] sm:$0xff] }
 0x45d   : > { %8994 = vmatmul.mubr.msk.f32.vlgmr.msra.gmra.mxu0 %vm1475_vm4, %v1820_v43  ;;  %v2537_v43 = vld [vmem:[%s11131_s6 + $0x40] sm:$0xff] }
 0x45e   : > { %v9398_v46 = vpop.eup %9397  ;;  %9002 = vmatpush3.msra.mxu0 %v1402_v44  ;;  %9003 = vmatprep.mubr.msk.f32.mxu0 %vm9576_vm1, %v9575_v7  ;;  %v2536_v44 = vld [vmem:[%s11131_s6 + $0x38] sm:$0xff] }
 0x45f   : > { %v1821_v47 = vmul.f32 %v9398_v46, %v9390_v31  ;;  %9011 = vmatprep.subr.mxu0 %v9575_v7  ;;  %v2534_v46 = vld [vmem:[%s11131_s6 + $0x28] sm:$0xff] }
 0x461   : > { %8999 = vmatmul.mubr.msk.f32.vlgmr.msra.gmra.mxu1 %vm1475_vm4, %v1821_v47  ;;  %v2533_v47 = vld [vmem:[%s11131_s6 + $0x20] sm:$0xff] }
 0x462   : > { %v9400_v49 = vpop.eup %9399  ;;  %9007 = vmatpush3.msra.mxu1 %v1472_v48  ;;  %9008 = vmatprep.mubr.msk.f32.mxu1 %vm9576_vm1, %v9575_v7  ;;  %v2532_v48 = vld [vmem:[%s11131_s6 + $0x18] sm:$0xff] }
 0x463   : > { %v1823_v50 = vmul.f32 %v9400_v49, %v9392_v33  ;;  %9016 = vmatprep.subr.mxu1 %v9575_v7  ;;  %v2449_v33 = vld [vmem:[%s11130_s5 + $0x10] sm:$0xff] }
 0x464   : > { %v9402_v51 = vpop.eup %9401 }
 0x465   : > { %v1822_v53 = vmul.f32 %v9402_v51, %v9394_v35  ;;  %9009 = vmatmul.mubr.msk.f32.vlgmr.msra.gmra.mxu1 %vm1475_vm4, %v1823_v50  ;;  %v2447_v35 = vld [vmem:[%s11130_s5] sm:$0xff] }
 0x466   : > { %9018 = vmatprep.mubr.msk.f32.mxu1 %vm9576_vm1, %v9575_v7  ;;  %9017 = vmatpush3.msra.mxu1 %v2117_v54 }
 0x467   : > { %9004 = vmatmul.mubr.msk.f32.vlgmr.msra.gmra.mxu0 %vm1475_vm4, %v1822_v53  ;;  %9026 = vmatprep.subr.mxu1 %v9575_v7 }
 0x468   : > { %9013 = vmatprep.mubr.msk.f32.mxu0 %vm9576_vm1, %v9575_v7  ;;  %9012 = vmatpush3.msra.mxu0 %v2116_v52 }
 0x469   : > { %9021 = vmatprep.subr.mxu0 %v9575_v7 }
 0x51d   : > { %v1893_v56 = vpop.f32.mrf.mxu0 }
 0x51e   : > { %9014 = vmatmul.mubr.msk.f32.vlgmr.msra.gmra.mxu0 %vm1475_vm4, %v1893_v56 }
 0x51f   : > { %v8995_v57 = vpop.f32.mrf.mxu0  ;;  %9022 = vmatpush3.msra.mxu0 %v2118_v55  ;;  %9023 = vmatprep.mubr.msk.f32.mxu0 %vm9576_vm1, %v9575_v7 }
 0x520   : > { %9031 = vmatprep.subr.mxu0 %v9575_v7 }
 0x521   : > { %v1966_v59 = vpop.f32.mrf.mxu1 }
 0x522   : > { %9019 = vmatmul.mubr.msk.f32.vlgmr.msra.gmra.mxu1 %vm1475_vm4, %v1966_v59 }
 0x523   : > { %v9000_v60 = vpop.f32.mrf.mxu1  ;;  %9027 = vmatpush3.msra.mxu1 %v2119_v58  ;;  %9028 = vmatprep.mubr.msk.f32.mxu1 %vm9576_vm1, %v9575_v7 }
 0x524   : > { %9042 = vmatprep.subr.mxu1 %v9575_v7 }
 0x525   : > { %v2112_v61 = vpop.f32.mrf.mxu1 }
 0x526   : > { %9029 = vmatmul.mubr.msk.f32.vlgmr.msra.gmra.mxu1 %vm1475_vm4, %v2112_v61  ;;  %v2531_v61 = vld [vmem:[%s11131_s6 + $0x10] sm:$0xff] }
 0x527   : > { %v2039_v62 = vpop.f32.mrf.mxu0  ;;  %v9010_v63 = vpop.f32.mrf.mxu1  ;;  %9074 = vmatprep.mubr.msk.f32.mxu1 %vm9576_vm1, %v9575_v7  ;;  %9043 = vmatpush3.msra.mxu1 %v2544_v36 }
 0x528   : > { %9024 = vmatmul.mubr.msk.f32.vlgmr.msra.gmra.mxu0 %vm1475_vm4, %v2039_v62  ;;  %9044 = vmatprep.subr.mxu1 %v9575_v7  ;;  %v2454_v62 = vrot.slane %v10134_v14, %v9800_v29 }
 0x529   : > { %v9005_v1 = vpop.f32.mrf.mxu0  ;;  %9039 = vmatprep.mubr.msk.f32.mxu0 %vm9576_vm1, %v9575_v7  ;;  %9045 = vmatpush3.msra.mxu1 %v2543_v37  ;;  %v8430_v37 = vld [vmem:[%s11126_s1 + $0x2] sm:$0x3] }
 0x52a   : > { %9046 = vmatprep.subr.mxu1 %v9575_v7 }
 0x52b   : > { %9047 = vmatpush3.msra.mxu1 %v2542_v38  ;;  %v10288_v38 = vrot.slane %v8430_v37, %v9791_v26 }
 0x52c   : > { %9048 = vmatprep.subr.mxu1 %v9575_v7 }
 0x52d   : > { %9049 = vmatpush3.msra.mxu1 %v2541_v39  ;;  %v10291_v39 = vrot.slane %v8430_v37, %v9800_v29 }
 0x52e   : > { %9050 = vmatprep.subr.mxu1 %v9575_v7 }
 0x52f   : > { %9051 = vmatpush3.msra.mxu1 %v2540_v40 }
 0x530   : > { %9052 = vmatprep.subr.mxu1 %v9575_v7 }
 0x531   : > { %9053 = vmatpush3.msra.mxu1 %v2539_v41 }
 0x532   : > { %9054 = vmatprep.subr.mxu1 %v9575_v7 }
 0x533   : > { %9055 = vmatpush3.msra.mxu1 %v2538_v42 }
 0x534   : > { %9056 = vmatprep.subr.mxu1 %v9575_v7 }
 0x535   : > { %9057 = vmatpush3.msra.mxu1 %v2537_v43 }
 0x536   : > { %9058 = vmatprep.subr.mxu1 %v9575_v7 }
 0x537   : > { %9059 = vmatpush3.msra.mxu1 %v2536_v44  ;;  %v8439_v44 = vld [vmem:[%s11127_s2 + $0x1b8] sm:$0xff] }
 0x538   : > { %9060 = vmatprep.subr.mxu1 %v9575_v7 }
 0x539   : > { %9061 = vmatpush3.msra.mxu1 %v2535_v45  ;;  %v8459_v45 = vld [vmem:[%s11127_s2 + $0x258] sm:$0xff] }
 0x53a   : > { %9062 = vmatprep.subr.mxu1 %v9575_v7 }
 0x53b   : > { %9063 = vmatpush3.msra.mxu1 %v2534_v46  ;;  %v8438_v46 = vld [vmem:[%s11127_s2 + $0x1b0] sm:$0xff] }
 0x53c   : > { %9064 = vmatprep.subr.mxu1 %v9575_v7 }
 0x53d   : > { %9065 = vmatpush3.msra.mxu1 %v2533_v47  ;;  %v8458_v47 = vld [vmem:[%s11127_s2 + $0x250] sm:$0xff] }
 0x53e   : > { %9066 = vmatprep.subr.mxu1 %v9575_v7 }
 0x53f   : > { %9067 = vmatpush3.msra.mxu1 %v2532_v48  ;;  %v8437_v48 = vld [vmem:[%s11127_s2 + $0x1a8] sm:$0xff] }
 0x540   : > { %9068 = vmatprep.subr.mxu1 %v9575_v7 }
 0x541   : > { %9069 = vmatpush3.msra.mxu1 %v2531_v61  ;;  %v8475_v61 = vld [vmem:[%s11127_s2 + $0x2d8] sm:$0xff] }
 0x542   : > { %9070 = vmatprep.subr.mxu1 %v9575_v7 }
 0x5de   : > { %v2189_v2 = vpop.f32.mrf.mxu0 }
 0x5df   : > { %v2412_v9 = vsel %vm468_vm0, %v2189_v2, 0.0 }
 0x5e0   : > { %v9015_v3 = vpop.f32.mrf.mxu0 }
 0x5e2   : > { %v2262_v4 = vpop.f32.mrf.mxu1 }
 0x5e3   : > { %v2413_v6 = vsel %vm468_vm0, %v2262_v4, 0.0  ;;  %v10241_v4 = vsub.s32 2, %v9788_v25 }
 0x5e4   : > { %v9020_v5 = vpop.f32.mrf.mxu1  ;;  %v2414_v10 = vadd.f32 %v2413_v6, %v2412_v9 }
 0x5e5   : > { %v2619_v5 = vrot.slane %v10134_v14, %v10241_v4  ;;  %v8435_v14 = vld [vmem:[%s11127_s2 + $0x198] sm:$0xff] }
 0x5e6   : > { %v2408_v8 = vpop.f32.mrf.mxu1 }
 0x5e7   : > { %v2417_v17 = vsel %vm468_vm0, %v2408_v8, 0.0 }
 0x5e8   : > { %v2335_v11 = vpop.f32.mrf.mxu0  ;;  %v9030_v12 = vpop.f32.mrf.mxu1 }
 0x5e9   : > { %v2415_v13 = vsel %vm468_vm0, %v2335_v11, 0.0 }
 0x5ea   : > { %v2416_v15 = vadd.f32 %v2415_v13, %v2414_v10  ;;  %v9025_v16 = vpop.f32.mrf.mxu0 }
 0x5ec   : > { %v2418_v18 = vadd.f32 %v2417_v17, %v2416_v15 }
 0x5ee   : > { %v2419_v20 = vadd.f32 %v2418_v18, %v9744_v0  ;;  %v2450_v0 = vld [vmem:[%s11130_s5 + $0x18] sm:$0xff] }
 0x5ef   : > { %9032 = vmatpush3.msra.mxu0 %v2450_v0  ;;  %v8451_v18 = vld [vmem:[%s11127_s2 + $0x218] sm:$0xff] }
 0x5f0   : > { %v10140_v21 = vadd.f32 %v2423_v19, %v2419_v20  ;;  %9033 = vmatprep.subr.mxu0 %v9575_v7  ;;  %v8434_v19 = vld [vmem:[%s11127_s2 + $0x190] sm:$0xff] }
 0x5f1   : > { %9034 = vmatpush3.msra.mxu0 %v2449_v33  ;;  %v8450_v20 = vld [vmem:[%s11127_s2 + $0x210] sm:$0xff] }
 0x5f2   : > { %v2425_v22 = vsel %vm468_vm0, %v10140_v21, 0.0  ;;  %9035 = vmatprep.subr.mxu0 %v9575_v7 }
 0x5f3   : > { %2426 = vadd.xlane.f32.xlu0 %v2425_v22  ;;  %9036 = vmatpush3.msra.mxu0 %v2448_v34  ;;  %v8449_v22 = vld [vmem:[%s11127_s2 + $0x208] sm:$0xff] }
 0x5f4   : > { %9037 = vmatprep.subr.mxu0 %v9575_v7 }
 0x5f5   : > { %9038 = vmatpush3.msra.mxu0 %v2447_v35 }
 0x5f6   : > { %9077 = vmatprep.subr.mxu0 %v9575_v7 }
 0x67c   : > { %v2427_v23 = vpop.xlane.xlu0 %2426 }
 0x67d   : > { %v2428_v24 = vmul.f32 0.03125, %v2427_v23  ;;  %v8432_v23 = vld [vmem:[%s11127_s2 + $0x180] sm:$0xff] }
 0x67f   : > { %v10145_v27 = vsub.f32 %v10140_v21, %v2428_v24  ;;  %v8448_v24 = vld [vmem:[%s11127_s2 + $0x200] sm:$0xff] }
 0x681   : > { %v2430_v31 = vmul.f32 %v10145_v27, %v10145_v27  ;;  %v2435_v57 = vmul.f32 %v10145_v27, %v9797_v28  ;;  %v2530_v28 = vld [vmem:[%s11131_s6 + $0x8] sm:$0xff] }
 0x682   : > { %9071 = vmatpush3.msra.mxu1 %v2530_v28  ;;  %v8446_v28 = vld [vmem:[%s11127_s2 + $0x1f0] sm:$0xff] }
 0x683   : > { %v2431_v32 = vsel %vm468_vm0, %v2430_v31, 0.0  ;;  %9072 = vmatprep.subr.mxu1 %v9575_v7 }
 0x684   : > { %2432 = vadd.xlane.f32.xlu1 %v2431_v32 }
 0x70d   : > { %v2433_v49 = vpop.xlane.xlu1 %2432 }
 0x70e   : > { %v2434_v50 = vmul.f32 0.032258064, %v2433_v49  ;;  %v8457_v49 = vld [vmem:[%s11127_s2 + $0x248] sm:$0xff] }
 0x710   : > { %9403 = vrsqrt.f32 %v2434_v50  ;;  %vm2438_vm5 = vcmp.eq.f32.partialorder %v2434_v50, inf  ;;  %v2441_v52 = vand.u32 2147483648, %v2434_v50  ;;  %vm2440_vm6 = vcmp.eq.f32.partialorder %v2434_v50, 0.0 }
 0x71d   : > { %v9404_v51 = vpop.eup %9403 }
 0x71e   : > { %v2437_v53 = vmul.f32 %v9404_v51, %v2434_v50  ;;  %v8456_v51 = vld [vmem:[%s11127_s2 + $0x240] sm:$0xff] }
 0x720   : > { %v2439_v54 = vsel %vm2438_vm5, %v2434_v50, %v2437_v53  ;;  %v8436_v50 = vld [vmem:[%s11127_s2 + $0x1a0] sm:$0xff]  ;;  %v8443_v53 = vld [vmem:[%s11127_s2 + $0x1d8] sm:$0xff] }
 0x721   : > { %v2442_v55 = vsel %vm2440_vm6, %v2441_v52, %v2439_v54  ;;  %v8467_v52 = vld [vmem:[%s11127_s2 + $0x298] sm:$0xff]  ;;  %v8442_v54 = vld [vmem:[%s11127_s2 + $0x1d0] sm:$0xff] }
 0x722   : > { %v2443_v56 = vadd.f32 1e-06, %v2442_v55  ;;  %v8466_v55 = vld [vmem:[%s11127_s2 + $0x290] sm:$0xff] }
 0x724   : > { %9405 = vrcp.f32 %v2443_v56  ;;  %v8441_v56 = vld [vmem:[%s11127_s2 + $0x1c8] sm:$0xff] }
 0x731   : > { %v9406_v58 = vpop.eup %9405 }
 0x732   : > { %v2445_v59 = vmul.f32 %v9406_v58, %v2435_v57  ;;  %v8465_v57 = vld [vmem:[%s11127_s2 + $0x288] sm:$0xff]  ;;  %v8440_v58 = vld [vmem:[%s11127_s2 + $0x1c0] sm:$0xff] }
 0x734   : > { %v2446_v60 = vadd.f32 %v2445_v59, %v9803_v30  ;;  %v2529_v30 = vld [vmem:[%s11131_s6] sm:$0xff] }
 0x735   : > { %9073 = vmatpush3.msra.mxu1 %v2529_v30  ;;  %v8464_v59 = vld [vmem:[%s11127_s2 + $0x280] sm:$0xff]  ;;  %v8474_v30 = vld [vmem:[%s11127_s2 + $0x2d0] sm:$0xff] }
 0x736   : > { %9040 = vmatmul.mubr.msk.f32.vlgmr.msra.gmra.mxu0 %vm468_vm0, %v2446_v60  ;;  %9121 = vmatprep.subr.mxu1 %v9575_v7  ;;  %v8447_v60 = vld [vmem:[%s11127_s2 + $0x1f8] sm:$0xff] }
 0x737   : > { %9085 = vmatprep.mubr.msk.f32.mxu0 %vm9576_vm1, %v9575_v7  ;;  %9078 = vmatpush3.msra.mxu0 %v8435_v14  ;;  %v8468_v14 = vld [vmem:[%s11127_s2 + $0x2a0] sm:$0xff] }
 0x738   : > { %9079 = vmatprep.subr.mxu0 %v9575_v7 }
 0x739   : > { %9080 = vmatpush3.msra.mxu0 %v8434_v19  ;;  %v8478_v19 = vld [vmem:[%s11127_s2 + $0x2f0] sm:$0xff] }
 0x73a   : > { %9081 = vmatprep.subr.mxu0 %v9575_v7 }
 0x7f6   : > { %v2524_v63 = vpop.f32.mrf.mxu0 }
 0x7f7   : > { %v2525_v1 = vadd.f32 %v2524_v63, %v2454_v62  ;;  %v8445_v62 = vld [vmem:[%s11127_s2 + $0x1e8] sm:$0xff] }
 0x7f8   : > { %v9041_v2 = vpop.f32.mrf.mxu0  ;;  %v8473_v63 = vld [vmem:[%s11127_s2 + $0x2c8] sm:$0xff] }
 0x7f9   : > { %v2528_v3 = vmax.f32 %v2525_v1, 0.0  ;;  %v8444_v1 = vld [vmem:[%s11127_s2 + $0x1e0] sm:$0xff] }
 0x7fa   : > { %v8472_v2 = vld [vmem:[%s11127_s2 + $0x2c0] sm:$0xff] }
 0x7fb   : > { %9075 = vmatmul.mubr.f32.vlgmr.msra.gmra.mxu1 %v2528_v3  ;;  %v8455_v3 = vld [vmem:[%s11127_s2 + $0x238] sm:$0xff] }
 0x7fc   : > { %9129 = vmatprep.mubr.msk.f32.mxu1 %vm9576_vm1, %v9575_v7  ;;  %9122 = vmatpush3.msra.mxu1 %v8451_v18  ;;  %v8479_v18 = vld [vmem:[%s11127_s2 + $0x2f8] sm:$0xff] }
 0x7fd   : > { %9123 = vmatprep.subr.mxu1 %v9575_v7 }
 0x7fe   : > { %9124 = vmatpush3.msra.mxu1 %v8450_v20  ;;  %v8477_v20 = vld [vmem:[%s11127_s2 + $0x2e8] sm:$0xff] }
 0x7ff   : > { %9125 = vmatprep.subr.mxu1 %v9575_v7 }
 0x800   : > { %9126 = vmatpush3.msra.mxu1 %v8449_v22  ;;  %v8496_v22 = vld [vmem:[%s11128_s3 + $0x10] ss:$0 sm:$0xff] }
 0x801   : > { %9127 = vmatprep.subr.mxu1 %v9575_v7 }
 0x802   : > { %9128 = vmatpush3.msra.mxu1 %v8448_v24 }
 0x803   : > { %9143 = vmatprep.subr.mxu1 %v9575_v7 }
 0x8bb   : > { %v2611_v6 = vpop.f32.mrf.mxu1 }
 0x8bc   : > { %v2615_v8 = vadd.f32 %v2611_v6, %v10140_v21  ;;  %v8433_v21 = vld [vmem:[%s11127_s2 + $0x188] sm:$0xff] }
 0x8bd   : > { %v9076_v9 = vpop.f32.mrf.mxu1  ;;  %9082 = vmatpush3.msra.mxu0 %v8433_v21  ;;  %v8453_v6 = vld [vmem:[%s11127_s2 + $0x228] sm:$0xff]  ;;  %v8476_v21 = vld [vmem:[%s11127_s2 + $0x2e0] sm:$0xff] }
 0x8be   : > { %v10246_v10 = vadd.f32 %v2619_v5, %v2615_v8  ;;  %9083 = vmatprep.subr.mxu0 %v9575_v7  ;;  %v8454_v5 = vld [vmem:[%s11127_s2 + $0x230] sm:$0xff]  ;;  %v8452_v8 = vld [vmem:[%s11127_s2 + $0x220] sm:$0xff]  ;;  %v8463_v9 = vld [vmem:[%s11127_s2 + $0x278] sm:$0xff] }
 0x8bf   : > { %9084 = vmatpush3.msra.mxu0 %v8432_v23 }
 0x8c0   : > { %v2625_v11 = vsel %vm468_vm0, %v10246_v10, 0.0  ;;  %9088 = vmatprep.subr.mxu0 %v9575_v7 }
 0x8c1   : > { %2626 = vadd.xlane.f32.xlu0 %v2625_v11  ;;  %v8462_v11 = vld [vmem:[%s11127_s2 + $0x270] sm:$0xff] }
 0x94a   : > { %v2627_v12 = vpop.xlane.xlu0 %2626 }
 0x94b   : > { %v2628_v13 = vmul.f32 0.03125, %v2627_v12  ;;  %v8461_v12 = vld [vmem:[%s11127_s2 + $0x268] sm:$0xff] }
 0x94d   : > { %v2629_v15 = vsub.f32 %v10246_v10, %v2628_v13  ;;  %v8460_v13 = vld [vmem:[%s11127_s2 + $0x260] sm:$0xff] }
 0x94f   : > { %v2630_v16 = vmul.f32 %v2629_v15, %v2629_v15  ;;  %v2639_v40 = vmul.f32 %v10288_v38, %v2629_v15  ;;  %v8471_v15 = vld [vmem:[%s11127_s2 + $0x2b8] sm:$0xff] }
 0x951   : > { %v2631_v17 = vsel %vm468_vm0, %v2630_v16, 0.0  ;;  %v8470_v16 = vld [vmem:[%s11127_s2 + $0x2b0] sm:$0xff] }
 0x952   : > { %2632 = vadd.xlane.f32.xlu1 %v2631_v17  ;;  %v8469_v17 = vld [vmem:[%s11127_s2 + $0x2a8] sm:$0xff] }
 0x9db   : > { %v2633_v27 = vpop.xlane.xlu1 %2632 }
 0x9dc   : > { %v2634_v31 = vmul.f32 0.032258064, %v2633_v27  ;;  %v8492_v27 = vld [vmem:[%s11128_s3 + $0xc] ss:$0 sm:$0xff] }
 0x9de   : > { %9407 = vrsqrt.f32 %v2634_v31  ;;  %vm2642_vm7 = vcmp.eq.f32.partialorder %v2634_v31, inf  ;;  %v2645_v33 = vand.u32 2147483648, %v2634_v31  ;;  %vm2644_vm8 = vcmp.eq.f32.partialorder %v2634_v31, 0.0 }
 0x9eb   : > { %v9408_v32 = vpop.eup %9407 }
 0x9ec   : > { %v2641_v0 = vmul.f32 %v9408_v32, %v2634_v31 }
 0x9ee   : > { %v2643_v34 = vsel %vm2642_vm7, %v2634_v31, %v2641_v0 }
 0x9ef   : > { %v2646_v35 = vsel %vm2644_vm8, %v2645_v33, %v2643_v34  ;;  %v8498_v34 = vld [vmem:[%s11128_s3 + $0x12] ss:$0 sm:$0xff] }
 0x9f0   : > { %v2647_v36 = vadd.f32 1e-06, %v2646_v35 }
 0x9f2   : > { %9409 = vrcp.f32 %v2647_v36 }
 0x9ff   : > { %v9410_v41 = vpop.eup %9409 }
 0xa00   : > { %v2649_v42 = vmul.f32 %v9410_v41, %v2639_v40 }
 0xa02   : > { %v10295_v43 = vadd.f32 %v10291_v39, %v2649_v42  ;;  %v8494_v42 = vld [vmem:[%s11128_s3 + $0xe] ss:$0 sm:$0xff] }
 0xa04   : > { %9086 = vmatmul.mubr.msk.f32.vlgmr.msra.gmra.mxu0 %vm468_vm0, %v10295_v43  ;;  %9130 = vmatmul.mubr.msk.f32.vlgmr.msra.gmra.mxu1 %vm468_vm0, %v10295_v43 }
 0xa05   : > { %9089 = vmatpush3.msra.mxu0 %v8439_v44  ;;  %9144 = vmatpush3.msra.mxu1 %v8459_v45 }
 0xa06   : > { %9090 = vmatprep.subr.mxu0 %v9575_v7  ;;  %9145 = vmatprep.subr.mxu1 %v9575_v7 }
 0xa07   : > { %9091 = vmatpush3.msra.mxu0 %v8438_v46  ;;  %9146 = vmatpush3.msra.mxu1 %v8458_v47 }
 0xa08   : > { %9092 = vmatprep.subr.mxu0 %v9575_v7  ;;  %9147 = vmatprep.subr.mxu1 %v9575_v7 }
 0xa09   : > { %9093 = vmatpush3.msra.mxu0 %v8437_v48  ;;  %9148 = vmatpush3.msra.mxu1 %v8457_v49 }
 0xa0a   : > { %9094 = vmatprep.subr.mxu0 %v9575_v7  ;;  %9149 = vmatprep.subr.mxu1 %v9575_v7 }
 0xa0b   : > { %9095 = vmatpush3.msra.mxu0 %v8436_v50  ;;  %9096 = vmatprep.mubr.msk.f32.mxu0 %vm9576_vm1, %v9575_v7 }
 0xa0c   : > { %9150 = vmatpush3.msra.mxu1 %v8456_v51  ;;  %9151 = vmatprep.mubr.msk.f32.mxu1 %vm9576_vm1, %v9575_v7 }
 0xa0d   : > { %9097 = vmatmul.mubr.msk.f32.vlgmr.msra.gmra.mxu0 %vm468_vm0, %v10295_v43  ;;  %9099 = vmatprep.subr.mxu0 %v9575_v7 }
 0xa0e   : > { %9152 = vmatmul.mubr.msk.f32.vlgmr.msra.gmra.mxu1 %vm468_vm0, %v10295_v43  ;;  %9165 = vmatprep.subr.mxu1 %v9575_v7 }
 0xa0f   : > { %9100 = vmatpush3.msra.mxu0 %v8443_v53  ;;  %9166 = vmatpush3.msra.mxu1 %v8467_v52 }
 0xa10   : > { %9101 = vmatprep.subr.mxu0 %v9575_v7  ;;  %9167 = vmatprep.subr.mxu1 %v9575_v7 }
 0xa11   : > { %9102 = vmatpush3.msra.mxu0 %v8442_v54  ;;  %9168 = vmatpush3.msra.mxu1 %v8466_v55  ;;  %v8497_v54 = vld [vmem:[%s11128_s3 + $0x11] ss:$0 sm:$0xff] }
 0xa12   : > { %9103 = vmatprep.subr.mxu0 %v9575_v7  ;;  %9169 = vmatprep.subr.mxu1 %v9575_v7 }
 0xa13   : > { %9104 = vmatpush3.msra.mxu0 %v8441_v56  ;;  %9170 = vmatpush3.msra.mxu1 %v8465_v57  ;;  %v8493_v56 = vld [vmem:[%s11128_s3 + $0xd] ss:$0 sm:$0xff] }
 0xa14   : > { %9105 = vmatprep.subr.mxu0 %v9575_v7  ;;  %9171 = vmatprep.subr.mxu1 %v9575_v7 }
 0xa15   : > { %9106 = vmatpush3.msra.mxu0 %v8440_v58  ;;  %9107 = vmatprep.mubr.msk.f32.mxu0 %vm9576_vm1, %v9575_v7 }
 0xa16   : > { %9172 = vmatpush3.msra.mxu1 %v8464_v59  ;;  %9173 = vmatprep.mubr.msk.f32.mxu1 %vm9576_vm1, %v9575_v7 }
 0xa17   : > { %9108 = vmatmul.mubr.msk.f32.vlgmr.msra.gmra.mxu0 %vm468_vm0, %v10295_v43  ;;  %9110 = vmatprep.subr.mxu0 %v9575_v7 }
 0xa18   : > { %9174 = vmatmul.mubr.msk.f32.vlgmr.msra.gmra.mxu1 %vm468_vm0, %v10295_v43  ;;  %9187 = vmatprep.subr.mxu1 %v9575_v7 }
 0xa19   : > { %9111 = vmatpush3.msra.mxu0 %v8447_v60  ;;  %9188 = vmatpush3.msra.mxu1 %v8475_v61  ;;  %v8499_v60 = vld [vmem:[%s11128_s3 + $0x13] ss:$0 sm:$0xff] }
 0xa1a   : > { %9112 = vmatprep.subr.mxu0 %v9575_v7  ;;  %9189 = vmatprep.subr.mxu1 %v9575_v7 }
 0xa1b   : > { %9113 = vmatpush3.msra.mxu0 %v8446_v28  ;;  %9190 = vmatpush3.msra.mxu1 %v8474_v30  ;;  %v8495_v28 = vld [vmem:[%s11128_s3 + $0xf] ss:$0 sm:$0xff] }
 0xa1c   : > { %9114 = vmatprep.subr.mxu0 %v9575_v7  ;;  %9191 = vmatprep.subr.mxu1 %v9575_v7 }
 0xa1d   : > { %9115 = vmatpush3.msra.mxu0 %v8445_v62  ;;  %9192 = vmatpush3.msra.mxu1 %v8473_v63 }
 0xa1e   : > { %9116 = vmatprep.subr.mxu0 %v9575_v7  ;;  %9193 = vmatprep.subr.mxu1 %v9575_v7 }
 0xa1f   : > { %9117 = vmatpush3.msra.mxu0 %v8444_v1  ;;  %9118 = vmatprep.mubr.msk.f32.mxu0 %vm9576_vm1, %v9575_v7  ;;  %v8501_v1 = vld [vmem:[%s11128_s3 + $0x15] ss:$0 sm:$0xff] }
 0xa20   : > { %9194 = vmatpush3.msra.mxu1 %v8472_v2  ;;  %9195 = vmatprep.mubr.msk.f32.mxu1 %vm9576_vm1, %v9575_v7 }
 0xa21   : > { %9119 = vmatmul.mubr.msk.f32.vlgmr.msra.gmra.mxu0 %vm468_vm0, %v10295_v43  ;;  %9132 = vmatprep.subr.mxu0 %v9575_v7 }
 0xa22   : > { %9196 = vmatmul.mubr.msk.f32.vlgmr.msra.gmra.mxu1 %vm468_vm0, %v10295_v43  ;;  %9133 = vmatpush3.msra.mxu0 %v8455_v3 }
 0xa23   : > { %9134 = vmatprep.subr.mxu0 %v9575_v7  ;;  %9140 = vmatprep.mubr.msk.f32.mxu0 %vm9576_vm1, %v9575_v7 }
 0xa24   : > { %9135 = vmatpush3.msra.mxu0 %v8454_v5  ;;  %9209 = vmatprep.subr.mxu1 %v9575_v7 }
 0xa25   : > { %9136 = vmatprep.subr.mxu0 %v9575_v7  ;;  %9211 = vmatprep.mubr.msk.f32.mxu1 %vm9576_vm1, %v9575_v7 }
 0xa26   : > { %9137 = vmatpush3.msra.mxu0 %v8453_v6 }
 0xa27   : > { %9138 = vmatprep.subr.mxu0 %v9575_v7 }
 0xa28   : > { %9139 = vmatpush3.msra.mxu0 %v8452_v8 }
 0xa29   : > { %9141 = vmatmul.mubr.msk.f32.vlgmr.msra.gmra.mxu0 %vm468_vm0, %v10295_v43  ;;  %9154 = vmatprep.subr.mxu0 %v9575_v7 }
 0xa2a   : > { %9155 = vmatpush3.msra.mxu0 %v8463_v9  ;;  %9162 = vmatprep.mubr.msk.f32.mxu0 %vm9576_vm1, %v9575_v7 }
 0xa2b   : > { %9156 = vmatprep.subr.mxu0 %v9575_v7 }
 0xa2c   : > { %9157 = vmatpush3.msra.mxu0 %v8462_v11 }
 0xa2d   : > { %9158 = vmatprep.subr.mxu0 %v9575_v7 }
 0xa2e   : > { %9159 = vmatpush3.msra.mxu0 %v8461_v12 }
 0xa2f   : > { %9160 = vmatprep.subr.mxu0 %v9575_v7 }
 0xa30   : > { %9161 = vmatpush3.msra.mxu0 %v8460_v13 }
 0xa31   : > { %9163 = vmatmul.mubr.msk.f32.vlgmr.msra.gmra.mxu0 %vm468_vm0, %v10295_v43  ;;  %9176 = vmatprep.subr.mxu0 %v9575_v7 }
 0xa32   : > { %9177 = vmatpush3.msra.mxu0 %v8471_v15  ;;  %9184 = vmatprep.mubr.msk.f32.mxu0 %vm9576_vm1, %v9575_v7 }
 0xa33   : > { %9178 = vmatprep.subr.mxu0 %v9575_v7 }
 0xa34   : > { %9179 = vmatpush3.msra.mxu0 %v8470_v16 }
 0xa35   : > { %9180 = vmatprep.subr.mxu0 %v9575_v7 }
 0xa36   : > { %9181 = vmatpush3.msra.mxu0 %v8469_v17 }
 0xa37   : > { %9182 = vmatprep.subr.mxu0 %v9575_v7 }
 0xa38   : > { %9183 = vmatpush3.msra.mxu0 %v8468_v14 }
 0xa39   : > { %9185 = vmatmul.mubr.msk.f32.vlgmr.msra.gmra.mxu0 %vm468_vm0, %v10295_v43  ;;  %9198 = vmatprep.subr.mxu0 %v9575_v7 }
 0xa3a   : > { %9199 = vmatpush3.msra.mxu0 %v8479_v18  ;;  %9206 = vmatprep.mubr.msk.f32.mxu0 %vm9576_vm1, %v9575_v7 }
 0xa3b   : > { %9200 = vmatprep.subr.mxu0 %v9575_v7 }
 0xa3c   : > { %9201 = vmatpush3.msra.mxu0 %v8478_v19 }
 0xa3d   : > { %9202 = vmatprep.subr.mxu0 %v9575_v7 }
 0xa3e   : > { %9203 = vmatpush3.msra.mxu0 %v8477_v20 }
 0xa3f   : > { %9204 = vmatprep.subr.mxu0 %v9575_v7 }
 0xa40   : > { %9205 = vmatpush3.msra.mxu0 %v8476_v21 }
 0xa41   : > { %9207 = vmatmul.mubr.msk.f32.vlgmr.msra.gmra.mxu0 %vm468_vm0, %v10295_v43  ;;  %9219 = vmatprep.subr.mxu0 %v9575_v7  ;;  %v8500_v43 = vld [vmem:[%s11128_s3 + $0x14] ss:$0 sm:$0xff] }
 0xa42   : > { %9221 = vmatprep.mubr.msk.f32.mxu0 %vm9576_vm1, %v9575_v7 }
 0xac4   : > { %v2858_v23 = vpop.f32.mrf.mxu0  ;;  %v3138_v24 = vpop.f32.mrf.mxu1 }
 0xac5   : > { %v3139_v31 = vadd.f32 %v8496_v22, %v3138_v24  ;;  %v2859_v33 = vadd.f32 %v8492_v27, %v2858_v23 }
 0xac6   : > { %v9087_v32 = vpop.f32.mrf.mxu0  ;;  %v9131_v0 = vpop.f32.mrf.mxu1 }
 0xac7   : > { %9210 = vmatpush3.xpose.msk.msra.mxu1 %vm1475_vm4, %v3139_v31 }
 0xac8   : > { %9214 = vmatprep.subr.mxu1 %v9575_v7 }
 0xaca   : > { %9212 = vmatmul.mubr.msk.f32.vlgmr.msra.gmra.mxu1 %vm1475_vm4, %v2859_v33 }
 0xacb   : > { %9216 = vmatprep.mubr.msk.f32.mxu1 %vm9576_vm1, %v9575_v7 }
 0xacd   : > { %v2928_v35 = vpop.f32.mrf.mxu0 }
 0xace   : > { %v3278_v36 = vpop.f32.mrf.mxu1  ;;  %v2929_v59 = vadd.f32 %v8493_v56, %v2928_v35 }
 0xacf   : > { %v3279_v37 = vadd.f32 %v8498_v34, %v3278_v36  ;;  %v9098_v40 = vpop.f32.mrf.mxu0 }
 0xad0   : > { %v9153_v41 = vpop.f32.mrf.mxu1 }
 0xad1   : > { %9220 = vmatpush3.xpose.msk.msra.mxu0 %vm1475_vm4, %v3279_v37 }
 0xad2   : > { %9229 = vmatprep.subr.mxu0 %v9575_v7 }
 0xad7   : > { %v2998_v44 = vpop.f32.mrf.mxu0 }
 0xad8   : > { %v2999_v45 = vadd.f32 %v8494_v42, %v2998_v44  ;;  %v3418_v46 = vpop.f32.mrf.mxu1 }
 0xad9   : > { %v3419_v47 = vadd.f32 %v8500_v43, %v3418_v46  ;;  %v9109_v48 = vpop.f32.mrf.mxu0 }
 0xada   : > { %v9175_v49 = vpop.f32.mrf.mxu1  ;;  %9222 = vmatmul.mubr.msk.f32.vlgmr.msra.gmra.mxu0 %vm1475_vm4, %v2999_v45 }
 0xadb   : > { %9230 = vmatpush3.msra.mxu0 %v3419_v47  ;;  %9231 = vmatprep.mubr.msk.f32.mxu0 %vm9576_vm1, %v9575_v7  ;;  %v8502_v49 = vld [vmem:[%s11128_s3 + $0x16] ss:$0 sm:$0xff] }
 0xadc   : > { %9239 = vmatprep.subr.mxu0 %v9575_v7 }
 0xae1   : > { %v3068_v50 = vpop.f32.mrf.mxu0 }
 0xae2   : > { %v10531_v51 = vpop.f32.mrf.mxu1  ;;  %v3069_v63 = vadd.f32 %v8495_v28, %v3068_v50 }
 0xae3   : > { %v9120_v53 = vpop.f32.mrf.mxu0 }
 0xae4   : > { %v9197_v52 = vpop.f32.mrf.mxu1 }
 0xae5   : > { %v3559_v52 = vadd.f32 %v8502_v49, %v10531_v51  ;;  %v8555_v49 = vld [vmem:[%s11131_s6 + $0xf0] sm:$0xff] }
 0xae9   : > { %v3208_v55 = vpop.f32.mrf.mxu0 }
 0xaea   : > { %v3209_v57 = vadd.f32 %v8497_v54, %v3208_v55 }
 0xaeb   : > { %v9142_v58 = vpop.f32.mrf.mxu0 }
 0xaec   : > { %9215 = vmatpush3.xpose.msk.msra.mxu1 %vm1475_vm4, %v3209_v57  ;;  %v8503_v58 = vld [vmem:[%s11128_s3 + $0x17] ss:$0 sm:$0xff] }
 0xaed   : > { %9224 = vmatprep.subr.mxu1 %v9575_v7 }
 0xaef   : > { %9217 = vmatmul.mubr.msk.f32.vlgmr.msra.gmra.mxu1 %vm1475_vm4, %v2929_v59 }
 0xaf0   : > { %9226 = vmatprep.mubr.msk.f32.mxu1 %vm9576_vm1, %v9575_v7 }
 0xaf1   : > { %v3348_v61 = vpop.f32.mrf.mxu0 }
 0xaf2   : > { %v3349_v30 = vadd.f32 %v8499_v60, %v3348_v61 }
 0xaf3   : > { %v9164_v62 = vpop.f32.mrf.mxu0 }
 0xaf4   : > { %9225 = vmatpush3.xpose.msk.msra.mxu1 %vm1475_vm4, %v3349_v30  ;;  %v8528_v62 = vld [vmem:[%s11129_s4 + $0x20] sm:$0xff] }
 0xaf5   : > { %9234 = vmatprep.subr.mxu1 %v9575_v7 }
 0xaf7   : > { %9227 = vmatmul.mubr.msk.f32.vlgmr.msra.gmra.mxu1 %vm1475_vm4, %v3069_v63  ;;  %v8529_v63 = vld [vmem:[%s11129_s4 + $0x28] sm:$0xff] }
 0xaf8   : > { %9236 = vmatprep.mubr.msk.f32.mxu1 %vm9576_vm1, %v9575_v7 }
 0xaf9   : > { %v3488_v2 = vpop.f32.mrf.mxu0 }
 0xafa   : > { %v3489_v3 = vadd.f32 %v8501_v1, %v3488_v2  ;;  %v8530_v1 = vld [vmem:[%s11129_s4 + $0x30] sm:$0xff] }
 0xafb   : > { %v9186_v5 = vpop.f32.mrf.mxu0 }
 0xafc   : > { %9235 = vmatpush3.msra.mxu1 %v3489_v3 }
 0xafd   : > { %9244 = vmatprep.subr.mxu1 %v9575_v7 }
 0xb01   : > { %v10559_v6 = vpop.f32.mrf.mxu0 }
 0xb02   : > { %v3629_v61 = vadd.f32 %v8503_v58, %v10559_v6  ;;  %v8546_v58 = vld [vmem:[%s11131_s6 + $0xa8] sm:$0xff] }
 0xb03   : > { %v9208_v8 = vpop.f32.mrf.mxu0 }
 0xb04   : > { %v8531_v8 = vld [vmem:[%s11129_s4 + $0x38] sm:$0xff] }
 0xb8a   : > { %v3704_v9 = vpop.f32.mrf.mxu1 }
 0xb8b   : > { %v3936_v11 = vsel %vm1475_vm4, %v3704_v9, -inf }
 0xb8c   : > { %3937 = vmax.xlane.f32.xlu0 %v3936_v11  ;;  %v9213_v12 = vpop.f32.mrf.mxu1 }
 0xb9a   : > { %v3856_v13 = vpop.f32.mrf.mxu0 }
 0xb9b   : > { %v3942_v15 = vsel %vm1475_vm4, %v3856_v13, -inf }
 0xb9c   : > { %3943 = vmax.xlane.f32.xlu0 %v3942_v15  ;;  %v9223_v16 = vpop.f32.mrf.mxu0 }
 0xbaf   : > { %v3780_v17 = vpop.f32.mrf.mxu1 }
 0xbb0   : > { %v3939_v14 = vsel %vm1475_vm4, %v3780_v17, -inf }
 0xbb1   : > { %3940 = vmax.xlane.f32.xlu1 %v3939_v14  ;;  %v9218_v18 = vpop.f32.mrf.mxu1 }
 0xbb7   : > { %v3932_v19 = vpop.f32.mrf.mxu1 }
 0xbb8   : > { %v3945_v20 = vsel %vm1475_vm4, %v3932_v19, -inf }
 0xbb9   : > { %3946 = vmax.xlane.f32.xlu1 %v3945_v20  ;;  %v9228_v21 = vpop.f32.mrf.mxu1 }
 0xc15   : > { %v3938_v22 = vpop.xlane.xlu0 %3937 }
 0xc16   : > { %v3948_v23 = vsub.f32 %v3704_v9, %v3938_v22 }
 0xc18   : > { %v3952_v24 = vmul.f32 1.442695, %v3948_v23 }
 0xc1a   : > { %9411 = vpow2.f32 %v3952_v24  ;;  %v10625_v24 = vld [vmem:[%s11132_s7 + $0x4] sm:$0x7] }
 0xc25   : > { %v3944_v27 = vpop.xlane.xlu0 %3943 }
 0xc26   : > { %v3950_v31 = vsub.f32 %v3856_v13, %v3944_v27 }
 0xc27   : > { %v9412_v32 = vpop.eup %9411 }
 0xc28   : > { %v3956_v0 = vmul.f32 1.442695, %v3950_v31  ;;  %v3960_v33 = vsel %vm1475_vm4, %v9412_v32, 0.0 }
 0xc29   : > { %3961 = vadd.xlane.f32.xlu0 %v3960_v33 }
 0xc2a   : > { %9413 = vpow2.f32 %v3956_v0 }
 0xc37   : > { %v9414_v34 = vpop.eup %9413 }
 0xc38   : > { %v3966_v35 = vsel %vm1475_vm4, %v9414_v34, 0.0 }
 0xc39   : > { %3967 = vadd.xlane.f32.xlu0 %v3966_v35 }
 0xc3a   : > { %v3941_v36 = vpop.xlane.xlu1 %3940 }
 0xc3b   : > { %v3949_v37 = vsub.f32 %v3780_v17, %v3941_v36 }
 0xc3d   : > { %v3954_v40 = vmul.f32 1.442695, %v3949_v37 }
 0xc3f   : > { %9415 = vpow2.f32 %v3954_v40 }
 0xc42   : > { %v3947_v41 = vpop.xlane.xlu1 %3946 }
 0xc43   : > { %v3951_v42 = vsub.f32 %v3932_v19, %v3947_v41 }
 0xc45   : > { %v3958_v43 = vmul.f32 1.442695, %v3951_v42 }
 0xc47   : > { %9417 = vpow2.f32 %v3958_v43 }
 0xc4c   : > { %v9416_v44 = vpop.eup %9415 }
 0xc4d   : > { %v3963_v45 = vsel %vm1475_vm4, %v9416_v44, 0.0 }
 0xc4e   : > { %3964 = vadd.xlane.f32.xlu1 %v3963_v45  ;;  %v8538_v45 = vld [vmem:[%s11130_s5 + $0x30] sm:$0xff] }
 0xc54   : > { %v9418_v46 = vpop.eup %9417 }
 0xc55   : > { %v3969_v47 = vsel %vm1475_vm4, %v9418_v46, 0.0 }
 0xc56   : > { %3970 = vadd.xlane.f32.xlu1 %v3969_v47  ;;  %v8536_v47 = vld [vmem:[%s11130_s5 + $0x20] sm:$0xff] }
 0xcb2   : > { %v3962_v48 = vpop.xlane.xlu0 %3961 }
 0xcb3   : > { %9419 = vrcp.f32 %v3962_v48  ;;  %v8556_v48 = vld [vmem:[%s11131_s6 + $0xf8] sm:$0xff] }
 0xcc0   : > { %v9420_v50 = vpop.eup %9419 }
 0xcc1   : > { %v3976_v53 = vmul.f32 %v9420_v50, %v9412_v32  ;;  %v8554_v50 = vld [vmem:[%s11131_s6 + $0xe8] sm:$0xff] }
 0xcc2   : > { %v3968_v54 = vpop.xlane.xlu0 %3967 }
 0xcc3   : > { %9421 = vrcp.f32 %v3968_v54  ;;  %9232 = vmatmul.mubr.msk.f32.vlgmr.msra.gmra.mxu0 %vm1475_vm4, %v3976_v53  ;;  %v8553_v53 = vld [vmem:[%s11131_s6 + $0xe0] sm:$0xff]  ;;  %v8551_v54 = vld [vmem:[%s11131_s6 + $0xd0] sm:$0xff] }
 0xcc4   : > { %9240 = vmatpush3.msra.mxu0 %v3559_v52  ;;  %9241 = vmatprep.mubr.msk.f32.mxu0 %vm9576_vm1, %v9575_v7  ;;  %v8552_v52 = vld [vmem:[%s11131_s6 + $0xd8] sm:$0xff] }
 0xcc5   : > { %9249 = vmatprep.subr.mxu0 %v9575_v7 }
 0xcd0   : > { %v9422_v55 = vpop.eup %9421 }
 0xcd1   : > { %v3978_v56 = vmul.f32 %v9422_v55, %v9414_v34  ;;  %v4580_v34 = vrot.slane %v10625_v24, %v9791_v26  ;;  %v8550_v55 = vld [vmem:[%s11131_s6 + $0xc8] sm:$0xff] }
 0xcd3   : > { %9242 = vmatmul.mubr.msk.f32.vlgmr.msra.gmra.mxu0 %vm1475_vm4, %v3978_v56  ;;  %v8549_v56 = vld [vmem:[%s11131_s6 + $0xc0] sm:$0xff] }
 0xcd4   : > { %9251 = vmatprep.mubr.msk.f32.mxu0 %vm9576_vm1, %v9575_v7  ;;  %9250 = vmatpush3.msra.mxu0 %v8528_v62 }
 0xcd5   : > { %9259 = vmatprep.subr.mxu0 %v9575_v7 }
 0xcd7   : > { %v3965_v57 = vpop.xlane.xlu1 %3964 }
 0xcd8   : > { %9423 = vrcp.f32 %v3965_v57  ;;  %v8548_v57 = vld [vmem:[%s11131_s6 + $0xb8] sm:$0xff] }
 0xcdf   : > { %v3971_v51 = vpop.xlane.xlu1 %3970 }
 0xce0   : > { %9425 = vrcp.f32 %v3971_v51  ;;  %v8547_v51 = vld [vmem:[%s11131_s6 + $0xb0] sm:$0xff] }
 0xce5   : > { %v9424_v59 = vpop.eup %9423 }
 0xce6   : > { %v3977_v60 = vmul.f32 %v9424_v59, %v9416_v44  ;;  %v8545_v59 = vld [vmem:[%s11131_s6 + $0xa0] sm:$0xff] }
 0xce8   : > { %9237 = vmatmul.mubr.msk.f32.vlgmr.msra.gmra.mxu1 %vm1475_vm4, %v3977_v60  ;;  %v8544_v60 = vld [vmem:[%s11131_s6 + $0x98] sm:$0xff] }
 0xce9   : > { %9245 = vmatpush3.msra.mxu1 %v3629_v61  ;;  %9246 = vmatprep.mubr.msk.f32.mxu1 %vm9576_vm1, %v9575_v7 }
 0xcea   : > { %9254 = vmatprep.subr.mxu1 %v9575_v7 }
 0xced   : > { %v9426_v28 = vpop.eup %9425 }
 0xcee   : > { %v3979_v30 = vmul.f32 %v9426_v28, %v9418_v46  ;;  %v8537_v46 = vld [vmem:[%s11130_s5 + $0x28] sm:$0xff] }
 0xcf0   : > { %9247 = vmatmul.mubr.msk.f32.vlgmr.msra.gmra.mxu1 %vm1475_vm4, %v3979_v30 }
 0xcf1   : > { %9256 = vmatprep.mubr.msk.f32.mxu1 %vm9576_vm1, %v9575_v7  ;;  %9255 = vmatpush3.msra.mxu1 %v8529_v63 }
 0xcf2   : > { %9264 = vmatprep.subr.mxu1 %v9575_v7 }
 0xd83   : > { %v4049_v2 = vpop.f32.mrf.mxu0 }
 0xd84   : > { %9252 = vmatmul.mubr.msk.f32.vlgmr.msra.gmra.mxu0 %vm1475_vm4, %v4049_v2 }
 0xd85   : > { %v9233_v3 = vpop.f32.mrf.mxu0  ;;  %9260 = vmatpush3.msra.mxu0 %v8530_v1  ;;  %9261 = vmatprep.mubr.msk.f32.mxu0 %vm9576_vm1, %v9575_v7 }
 0xd86   : > { %9269 = vmatprep.subr.mxu0 %v9575_v7 }
 0xd93   : > { %v4195_v5 = vpop.f32.mrf.mxu0 }
 0xd94   : > { %9262 = vmatmul.mubr.msk.f32.vlgmr.msra.gmra.mxu0 %vm1475_vm4, %v4195_v5 }
 0xd95   : > { %v9243_v6 = vpop.f32.mrf.mxu0  ;;  %9277 = vmatprep.mubr.msk.f32.mxu0 %vm9576_vm1, %v9575_v7 }
 0xda8   : > { %v4122_v9 = vpop.f32.mrf.mxu1 }
 0xda9   : > { %9257 = vmatmul.mubr.msk.f32.vlgmr.msra.gmra.mxu1 %vm1475_vm4, %v4122_v9 }
 0xdaa   : > { %v9238_v11 = vpop.f32.mrf.mxu1  ;;  %9265 = vmatpush3.msra.mxu1 %v8531_v8  ;;  %9266 = vmatprep.mubr.msk.f32.mxu1 %vm9576_vm1, %v9575_v7 }
 0xdab   : > { %9280 = vmatprep.subr.mxu1 %v9575_v7  ;;  %v8543_v11 = vld [vmem:[%s11131_s6 + $0x90] sm:$0xff] }
 0xdb0   : > { %v4268_v12 = vpop.f32.mrf.mxu1 }
 0xdb1   : > { %9267 = vmatmul.mubr.msk.f32.vlgmr.msra.gmra.mxu1 %vm1475_vm4, %v4268_v12  ;;  %v8542_v12 = vld [vmem:[%s11131_s6 + $0x88] sm:$0xff] }
 0xdb2   : > { %v9248_v13 = vpop.f32.mrf.mxu1  ;;  %9312 = vmatprep.mubr.msk.f32.mxu1 %vm9576_vm1, %v9575_v7  ;;  %9281 = vmatpush3.msra.mxu1 %v8556_v48  ;;  %v5175_v48 = vld [vmem:[#allocation2 + $0x180] sm:$0xff]  ;;  %vm8284_vm1 = vcmask 48128  }
 0xdb3   : > { %9282 = vmatprep.subr.mxu1 %v9575_v7 }
 0xdb4   : > { %9283 = vmatpush3.msra.mxu1 %v8555_v49  ;;  %v4821_v49 = vld [vmem:[#allocation2 + $0x8] sm:$0xff] }
 0xdb5   : > { %9284 = vmatprep.subr.mxu1 %v9575_v7 }
 0xdb6   : > { %9285 = vmatpush3.msra.mxu1 %v8554_v50  ;;  %v5168_v50 = vld [vmem:[#allocation2 + $0x148] sm:$0xff] }
 0xdb7   : > { %9286 = vmatprep.subr.mxu1 %v9575_v7 }
 0xdb8   : > { %9287 = vmatpush3.msra.mxu1 %v8553_v53  ;;  %v4820_v53 = vld [vmem:[#allocation2] sm:$0xff] }
 0xdb9   : > { %9288 = vmatprep.subr.mxu1 %v9575_v7 }
 0xdba   : > { %9289 = vmatpush3.msra.mxu1 %v8552_v52  ;;  %v5167_v52 = vld [vmem:[#allocation2 + $0x140] sm:$0xff] }
 0xdbb   : > { %9290 = vmatprep.subr.mxu1 %v9575_v7 }
 0xdbc   : > { %9291 = vmatpush3.msra.mxu1 %v8551_v54  ;;  %v4847_v54 = vld [vmem:[#allocation2 + $0xd8] sm:$0xff] }
 0xdbd   : > { %9292 = vmatprep.subr.mxu1 %v9575_v7 }
 0xdbe   : > { %9293 = vmatpush3.msra.mxu1 %v8550_v55  ;;  %v5160_v55 = vld [vmem:[#allocation2 + $0x108] sm:$0xff] }
 0xdbf   : > { %9294 = vmatprep.subr.mxu1 %v9575_v7 }
 0xdc0   : > { %9295 = vmatpush3.msra.mxu1 %v8549_v56  ;;  %v5159_v56 = vld [vmem:[#allocation2 + $0x100] sm:$0xff] }
 0xdc1   : > { %9296 = vmatprep.subr.mxu1 %v9575_v7 }
 0xdc2   : > { %9297 = vmatpush3.msra.mxu1 %v8548_v57  ;;  %v5188_v57 = vld [vmem:[#allocation2 + $0x1e8] sm:$0xff] }
 0xdc3   : > { %9298 = vmatprep.subr.mxu1 %v9575_v7 }
 0xdc4   : > { %9299 = vmatpush3.msra.mxu1 %v8547_v51 }
 0xdc5   : > { %9300 = vmatprep.subr.mxu1 %v9575_v7 }
 0xdc6   : > { %9301 = vmatpush3.msra.mxu1 %v8546_v58 }
 0xdc7   : > { %9302 = vmatprep.subr.mxu1 %v9575_v7 }
 0xdc8   : > { %9303 = vmatpush3.msra.mxu1 %v8545_v59 }
 0xdc9   : > { %9304 = vmatprep.subr.mxu1 %v9575_v7 }
 0xdca   : > { %9305 = vmatpush3.msra.mxu1 %v8544_v60 }
 0xdcb   : > { %9306 = vmatprep.subr.mxu1 %v9575_v7 }
 0xdcc   : > { %9307 = vmatpush3.msra.mxu1 %v8543_v11 }
 0xdcd   : > { %9308 = vmatprep.subr.mxu1 %v9575_v7 }
 0xdce   : > { %9309 = vmatpush3.msra.mxu1 %v8542_v12  ;;  %v4781_v12 = vld [vmem:[%s11133_s8 + $0x8] sm:$0xff] }
 0xdcf   : > { %9310 = vmatprep.subr.mxu1 %v9575_v7 }
 0xe44   : > { %v4346_v15 = vpop.f32.mrf.mxu0 }
 0xe45   : > { %v4569_v21 = vsel %vm468_vm0, %v4346_v15, 0.0 }
 0xe46   : > { %v9253_v16 = vpop.f32.mrf.mxu0 }
 0xe54   : > { %v4492_v17 = vpop.f32.mrf.mxu0 }
 0xe55   : > { %v4572_v23 = vsel %vm468_vm0, %v4492_v17, 0.0 }
 0xe56   : > { %v9263_v14 = vpop.f32.mrf.mxu0 }
 0xe57   : > { %v4778_v14 = vrot.slane %v10625_v24, %v10241_v4 }
 0xe69   : > { %v4419_v18 = vpop.f32.mrf.mxu1 }
 0xe6a   : > { %v4570_v19 = vsel %vm468_vm0, %v4419_v18, 0.0 }
 0xe6b   : > { %v9258_v20 = vpop.f32.mrf.mxu1  ;;  %v4571_v22 = vadd.f32 %v4570_v19, %v4569_v21 }
 0xe6d   : > { %v4573_v31 = vadd.f32 %v4572_v23, %v4571_v22 }
 0xe71   : > { %v4565_v27 = vpop.f32.mrf.mxu1 }
 0xe72   : > { %v4574_v32 = vsel %vm468_vm0, %v4565_v27, 0.0 }
 0xe73   : > { %v4575_v0 = vadd.f32 %v4574_v32, %v4573_v31  ;;  %v9268_v33 = vpop.f32.mrf.mxu1 }
 0xe75   : > { %v4576_v35 = vadd.f32 %v4575_v0, %v10246_v10  ;;  %v8539_v10 = vld [vmem:[%s11130_s5 + $0x38] sm:$0xff] }
 0xe76   : > { %9270 = vmatpush3.msra.mxu0 %v8539_v10  ;;  %v5183_v10 = vld [vmem:[#allocation2 + $0x1c0] sm:$0xff] }
 0xe77   : > { %v10631_v36 = vadd.f32 %v4580_v34, %v4576_v35  ;;  %9271 = vmatprep.subr.mxu0 %v9575_v7 }
 0xe78   : > { %9272 = vmatpush3.msra.mxu0 %v8538_v45  ;;  %v4829_v45 = vld [vmem:[#allocation2 + $0x48] sm:$0xff] }
 0xe79   : > { %v4582_v37 = vsel %vm468_vm0, %v10631_v36, 0.0  ;;  %9273 = vmatprep.subr.mxu0 %v9575_v7 }
 0xe7a   : > { %4583 = vadd.xlane.f32.xlu0 %v4582_v37  ;;  %9274 = vmatpush3.msra.mxu0 %v8537_v46  ;;  %v5176_v46 = vld [vmem:[#allocation2 + $0x188] sm:$0xff] }
 0xe7b   : > { %9275 = vmatprep.subr.mxu0 %v9575_v7 }
 0xe7c   : > { %9276 = vmatpush3.msra.mxu0 %v8536_v47  ;;  %v4828_v47 = vld [vmem:[#allocation2 + $0x40] sm:$0xff] }
 0xf03   : > { %v4584_v40 = vpop.xlane.xlu0 %4583 }
 0xf04   : > { %v4585_v41 = vmul.f32 0.03125, %v4584_v40 }
 0xf06   : > { %v10636_v42 = vsub.f32 %v10631_v36, %v4585_v41  ;;  %v4845_v41 = vld [vmem:[#allocation2 + $0xc8] sm:$0xff] }
 0xf07   : > { %4879 = vmatprep.subr.mxu0 %v4845_v41  ;;  %v4833_v41 = vld [vmem:[#allocation2 + $0x68] sm:$0xff] }
 0xf08   : > { %v4587_v43 = vmul.f32 %v10636_v42, %v10636_v42  ;;  %v4592_v5 = vmul.f32 %v10636_v42, %v10288_v38  ;;  %v8541_v38 = vld [vmem:[%s11131_s6 + $0x80] sm:$0xff]  ;;  %v4837_v42 = vld [vmem:[#allocation2 + $0x88] sm:$0xff] }
 0xf09   : > { %9311 = vmatpush3.msra.mxu1 %v8541_v38 }
 0xf0a   : > { %v4588_v44 = vsel %vm468_vm0, %v4587_v43, 0.0  ;;  %v5184_v43 = vld [vmem:[#allocation2 + $0x1c8] sm:$0xff] }
 0xf0b   : > { %4589 = vadd.xlane.f32.xlu1 %v4588_v44  ;;  %5218 = vmatprep.subr.mxu1 %v5184_v43  ;;  %v4836_v44 = vld [vmem:[#allocation2 + $0x80] sm:$0xff] }
 0xf0c   : > { %v5514_v43 = vld [vmem:[#allocation2 + $0x280] sm:$0xff] }
 0xf94   : > { %v4590_v61 = vpop.xlane.xlu1 %4589 }
 0xf95   : > { %v4591_v28 = vmul.f32 0.032258064, %v4590_v61 }
 0xf97   : > { %9427 = vrsqrt.f32 %v4591_v28  ;;  %vm4595_vm9 = vcmp.eq.f32.partialorder %v4591_v28, inf  ;;  %v4598_v63 = vand.u32 2147483648, %v4591_v28  ;;  %vm4597_vm10 = vcmp.eq.f32.partialorder %v4591_v28, 0.0 }
 0xfa4   : > { %v9428_v30 = vpop.eup %9427 }
 0xfa5   : > { %v4594_v62 = vmul.f32 %v9428_v30, %v4591_v28 }
 0xfa7   : > { %v4596_v1 = vsel %vm4595_vm9, %v4591_v28, %v4594_v62 }
 0xfa8   : > { %v4599_v2 = vsel %vm4597_vm10, %v4598_v63, %v4596_v1 }
 0xfa9   : > { %v4600_v3 = vadd.f32 1e-06, %v4599_v2 }
 0xfab   : > { %9429 = vrcp.f32 %v4600_v3 }
 0xfb8   : > { %v9430_v6 = vpop.eup %9429 }
 0xfb9   : > { %v4602_v8 = vmul.f32 %v9430_v6, %v4592_v5 }
 0xfbb   : > { %v4603_v9 = vadd.f32 %v4602_v8, %v10291_v39  ;;  %v4612_v39 = vrot.slane %v10625_v24, %v9800_v29  ;;  %v4780_v8 = vld [vmem:[%s11133_s8] sm:$0xff] }
 0xfbd   : > { %9278 = vmatmul.mubr.msk.f32.vlgmr.msra.gmra.mxu0 %vm468_vm0, %v4603_v9 }
 0xfbe   : > { %4919 = vmatprep.mubr.f32.mxu0 %v9575_v7 }
0x107d   : > { %v4682_v13 = vpop.f32.mrf.mxu0 }
0x107e   : > { %v4683_v15 = vadd.f32 %v4682_v13, %v4612_v39  ;;  %v4846_v13 = vld [vmem:[#allocation2 + $0xd0] sm:$0xff] }
0x107f   : > { %v9279_v16 = vpop.f32.mrf.mxu0 }
0x1080   : > { %v4686_v17 = vmax.f32 %v4683_v15, 0.0  ;;  %v4839_v15 = vld [vmem:[#allocation2 + $0x98] sm:$0xff]  ;;  %v4838_v16 = vld [vmem:[#allocation2 + $0x90] sm:$0xff] }
0x1082   : > { %9313 = vmatmul.mubr.f32.vlgmr.msra.gmra.mxu1 %v4686_v17 }
0x1083   : > { %5258 = vmatprep.mubr.f32.mxu1 %v9575_v7  ;;  %5219 = vmatpush1.msra.mxu1 %v5183_v10  ;;  %v5507_v10 = vld [vmem:[#allocation2 + $0x248] sm:$0xff] }
0x1084   : > { %5220 = vmatprep.subr.mxu1 %v5176_v46  ;;  %v5506_v46 = vld [vmem:[#allocation2 + $0x240] sm:$0xff] }
0x1085   : > { %5221 = vmatpush1.msra.mxu1 %v5175_v48  ;;  %v5499_v48 = vld [vmem:[#allocation2 + $0x208] sm:$0xff] }
0x1086   : > { %5222 = vmatprep.subr.mxu1 %v5168_v50  ;;  %v5498_v50 = vld [vmem:[#allocation2 + $0x200] sm:$0xff] }
0x1087   : > { %5223 = vmatpush1.msra.mxu1 %v5167_v52 }
0x1088   : > { %5224 = vmatprep.subr.mxu1 %v5160_v55  ;;  %v4842_v55 = vld [vmem:[#allocation2 + $0xb0] sm:$0xff] }
0x1089   : > { %5225 = vmatpush1.msra.mxu1 %v5159_v56  ;;  %v5526_v56 = vld [vmem:[#allocation2 + $0x2e0] sm:$0xff] }
0x108a   : > { %5360 = vmatprep.subr.mxu1 %v5188_v57  ;;  %v4835_v57 = vld [vmem:[#allocation2 + $0x78] sm:$0xff] }
0x1142   : > { %v4770_v18 = vpop.f32.mrf.mxu1 }
0x1143   : > { %v4774_v19 = vadd.f32 %v4770_v18, %v10631_v36  ;;  %v4844_v36 = vld [vmem:[#allocation2 + $0xc0] sm:$0xff]  ;;  %v4831_v18 = vld [vmem:[#allocation2 + $0x58] sm:$0xff] }
0x1144   : > { %v9314_v20 = vpop.f32.mrf.mxu1  ;;  %4880 = vmatpush1.msra.mxu0 %v4844_v36  ;;  %v5515_v36 = vld [vmem:[#allocation2 + $0x288] sm:$0xff] }
0x1145   : > { %v4779_v21 = vadd.f32 %v4778_v14, %v4774_v19  ;;  %4881 = vmatprep.subr.mxu0 %v4837_v42  ;;  %v5187_v14 = vld [vmem:[#allocation2 + $0x1e0] sm:$0xff]  ;;  %v5180_v19 = vld [vmem:[#allocation2 + $0x1a8] sm:$0xff]  ;;  %v4830_v20 = vld [vmem:[#allocation2 + $0x50] sm:$0xff] }
0x1146   : > { %4882 = vmatpush1.msra.mxu0 %v4836_v44  ;;  %v4832_v42 = vld [vmem:[#allocation2 + $0x60] sm:$0xff]  ;;  %v4825_v44 = vld [vmem:[#allocation2 + $0x28] sm:$0xff] }
0x1147   : > { %v4782_v22 = vsel %vm468_vm0, %v4779_v21, 0.0  ;;  %4883 = vmatprep.subr.mxu0 %v4829_v45  ;;  %v4824_v45 = vld [vmem:[#allocation2 + $0x20] sm:$0xff] }
0x1148   : > { %4783 = vadd.xlane.f32.xlu0 %v4782_v22  ;;  %4884 = vmatpush1.msra.mxu0 %v4828_v47  ;;  %v4823_v22 = vld [vmem:[#allocation2 + $0x18] sm:$0xff] }
0x1149   : > { %4885 = vmatprep.subr.mxu0 %v4821_v49  ;;  %v4851_v47 = vld [vmem:[#allocation2 + $0xf8] sm:$0xff]  ;;  %v4850_v49 = vld [vmem:[#allocation2 + $0xf0] sm:$0xff] }
0x114a   : > { %4886 = vmatpush1.msra.mxu0 %v4820_v53  ;;  %v4843_v53 = vld [vmem:[#allocation2 + $0xb8] sm:$0xff] }
0x114b   : > { %4950 = vmatprep.subr.mxu0 %v4847_v54  ;;  %v5527_v54 = vld [vmem:[#allocation2 + $0x2e8] sm:$0xff] }
0x11d1   : > { %v4784_v23 = vpop.xlane.xlu0 %4783 }
0x11d2   : > { %v4785_v27 = vrot.slane %v4784_v23, 4 }
0x11d4   : > { %v4786_v31 = vadd.f32 %v4785_v27, %v4784_v23  ;;  %v5172_v23 = vld [vmem:[#allocation2 + $0x168] sm:$0xff]  ;;  %v4822_v27 = vld [vmem:[#allocation2 + $0x10] sm:$0xff] }
0x11d6   : > { %v4787_v32 = vrot.slane %v4786_v31, 2 }
0x11d8   : > { %v4788_v0 = vadd.f32 %v4787_v32, %v4786_v31  ;;  %v5171_v31 = vld [vmem:[#allocation2 + $0x160] sm:$0xff]  ;;  %v4849_v32 = vld [vmem:[#allocation2 + $0xe8] sm:$0xff] }
0x11da   : > { %v4789_v33 = vrot.slane %v4788_v0, 1 }
0x11dc   : > { %v4790_v34 = vadd.f32 %v4789_v33, %v4788_v0  ;;  %v5164_v0 = vld [vmem:[#allocation2 + $0x128] sm:$0xff]  ;;  %v4848_v33 = vld [vmem:[#allocation2 + $0xe0] sm:$0xff] }
0x11de   : > { %v4791_v35 = vmul.f32 0.00390625, %v4790_v34  ;;  %v5163_v34 = vld [vmem:[#allocation2 + $0x120] sm:$0xff] }
0x11e0   : > { %v4792_v37 = vsub.f32 %v4779_v21, %v4791_v35  ;;  %v5179_v21 = vld [vmem:[#allocation2 + $0x1a0] sm:$0xff]  ;;  %v4841_v35 = vld [vmem:[#allocation2 + $0xa8] sm:$0xff] }
0x11e2   : > { %v4793_v40 = vmul.f32 %v4792_v37, %v4792_v37  ;;  %v4811_v9 = vmul.f32 %v4792_v37, %v4780_v8  ;;  %v5523_v37 = vld [vmem:[#allocation2 + $0x2c8] sm:$0xff]  ;;  %v5861_v8 = vld [vmem:[#allocation2 + $0x3c0] sm:$0xff] }
0x11e4   : > { %v4794_v24 = vsel %vm468_vm0, %v4793_v40, 0.0  ;;  %v4840_v40 = vld [vmem:[#allocation2 + $0xa0] sm:$0xff] }
0x11e5   : > { %4795 = vadd.xlane.f32.xlu1 %v4794_v24  ;;  %v5522_v24 = vld [vmem:[#allocation2 + $0x2c0] sm:$0xff] }
0x126e   : > { %v4796_v51 = vpop.xlane.xlu1 %4795 }
0x126f   : > { %v4797_v58 = vrot.slane %v4796_v51, 4 }
0x1271   : > { %v4798_v59 = vadd.f32 %v4797_v58, %v4796_v51  ;;  %v5519_v51 = vld [vmem:[#allocation2 + $0x2a8] sm:$0xff]  ;;  %v4834_v58 = vld [vmem:[#allocation2 + $0x70] sm:$0xff] }
0x1273   : > { %v4799_v60 = vrot.slane %v4798_v59, 2 }
0x1275   : > { %v4800_v61 = vadd.f32 %v4799_v60, %v4798_v59  ;;  %v5518_v59 = vld [vmem:[#allocation2 + $0x2a0] sm:$0xff]  ;;  %v4827_v60 = vld [vmem:[#allocation2 + $0x38] sm:$0xff] }
0x1277   : > { %v4801_v28 = vrot.slane %v4800_v61, 1 }
0x1279   : > { %v4802_v30 = vadd.f32 %v4801_v28, %v4800_v61  ;;  %v5511_v61 = vld [vmem:[#allocation2 + $0x268] sm:$0xff]  ;;  %v4826_v28 = vld [vmem:[#allocation2 + $0x30] sm:$0xff] }
0x127b   : > { %v4803_v62 = vmul.f32 0.003921569, %v4802_v30  ;;  %v5510_v30 = vld [vmem:[#allocation2 + $0x260] sm:$0xff] }
0x127d   : > { %9431 = vrsqrt.f32 %v4803_v62  ;;  %vm4806_vm11 = vcmp.eq.f32.partialorder %v4803_v62, inf  ;;  %v4809_v2 = vand.u32 2147483648, %v4803_v62  ;;  %vm4808_vm12 = vcmp.eq.f32.partialorder %v4803_v62, 0.0 }
0x128a   : > { %v9432_v63 = vpop.eup %9431 }
0x128b   : > { %v4805_v1 = vmul.f32 %v9432_v63, %v4803_v62  ;;  %v5503_v63 = vld [vmem:[#allocation2 + $0x228] sm:$0xff] }
0x128d   : > { %v4807_v3 = vsel %vm4806_vm11, %v4803_v62, %v4805_v1  ;;  %v5186_v62 = vld [vmem:[#allocation2 + $0x1d8] sm:$0xff]  ;;  %v5185_v1 = vld [vmem:[#allocation2 + $0x1d0] sm:$0xff] }
0x128e   : > { %v4810_v5 = vsel %vm4808_vm12, %v4809_v2, %v4807_v3  ;;  %v5502_v2 = vld [vmem:[#allocation2 + $0x220] sm:$0xff]  ;;  %v5178_v3 = vld [vmem:[#allocation2 + $0x198] sm:$0xff] }
0x128f   : > { %v4812_v6 = vadd.f32 1e-06, %v4810_v5  ;;  %v5862_v5 = vld [vmem:[#allocation2 + $0x3c8] sm:$0xff] }
0x1291   : > { %9433 = vrcp.f32 %v4812_v6  ;;  %v5177_v6 = vld [vmem:[#allocation2 + $0x190] sm:$0xff] }
0x129e   : > { %v9434_v11 = vpop.eup %9433 }
0x129f   : > { %v4814_v38 = vmul.f32 %v9434_v11, %v4811_v9  ;;  %v5170_v9 = vld [vmem:[#allocation2 + $0x158] sm:$0xff]  ;;  %v5854_v11 = vld [vmem:[#allocation2 + $0x388] sm:$0xff] }
0x12a1   : > { %v10738_v39 = vadd.f32 %v4814_v38, %v4781_v12  ;;  %v5169_v12 = vld [vmem:[#allocation2 + $0x150] sm:$0xff]  ;;  %v5853_v38 = vld [vmem:[#allocation2 + $0x380] sm:$0xff] }
0x12a3   : > { %8557 = vmatmul.mubr.msk.f32.vlgmr.msra.gmra.mxu0 %vm468_vm0, %v10738_v39  ;;  %v10743_v17 = vrot.slane %v10738_v39, 1  ;;  %v10757_v52 = vrot.slane %v10738_v39, 2 }
0x12a4   : > { %4951 = vmatpush1.msra.mxu0 %v4846_v13  ;;  %4990 = vmatprep.mubr.f32.mxu0 %v9575_v7  ;;  %v5162_v13 = vld [vmem:[#allocation2 + $0x118] sm:$0xff] }
0x12a5   : > { %4952 = vmatprep.subr.mxu0 %v4839_v15  ;;  %8561 = vmatmul.mubr.msk.f32.vlgmr.msra.gmra.mxu1 %vm468_vm0, %v10743_v17  ;;  %v5846_v15 = vld [vmem:[#allocation2 + $0x348] sm:$0xff] }
0x12a6   : > { %4953 = vmatpush1.msra.mxu0 %v4838_v16  ;;  %5361 = vmatpush1.msra.mxu1 %v5187_v14  ;;  %v5161_v16 = vld [vmem:[#allocation2 + $0x110] sm:$0xff]  ;;  %v5845_v14 = vld [vmem:[#allocation2 + $0x340] sm:$0xff] }
0x12a7   : > { %4954 = vmatprep.subr.mxu0 %v4831_v18  ;;  %5362 = vmatprep.subr.mxu1 %v5180_v19  ;;  %v5190_v18 = vld [vmem:[#allocation2 + $0x1f8] sm:$0xff]  ;;  %v5838_v19 = vld [vmem:[#allocation2 + $0x308] sm:$0xff] }
0x12a8   : > { %4955 = vmatpush1.msra.mxu0 %v4830_v20  ;;  %5363 = vmatpush1.msra.mxu1 %v5179_v21  ;;  %v5189_v20 = vld [vmem:[#allocation2 + $0x1f0] sm:$0xff]  ;;  %v5837_v21 = vld [vmem:[#allocation2 + $0x300] sm:$0xff] }
0x12a9   : > { %4956 = vmatprep.subr.mxu0 %v4823_v22  ;;  %5364 = vmatprep.subr.mxu1 %v5172_v23  ;;  %v5182_v22 = vld [vmem:[#allocation2 + $0x1b8] sm:$0xff]  ;;  %v10772_v23 = vrot.slane %v10738_v39, 3 }
0x12aa   : > { %4957 = vmatpush1.msra.mxu0 %v4822_v27  ;;  %5365 = vmatpush1.msra.mxu1 %v5171_v31  ;;  %v5866_v27 = vld [vmem:[#allocation2 + $0x3e8] sm:$0xff]  ;;  %v5181_v31 = vld [vmem:[#allocation2 + $0x1b0] sm:$0xff] }
0x12ab   : > { %8558 = vmatmul.mubr.msk.f32.vlgmr.msra.gmra.mxu0 %vm468_vm0, %v10738_v39  ;;  %5021 = vmatprep.subr.mxu0 %v4849_v32  ;;  %v5865_v32 = vld [vmem:[#allocation2 + $0x3e0] sm:$0xff] }
0x12ac   : > { %5366 = vmatprep.subr.mxu1 %v5164_v0  ;;  %5022 = vmatpush1.msra.mxu0 %v4848_v33  ;;  %v5174_v0 = vld [vmem:[#allocation2 + $0x178] sm:$0xff]  ;;  %v5858_v33 = vld [vmem:[#allocation2 + $0x3a8] sm:$0xff] }
0x12ad   : > { %5367 = vmatpush1.msra.mxu1 %v5163_v34  ;;  %5400 = vmatprep.mubr.f32.mxu1 %v9575_v7  ;;  %v5173_v34 = vld [vmem:[#allocation2 + $0x170] sm:$0xff] }
0x12ae   : > { %5023 = vmatprep.subr.mxu0 %v4841_v35  ;;  %8563 = vmatmul.mubr.msk.f32.vlgmr.msra.gmra.mxu1 %vm468_vm0, %v10743_v17  ;;  %v5857_v35 = vld [vmem:[#allocation2 + $0x3a0] sm:$0xff] }
0x12af   : > { %5557 = vmatprep.subr.mxu1 %v5523_v37  ;;  %5024 = vmatpush1.msra.mxu0 %v4840_v40  ;;  %v5166_v37 = vld [vmem:[#allocation2 + $0x138] sm:$0xff]  ;;  %v5850_v40 = vld [vmem:[#allocation2 + $0x368] sm:$0xff] }
0x12b0   : > { %5558 = vmatpush1.msra.mxu1 %v5522_v24  ;;  %5025 = vmatprep.subr.mxu0 %v4833_v41  ;;  %v5165_v24 = vld [vmem:[#allocation2 + $0x130] sm:$0xff]  ;;  %v5849_v41 = vld [vmem:[#allocation2 + $0x360] sm:$0xff] }
0x12b1   : > { %5559 = vmatprep.subr.mxu1 %v5515_v36  ;;  %5026 = vmatpush1.msra.mxu0 %v4832_v42  ;;  %v5525_v36 = vld [vmem:[#allocation2 + $0x2d8] sm:$0xff]  ;;  %v5842_v42 = vld [vmem:[#allocation2 + $0x328] sm:$0xff] }
0x12b2   : > { %5560 = vmatpush1.msra.mxu1 %v5514_v43  ;;  %5027 = vmatprep.subr.mxu0 %v4825_v44  ;;  %v5524_v43 = vld [vmem:[#allocation2 + $0x2d0] sm:$0xff]  ;;  %v5841_v44 = vld [vmem:[#allocation2 + $0x320] sm:$0xff] }
0x12b3   : > { %5561 = vmatprep.subr.mxu1 %v5507_v10  ;;  %5028 = vmatpush1.msra.mxu0 %v4824_v45  ;;  %v5517_v10 = vld [vmem:[#allocation2 + $0x298] sm:$0xff]  ;;  %v6201_v45 = vld [vmem:[#allocation2 + $0x4c8] sm:$0xff] }
0x12b4   : > { %5061 = vmatprep.mubr.f32.mxu0 %v9575_v7  ;;  %5562 = vmatpush1.msra.mxu1 %v5506_v46  ;;  %v5516_v46 = vld [vmem:[#allocation2 + $0x290] sm:$0xff] }
0x12b5   : > { %8559 = vmatmul.mubr.msk.f32.vlgmr.msra.gmra.mxu0 %vm468_vm0, %v10738_v39  ;;  %5092 = vmatprep.subr.mxu0 %v4851_v47  ;;  %v6200_v47 = vld [vmem:[#allocation2 + $0x4c0] sm:$0xff] }
0x12b6   : > { %5563 = vmatprep.subr.mxu1 %v5499_v48  ;;  %5093 = vmatpush1.msra.mxu0 %v4850_v49  ;;  %v5509_v48 = vld [vmem:[#allocation2 + $0x258] sm:$0xff]  ;;  %v6193_v49 = vld [vmem:[#allocation2 + $0x488] sm:$0xff] }
0x12b7   : > { %5564 = vmatpush1.msra.mxu1 %v5498_v50  ;;  %5597 = vmatprep.mubr.f32.mxu1 %v9575_v7  ;;  %v5508_v50 = vld [vmem:[#allocation2 + $0x250] sm:$0xff] }
0x12b8   : > { %5094 = vmatprep.subr.mxu0 %v4843_v53  ;;  %8565 = vmatmul.mubr.msk.f32.vlgmr.msra.gmra.mxu1 %vm468_vm0, %v10757_v52  ;;  %v5501_v53 = vld [vmem:[#allocation2 + $0x218] sm:$0xff] }
0x12b9   : > { %5699 = vmatprep.subr.mxu1 %v5527_v54  ;;  %5095 = vmatpush1.msra.mxu0 %v4842_v55  ;;  %v6185_v54 = vld [vmem:[#allocation2 + $0x448] sm:$0xff]  ;;  %v5500_v55 = vld [vmem:[#allocation2 + $0x210] sm:$0xff] }
0x12ba   : > { %5700 = vmatpush1.msra.mxu1 %v5526_v56  ;;  %5096 = vmatprep.subr.mxu0 %v4835_v57  ;;  %v6184_v56 = vld [vmem:[#allocation2 + $0x440] sm:$0xff]  ;;  %v5529_v57 = vld [vmem:[#allocation2 + $0x2f8] sm:$0xff] }
0x12bb   : > { %5701 = vmatprep.subr.mxu1 %v5519_v51  ;;  %5097 = vmatpush1.msra.mxu0 %v4834_v58  ;;  %v6177_v51 = vld [vmem:[#allocation2 + $0x408] sm:$0xff]  ;;  %v5528_v58 = vld [vmem:[#allocation2 + $0x2f0] sm:$0xff] }
0x12bc   : > { %5702 = vmatpush1.msra.mxu1 %v5518_v59  ;;  %5098 = vmatprep.subr.mxu0 %v4827_v60  ;;  %v6176_v59 = vld [vmem:[#allocation2 + $0x400] sm:$0xff]  ;;  %v5521_v60 = vld [vmem:[#allocation2 + $0x2b8] sm:$0xff] }
0x12bd   : > { %5703 = vmatprep.subr.mxu1 %v5511_v61  ;;  %5099 = vmatpush1.msra.mxu0 %v4826_v28  ;;  %v10787_v61 = vrot.slane %v10738_v39, 4  ;;  %v6205_v28 = vld [vmem:[#allocation2 + $0x4e8] sm:$0xff] }
0x12be   : > { %5132 = vmatprep.mubr.f32.mxu0 %v9575_v7  ;;  %5704 = vmatpush1.msra.mxu1 %v5510_v30  ;;  %v5520_v30 = vld [vmem:[#allocation2 + $0x2b0] sm:$0xff] }
0x12bf   : > { %8560 = vmatmul.mubr.msk.f32.vlgmr.msra.gmra.mxu0 %vm468_vm0, %v10738_v39  ;;  %5289 = vmatprep.subr.mxu0 %v5186_v62  ;;  %v6204_v62 = vld [vmem:[#allocation2 + $0x4e0] sm:$0xff] }
0x12c0   : > { %5705 = vmatprep.subr.mxu1 %v5503_v63  ;;  %5290 = vmatpush1.msra.mxu0 %v5185_v1  ;;  %v5513_v63 = vld [vmem:[#allocation2 + $0x278] sm:$0xff]  ;;  %v6197_v1 = vld [vmem:[#allocation2 + $0x4a8] sm:$0xff] }
0x12c1   : > { %5706 = vmatpush1.msra.mxu1 %v5502_v2  ;;  %5739 = vmatprep.mubr.f32.mxu1 %v9575_v7  ;;  %v5512_v2 = vld [vmem:[#allocation2 + $0x270] sm:$0xff] }
0x12c2   : > { %5291 = vmatprep.subr.mxu0 %v5178_v3  ;;  %8567 = vmatmul.mubr.msk.f32.vlgmr.msra.gmra.mxu1 %vm468_vm0, %v10757_v52  ;;  %v6196_v3 = vld [vmem:[#allocation2 + $0x4a0] sm:$0xff] }
0x12c3   : > { %5896 = vmatprep.subr.mxu1 %v5862_v5  ;;  %5292 = vmatpush1.msra.mxu0 %v5177_v6  ;;  %v5505_v5 = vld [vmem:[#allocation2 + $0x238] sm:$0xff]  ;;  %v6189_v6 = vld [vmem:[#allocation2 + $0x468] sm:$0xff] }
0x12c4   : > { %5897 = vmatpush1.msra.mxu1 %v5861_v8  ;;  %5293 = vmatprep.subr.mxu0 %v5170_v9  ;;  %v5504_v8 = vld [vmem:[#allocation2 + $0x230] sm:$0xff]  ;;  %v6188_v9 = vld [vmem:[#allocation2 + $0x460] sm:$0xff] }
0x12c5   : > { %5898 = vmatprep.subr.mxu1 %v5854_v11  ;;  %5294 = vmatpush1.msra.mxu0 %v5169_v12  ;;  %v5864_v11 = vld [vmem:[#allocation2 + $0x3d8] sm:$0xff]  ;;  %v6181_v12 = vld [vmem:[#allocation2 + $0x428] sm:$0xff] }
0x12c6   : > { %5899 = vmatpush1.msra.mxu1 %v5853_v38  ;;  %5295 = vmatprep.subr.mxu0 %v5162_v13  ;;  %v5863_v38 = vld [vmem:[#allocation2 + $0x3d0] sm:$0xff]  ;;  %v6180_v13 = vld [vmem:[#allocation2 + $0x420] sm:$0xff] }
0x12c7   : > { %5900 = vmatprep.subr.mxu1 %v5846_v15  ;;  %5296 = vmatpush1.msra.mxu0 %v5161_v16  ;;  %v5856_v15 = vld [vmem:[#allocation2 + $0x398] sm:$0xff]  ;;  %v6540_v16 = vld [vmem:[#allocation2 + $0x5c8] sm:$0xff] }
0x12c8   : > { %5329 = vmatprep.mubr.f32.mxu0 %v9575_v7  ;;  %5901 = vmatpush1.msra.mxu1 %v5845_v14  ;;  %v5855_v14 = vld [vmem:[#allocation2 + $0x390] sm:$0xff] }
0x12c9   : > { %8562 = vmatmul.mubr.msk.f32.vlgmr.msra.gmra.mxu0 %vm468_vm0, %v10743_v17  ;;  %5431 = vmatprep.subr.mxu0 %v5190_v18  ;;  %v6539_v18 = vld [vmem:[#allocation2 + $0x5c0] sm:$0xff] }
0x12ca   : > { %5902 = vmatprep.subr.mxu1 %v5838_v19  ;;  %5432 = vmatpush1.msra.mxu0 %v5189_v20  ;;  %v5848_v19 = vld [vmem:[#allocation2 + $0x358] sm:$0xff]  ;;  %v6532_v20 = vld [vmem:[#allocation2 + $0x588] sm:$0xff] }
0x12cb   : > { %5903 = vmatpush1.msra.mxu1 %v5837_v21  ;;  %5936 = vmatprep.mubr.f32.mxu1 %v9575_v7  ;;  %v5847_v21 = vld [vmem:[#allocation2 + $0x350] sm:$0xff] }
0x12cc   : > { %5433 = vmatprep.subr.mxu0 %v5182_v22  ;;  %8569 = vmatmul.mubr.msk.f32.vlgmr.msra.gmra.mxu1 %vm468_vm0, %v10772_v23  ;;  %v5840_v22 = vld [vmem:[#allocation2 + $0x318] sm:$0xff] }
0x12cd   : > { %6038 = vmatprep.subr.mxu1 %v5866_v27  ;;  %5434 = vmatpush1.msra.mxu0 %v5181_v31  ;;  %v6524_v27 = vld [vmem:[#allocation2 + $0x548] sm:$0xff]  ;;  %v5839_v31 = vld [vmem:[#allocation2 + $0x310] sm:$0xff] }
0x12ce   : > { %6039 = vmatpush1.msra.mxu1 %v5865_v32  ;;  %5435 = vmatprep.subr.mxu0 %v5174_v0  ;;  %v6523_v32 = vld [vmem:[#allocation2 + $0x540] sm:$0xff]  ;;  %v5868_v0 = vld [vmem:[#allocation2 + $0x3f8] sm:$0xff] }
0x12cf   : > { %6040 = vmatprep.subr.mxu1 %v5858_v33  ;;  %5436 = vmatpush1.msra.mxu0 %v5173_v34  ;;  %v6516_v33 = vld [vmem:[#allocation2 + $0x508] sm:$0xff]  ;;  %v5867_v34 = vld [vmem:[#allocation2 + $0x3f0] sm:$0xff] }
0x12d0   : > { %6041 = vmatpush1.msra.mxu1 %v5857_v35  ;;  %5437 = vmatprep.subr.mxu0 %v5166_v37  ;;  %v6515_v35 = vld [vmem:[#allocation2 + $0x500] sm:$0xff]  ;;  %v5860_v37 = vld [vmem:[#allocation2 + $0x3b8] sm:$0xff] }
0x12d1   : > { %6042 = vmatprep.subr.mxu1 %v5850_v40  ;;  %5438 = vmatpush1.msra.mxu0 %v5165_v24  ;;  %v10802_v40 = vrot.slane %v10738_v39, 5  ;;  %v6544_v24 = vld [vmem:[#allocation2 + $0x5e8] sm:$0xff] }
0x12d2   : > { %5471 = vmatprep.mubr.f32.mxu0 %v9575_v7  ;;  %6043 = vmatpush1.msra.mxu1 %v5849_v41  ;;  %v5859_v41 = vld [vmem:[#allocation2 + $0x3b0] sm:$0xff] }
0x12d3   : > { %8564 = vmatmul.mubr.msk.f32.vlgmr.msra.gmra.mxu0 %vm468_vm0, %v10743_v17  ;;  %5628 = vmatprep.subr.mxu0 %v5525_v36  ;;  %v6192_v17 = vld [vmem:[#allocation2 + $0x480] sm:$0xff] }
0x12d4   : > { %6044 = vmatprep.subr.mxu1 %v5842_v42  ;;  %5629 = vmatpush1.msra.mxu0 %v5524_v43  ;;  %v6543_v36 = vld [vmem:[#allocation2 + $0x5e0] sm:$0xff]  ;;  %v5852_v42 = vld [vmem:[#allocation2 + $0x378] sm:$0xff]  ;;  %v6536_v43 = vld [vmem:[#allocation2 + $0x5a8] sm:$0xff] }
0x12d5   : > { %6045 = vmatpush1.msra.mxu1 %v5841_v44  ;;  %6078 = vmatprep.mubr.f32.mxu1 %v9575_v7  ;;  %v5851_v44 = vld [vmem:[#allocation2 + $0x370] sm:$0xff] }
0x12d6   : > { %5630 = vmatprep.subr.mxu0 %v5517_v10  ;;  %8571 = vmatmul.mubr.msk.f32.vlgmr.msra.gmra.mxu1 %vm468_vm0, %v10772_v23  ;;  %v6535_v10 = vld [vmem:[#allocation2 + $0x5a0] sm:$0xff] }
0x12d7   : > { %6235 = vmatprep.subr.mxu1 %v6201_v45  ;;  %5631 = vmatpush1.msra.mxu0 %v5516_v46  ;;  %v5844_v45 = vld [vmem:[#allocation2 + $0x338] sm:$0xff]  ;;  %v6528_v46 = vld [vmem:[#allocation2 + $0x568] sm:$0xff] }
0x12d8   : > { %6236 = vmatpush1.msra.mxu1 %v6200_v47  ;;  %5632 = vmatprep.subr.mxu0 %v5509_v48  ;;  %v5843_v47 = vld [vmem:[#allocation2 + $0x330] sm:$0xff]  ;;  %v6527_v48 = vld [vmem:[#allocation2 + $0x560] sm:$0xff] }
0x12d9   : > { %6237 = vmatprep.subr.mxu1 %v6193_v49  ;;  %5633 = vmatpush1.msra.mxu0 %v5508_v50  ;;  %v6203_v49 = vld [vmem:[#allocation2 + $0x4d8] sm:$0xff]  ;;  %v6520_v50 = vld [vmem:[#allocation2 + $0x528] sm:$0xff] }
0x12da   : > { %6238 = vmatpush1.msra.mxu1 %v6192_v17  ;;  %5634 = vmatprep.subr.mxu0 %v5501_v53  ;;  %v6202_v17 = vld [vmem:[#allocation2 + $0x4d0] sm:$0xff]  ;;  %v6519_v53 = vld [vmem:[#allocation2 + $0x520] sm:$0xff] }
0x12db   : > { %6239 = vmatprep.subr.mxu1 %v6185_v54  ;;  %5635 = vmatpush1.msra.mxu0 %v5500_v55  ;;  %v6195_v54 = vld [vmem:[#allocation2 + $0x498] sm:$0xff]  ;;  %v6879_v55 = vld [vmem:[#allocation2 + $0x6c8] sm:$0xff] }
0x12dc   : > { %5668 = vmatprep.mubr.f32.mxu0 %v9575_v7  ;;  %6240 = vmatpush1.msra.mxu1 %v6184_v56  ;;  %v6194_v56 = vld [vmem:[#allocation2 + $0x490] sm:$0xff] }
0x12dd   : > { %8566 = vmatmul.mubr.msk.f32.vlgmr.msra.gmra.mxu0 %vm468_vm0, %v10757_v52  ;;  %5770 = vmatprep.subr.mxu0 %v5529_v57  ;;  %v6878_v57 = vld [vmem:[#allocation2 + $0x6c0] sm:$0xff] }
0x12de   : > { %6241 = vmatprep.subr.mxu1 %v6177_v51  ;;  %5771 = vmatpush1.msra.mxu0 %v5528_v58  ;;  %v6187_v51 = vld [vmem:[#allocation2 + $0x458] sm:$0xff]  ;;  %v6871_v58 = vld [vmem:[#allocation2 + $0x688] sm:$0xff] }
0x12df   : > { %6242 = vmatpush1.msra.mxu1 %v6176_v59  ;;  %6275 = vmatprep.mubr.f32.mxu1 %v9575_v7  ;;  %v6186_v59 = vld [vmem:[#allocation2 + $0x450] sm:$0xff] }
0x12e0   : > { %5772 = vmatprep.subr.mxu0 %v5521_v60  ;;  %8573 = vmatmul.mubr.msk.f32.vlgmr.msra.gmra.mxu1 %vm468_vm0, %v10787_v61  ;;  %v6179_v60 = vld [vmem:[#allocation2 + $0x418] sm:$0xff] }
0x12e1   : > { %6377 = vmatprep.subr.mxu1 %v6205_v28  ;;  %5773 = vmatpush1.msra.mxu0 %v5520_v30  ;;  %v6863_v28 = vld [vmem:[#allocation2 + $0x648] sm:$0xff]  ;;  %v6178_v30 = vld [vmem:[#allocation2 + $0x410] sm:$0xff] }
0x12e2   : > { %6378 = vmatpush1.msra.mxu1 %v6204_v62  ;;  %5774 = vmatprep.subr.mxu0 %v5513_v63  ;;  %v6862_v62 = vld [vmem:[#allocation2 + $0x640] sm:$0xff]  ;;  %v6207_v63 = vld [vmem:[#allocation2 + $0x4f8] sm:$0xff] }
0x12e3   : > { %6379 = vmatprep.subr.mxu1 %v6197_v1  ;;  %5775 = vmatpush1.msra.mxu0 %v5512_v2  ;;  %v6855_v1 = vld [vmem:[#allocation2 + $0x608] sm:$0xff]  ;;  %v6206_v2 = vld [vmem:[#allocation2 + $0x4f0] sm:$0xff] }
0x12e4   : > { %6380 = vmatpush1.msra.mxu1 %v6196_v3  ;;  %5776 = vmatprep.subr.mxu0 %v5505_v5  ;;  %v6854_v3 = vld [vmem:[#allocation2 + $0x600] sm:$0xff]  ;;  %v6199_v5 = vld [vmem:[#allocation2 + $0x4b8] sm:$0xff] }
0x12e5   : > { %6381 = vmatprep.subr.mxu1 %v6189_v6  ;;  %5777 = vmatpush1.msra.mxu0 %v5504_v8  ;;  %v10817_v6 = vrot.slane %v10738_v39, 6  ;;  %v6883_v8 = vld [vmem:[#allocation2 + $0x6e8] sm:$0xff] }
0x12e6   : > { %5810 = vmatprep.mubr.f32.mxu0 %v9575_v7  ;;  %6382 = vmatpush1.msra.mxu1 %v6188_v9  ;;  %v6198_v9 = vld [vmem:[#allocation2 + $0x4b0] sm:$0xff] }
0x12e7   : > { %8568 = vmatmul.mubr.msk.f32.vlgmr.msra.gmra.mxu0 %vm468_vm0, %v10757_v52  ;;  %5967 = vmatprep.subr.mxu0 %v5864_v11  ;;  %v6531_v52 = vld [vmem:[#allocation2 + $0x580] sm:$0xff] }
0x12e8   : > { %6383 = vmatprep.subr.mxu1 %v6181_v12  ;;  %5968 = vmatpush1.msra.mxu0 %v5863_v38  ;;  %v6882_v11 = vld [vmem:[#allocation2 + $0x6e0] sm:$0xff]  ;;  %v6191_v12 = vld [vmem:[#allocation2 + $0x478] sm:$0xff]  ;;  %v6875_v38 = vld [vmem:[#allocation2 + $0x6a8] sm:$0xff] }
0x12e9   : > { %6384 = vmatpush1.msra.mxu1 %v6180_v13  ;;  %6417 = vmatprep.mubr.f32.mxu1 %v9575_v7  ;;  %v6190_v13 = vld [vmem:[#allocation2 + $0x470] sm:$0xff] }
0x12ea   : > { %5969 = vmatprep.subr.mxu0 %v5856_v15  ;;  %8575 = vmatmul.mubr.msk.f32.vlgmr.msra.gmra.mxu1 %vm468_vm0, %v10787_v61  ;;  %v6874_v15 = vld [vmem:[#allocation2 + $0x6a0] sm:$0xff] }
0x12eb   : > { %6574 = vmatprep.subr.mxu1 %v6540_v16  ;;  %5970 = vmatpush1.msra.mxu0 %v5855_v14  ;;  %v6183_v16 = vld [vmem:[#allocation2 + $0x438] sm:$0xff]  ;;  %v6867_v14 = vld [vmem:[#allocation2 + $0x668] sm:$0xff] }
0x12ec   : > { %6575 = vmatpush1.msra.mxu1 %v6539_v18  ;;  %5971 = vmatprep.subr.mxu0 %v5848_v19  ;;  %v6182_v18 = vld [vmem:[#allocation2 + $0x430] sm:$0xff]  ;;  %v6866_v19 = vld [vmem:[#allocation2 + $0x660] sm:$0xff] }
0x12ed   : > { %6576 = vmatprep.subr.mxu1 %v6532_v20  ;;  %5972 = vmatpush1.msra.mxu0 %v5847_v21  ;;  %v6542_v20 = vld [vmem:[#allocation2 + $0x5d8] sm:$0xff]  ;;  %v6859_v21 = vld [vmem:[#allocation2 + $0x628] sm:$0xff] }
0x12ee   : > { %6577 = vmatpush1.msra.mxu1 %v6531_v52  ;;  %5973 = vmatprep.subr.mxu0 %v5840_v22  ;;  %v6541_v52 = vld [vmem:[#allocation2 + $0x5d0] sm:$0xff]  ;;  %v6858_v22 = vld [vmem:[#allocation2 + $0x620] sm:$0xff] }
0x12ef   : > { %6578 = vmatprep.subr.mxu1 %v6524_v27  ;;  %5974 = vmatpush1.msra.mxu0 %v5839_v31  ;;  %v6534_v27 = vld [vmem:[#allocation2 + $0x598] sm:$0xff]  ;;  %v7218_v31 = vld [vmem:[#allocation2 + $0x7c8] sm:$0xff] }
0x12f0   : > { %6007 = vmatprep.mubr.f32.mxu0 %v9575_v7  ;;  %6579 = vmatpush1.msra.mxu1 %v6523_v32  ;;  %v6533_v32 = vld [vmem:[#allocation2 + $0x590] sm:$0xff] }
0x12f1   : > { %8570 = vmatmul.mubr.msk.f32.vlgmr.msra.gmra.mxu0 %vm468_vm0, %v10772_v23  ;;  %6109 = vmatprep.subr.mxu0 %v5868_v0  ;;  %v7217_v0 = vld [vmem:[#allocation2 + $0x7c0] sm:$0xff] }
0x12f2   : > { %6580 = vmatprep.subr.mxu1 %v6516_v33  ;;  %6110 = vmatpush1.msra.mxu0 %v5867_v34  ;;  %v6526_v33 = vld [vmem:[#allocation2 + $0x558] sm:$0xff]  ;;  %v7210_v34 = vld [vmem:[#allocation2 + $0x788] sm:$0xff] }
0x12f3   : > { %6581 = vmatpush1.msra.mxu1 %v6515_v35  ;;  %6614 = vmatprep.mubr.f32.mxu1 %v9575_v7  ;;  %v6525_v35 = vld [vmem:[#allocation2 + $0x550] sm:$0xff] }
0x12f4   : > { %6111 = vmatprep.subr.mxu0 %v5860_v37  ;;  %8577 = vmatmul.mubr.msk.f32.vlgmr.msra.gmra.mxu1 %vm468_vm0, %v10802_v40  ;;  %v6518_v37 = vld [vmem:[#allocation2 + $0x518] sm:$0xff] }
0x12f5   : > { %6716 = vmatprep.subr.mxu1 %v6544_v24  ;;  %6112 = vmatpush1.msra.mxu0 %v5859_v41  ;;  %v7202_v24 = vld [vmem:[#allocation2 + $0x748] sm:$0xff]  ;;  %v6517_v41 = vld [vmem:[#allocation2 + $0x510] sm:$0xff] }
0x12f6   : > { %6717 = vmatpush1.msra.mxu1 %v6543_v36  ;;  %6113 = vmatprep.subr.mxu0 %v5852_v42  ;;  %v7201_v36 = vld [vmem:[#allocation2 + $0x740] sm:$0xff]  ;;  %v6546_v42 = vld [vmem:[#allocation2 + $0x5f8] sm:$0xff] }
0x12f7   : > { %6718 = vmatprep.subr.mxu1 %v6536_v43  ;;  %6114 = vmatpush1.msra.mxu0 %v5851_v44  ;;  %v7194_v43 = vld [vmem:[#allocation2 + $0x708] sm:$0xff]  ;;  %v6545_v44 = vld [vmem:[#allocation2 + $0x5f0] sm:$0xff] }
0x12f8   : > { %6719 = vmatpush1.msra.mxu1 %v6535_v10  ;;  %6115 = vmatprep.subr.mxu0 %v5844_v45  ;;  %v7193_v10 = vld [vmem:[#allocation2 + $0x700] sm:$0xff]  ;;  %v6538_v45 = vld [vmem:[#allocation2 + $0x5b8] sm:$0xff] }
0x12f9   : > { %6720 = vmatprep.subr.mxu1 %v6528_v46  ;;  %6116 = vmatpush1.msra.mxu0 %v5843_v47  ;;  %v10832_v46 = vrot.slane %v10738_v39, 7  ;;  %v7222_v47 = vld [vmem:[#allocation2 + $0x7e8] sm:$0xff] }
0x12fa   : > { %6149 = vmatprep.mubr.f32.mxu0 %v9575_v7  ;;  %6721 = vmatpush1.msra.mxu1 %v6527_v48  ;;  %v6537_v48 = vld [vmem:[#allocation2 + $0x5b0] sm:$0xff]  ;;  %v7206_v39 = vld [vmem:[#allocation2 + $0x768] sm:$0xff] }
0x12fb   : > { %8572 = vmatmul.mubr.msk.f32.vlgmr.msra.gmra.mxu0 %vm468_vm0, %v10772_v23  ;;  %6306 = vmatprep.subr.mxu0 %v6203_v49  ;;  %v6870_v23 = vld [vmem:[#allocation2 + $0x680] sm:$0xff] }
0x12fc   : > { %6722 = vmatprep.subr.mxu1 %v6520_v50  ;;  %6307 = vmatpush1.msra.mxu0 %v6202_v17  ;;  %v7221_v49 = vld [vmem:[#allocation2 + $0x7e0] sm:$0xff]  ;;  %v6530_v50 = vld [vmem:[#allocation2 + $0x578] sm:$0xff]  ;;  %v7214_v17 = vld [vmem:[#allocation2 + $0x7a8] sm:$0xff] }
0x12fd   : > { %6723 = vmatpush1.msra.mxu1 %v6519_v53  ;;  %6756 = vmatprep.mubr.f32.mxu1 %v9575_v7  ;;  %v6529_v53 = vld [vmem:[#allocation2 + $0x570] sm:$0xff] }
0x12fe   : > { %6308 = vmatprep.subr.mxu0 %v6195_v54  ;;  %8579 = vmatmul.mubr.msk.f32.vlgmr.msra.gmra.mxu1 %vm468_vm0, %v10802_v40  ;;  %v7213_v54 = vld [vmem:[#allocation2 + $0x7a0] sm:$0xff] }
0x12ff   : > { %6913 = vmatprep.subr.mxu1 %v6879_v55  ;;  %6309 = vmatpush1.msra.mxu0 %v6194_v56  ;;  %v6522_v55 = vld [vmem:[#allocation2 + $0x538] sm:$0xff]  ;;  %v6521_v56 = vld [vmem:[#allocation2 + $0x530] sm:$0xff] }
0x1300   : > { %6914 = vmatpush1.msra.mxu1 %v6878_v57  ;;  %6310 = vmatprep.subr.mxu0 %v6187_v51  ;;  %v7205_v57 = vld [vmem:[#allocation2 + $0x760] sm:$0xff]  ;;  %v6881_v51 = vld [vmem:[#allocation2 + $0x6d8] sm:$0xff] }
0x1301   : > { %6915 = vmatprep.subr.mxu1 %v6871_v58  ;;  %6311 = vmatpush1.msra.mxu0 %v6186_v59  ;;  %v7198_v58 = vld [vmem:[#allocation2 + $0x728] sm:$0xff]  ;;  %v6880_v59 = vld [vmem:[#allocation2 + $0x6d0] sm:$0xff] }
0x1302   : > { %6916 = vmatpush1.msra.mxu1 %v6870_v23  ;;  %6312 = vmatprep.subr.mxu0 %v6179_v60  ;;  %v7197_v23 = vld [vmem:[#allocation2 + $0x720] sm:$0xff]  ;;  %v6873_v60 = vld [vmem:[#allocation2 + $0x698] sm:$0xff] }
0x1303   : > { %6917 = vmatprep.subr.mxu1 %v6863_v28  ;;  %6313 = vmatpush1.msra.mxu0 %v6178_v30  ;;  %v6872_v28 = vld [vmem:[#allocation2 + $0x690] sm:$0xff]  ;;  %v6865_v30 = vld [vmem:[#allocation2 + $0x658] sm:$0xff] }
0x1304   : > { %6346 = vmatprep.mubr.f32.mxu0 %v9575_v7  ;;  %6918 = vmatpush1.msra.mxu1 %v6862_v62  ;;  %v7567_v62 = vld [vmem:[#allocation5 + $0xf8] sm:$0xff] }
0x1305   : > { %8574 = vmatmul.mubr.msk.f32.vlgmr.msra.gmra.mxu0 %vm468_vm0, %v10787_v61  ;;  %6448 = vmatprep.subr.mxu0 %v6207_v63  ;;  %v6864_v63 = vld [vmem:[#allocation2 + $0x650] sm:$0xff] }
0x1306   : > { %6919 = vmatprep.subr.mxu1 %v6855_v1  ;;  %6449 = vmatpush1.msra.mxu0 %v6206_v2  ;;  %v7566_v1 = vld [vmem:[#allocation5 + $0xf0] sm:$0xff]  ;;  %v6857_v2 = vld [vmem:[#allocation2 + $0x618] sm:$0xff] }
0x1307   : > { %6920 = vmatpush1.msra.mxu1 %v6854_v3  ;;  %6953 = vmatprep.mubr.f32.mxu1 %v9575_v7  ;;  %v6856_v3 = vld [vmem:[#allocation2 + $0x610] sm:$0xff] }
0x1308   : > { %6450 = vmatprep.subr.mxu0 %v6199_v5  ;;  %8581 = vmatmul.mubr.msk.f32.vlgmr.msra.gmra.mxu1 %vm468_vm0, %v10817_v6  ;;  %v7564_v5 = vld [vmem:[#allocation5 + $0xe0] sm:$0xff] }
0x1309   : > { %7055 = vmatprep.subr.mxu1 %v6883_v8  ;;  %6451 = vmatpush1.msra.mxu0 %v6198_v9  ;;  %v6885_v8 = vld [vmem:[#allocation2 + $0x6f8] sm:$0xff]  ;;  %v6884_v9 = vld [vmem:[#allocation2 + $0x6f0] sm:$0xff] }
0x130a   : > { %7056 = vmatpush1.msra.mxu1 %v6882_v11  ;;  %6452 = vmatprep.subr.mxu0 %v6191_v12  ;;  %v6877_v11 = vld [vmem:[#allocation2 + $0x6b8] sm:$0xff] }
0x130b   : > { %7057 = vmatprep.subr.mxu1 %v6875_v38  ;;  %6453 = vmatpush1.msra.mxu0 %v6190_v13  ;;  %v7563_v12 = vld [vmem:[#allocation5 + $0xd8] sm:$0xff]  ;;  %v6876_v38 = vld [vmem:[#allocation2 + $0x6b0] sm:$0xff] }
0x130c   : > { %7058 = vmatpush1.msra.mxu1 %v6874_v15  ;;  %6454 = vmatprep.subr.mxu0 %v6183_v16  ;;  %v7562_v13 = vld [vmem:[#allocation5 + $0xd0] sm:$0xff]  ;;  %v6869_v15 = vld [vmem:[#allocation2 + $0x678] sm:$0xff]  ;;  %v7561_v16 = vld [vmem:[#allocation5 + $0xc8] sm:$0xff] }
0x130d   : > { %7059 = vmatprep.subr.mxu1 %v6867_v14  ;;  %6455 = vmatpush1.msra.mxu0 %v6182_v18  ;;  %v6868_v14 = vld [vmem:[#allocation2 + $0x670] sm:$0xff]  ;;  %v7560_v18 = vld [vmem:[#allocation5 + $0xc0] sm:$0xff] }
0x130e   : > { %6488 = vmatprep.mubr.f32.mxu0 %v9575_v7  ;;  %7060 = vmatpush1.msra.mxu1 %v6866_v19  ;;  %v6861_v19 = vld [vmem:[#allocation2 + $0x638] sm:$0xff] }
0x130f   : > { %8576 = vmatmul.mubr.msk.f32.vlgmr.msra.gmra.mxu0 %vm468_vm0, %v10787_v61  ;;  %6645 = vmatprep.subr.mxu0 %v6542_v20  ;;  %v7209_v61 = vld [vmem:[#allocation2 + $0x780] sm:$0xff]  ;;  %v7559_v20 = vld [vmem:[#allocation5 + $0xb8] sm:$0xff] }
0x1310   : > { %7061 = vmatprep.subr.mxu1 %v6859_v21  ;;  %6646 = vmatpush1.msra.mxu0 %v6541_v52  ;;  %v6860_v21 = vld [vmem:[#allocation2 + $0x630] sm:$0xff] }
0x1311   : > { %7062 = vmatpush1.msra.mxu1 %v6858_v22  ;;  %7095 = vmatprep.mubr.f32.mxu1 %v9575_v7  ;;  %v7558_v52 = vld [vmem:[#allocation5 + $0xb0] sm:$0xff]  ;;  %v7220_v22 = vld [vmem:[#allocation2 + $0x7d8] sm:$0xff] }
0x1312   : > { %6647 = vmatprep.subr.mxu0 %v6534_v27  ;;  %8583 = vmatmul.mubr.msk.f32.vlgmr.msra.gmra.mxu1 %vm468_vm0, %v10817_v6  ;;  %v7219_v27 = vld [vmem:[#allocation2 + $0x7d0] sm:$0xff] }
0x1313   : > { %7252 = vmatprep.subr.mxu1 %v7218_v31  ;;  %6648 = vmatpush1.msra.mxu0 %v6533_v32  ;;  %v7212_v31 = vld [vmem:[#allocation2 + $0x798] sm:$0xff]  ;;  %v7557_v32 = vld [vmem:[#allocation5 + $0xa8] sm:$0xff] }
0x1314   : > { %7253 = vmatpush1.msra.mxu1 %v7217_v0  ;;  %6649 = vmatprep.subr.mxu0 %v6526_v33  ;;  %v7211_v0 = vld [vmem:[#allocation2 + $0x790] sm:$0xff]  ;;  %v7556_v33 = vld [vmem:[#allocation5 + $0xa0] sm:$0xff] }
0x1315   : > { %7254 = vmatprep.subr.mxu1 %v7210_v34  ;;  %6650 = vmatpush1.msra.mxu0 %v6525_v35  ;;  %v7204_v34 = vld [vmem:[#allocation2 + $0x758] sm:$0xff] }
0x1316   : > { %7255 = vmatpush1.msra.mxu1 %v7209_v61  ;;  %6651 = vmatprep.subr.mxu0 %v6518_v37  ;;  %v7555_v35 = vld [vmem:[#allocation5 + $0x98] sm:$0xff]  ;;  %v7203_v61 = vld [vmem:[#allocation2 + $0x750] sm:$0xff] }
0x1317   : > { %7256 = vmatprep.subr.mxu1 %v7202_v24  ;;  %6652 = vmatpush1.msra.mxu0 %v6517_v41  ;;  %v7554_v37 = vld [vmem:[#allocation5 + $0x90] sm:$0xff]  ;;  %v7196_v24 = vld [vmem:[#allocation2 + $0x718] sm:$0xff]  ;;  %v7553_v41 = vld [vmem:[#allocation5 + $0x88] sm:$0xff] }
0x1318   : > { %6685 = vmatprep.mubr.f32.mxu0 %v9575_v7  ;;  %7257 = vmatpush1.msra.mxu1 %v7201_v36  ;;  %v7195_v36 = vld [vmem:[#allocation2 + $0x710] sm:$0xff] }
0x1319   : > { %8578 = vmatmul.mubr.msk.f32.vlgmr.msra.gmra.mxu0 %vm468_vm0, %v10802_v40  ;;  %6787 = vmatprep.subr.mxu0 %v6546_v42  ;;  %v7224_v42 = vld [vmem:[#allocation2 + $0x7f8] sm:$0xff] }
0x131a   : > { %7258 = vmatprep.subr.mxu1 %v7194_v43  ;;  %6788 = vmatpush1.msra.mxu0 %v6545_v44  ;;  %v7223_v43 = vld [vmem:[#allocation2 + $0x7f0] sm:$0xff]  ;;  %v7216_v44 = vld [vmem:[#allocation2 + $0x7b8] sm:$0xff] }
0x131b   : > { %7259 = vmatpush1.msra.mxu1 %v7193_v10  ;;  %7292 = vmatprep.mubr.f32.mxu1 %v9575_v7  ;;  %v7551_v10 = vld [vmem:[#allocation5 + $0x78] sm:$0xff] }
0x131c   : > { %6789 = vmatprep.subr.mxu0 %v6538_v45  ;;  %8585 = vmatmul.mubr.msk.f32.vlgmr.msra.gmra.mxu1 %vm468_vm0, %v10832_v46  ;;  %v7215_v45 = vld [vmem:[#allocation2 + $0x7b0] sm:$0xff] }
0x131d   : > { %7394 = vmatprep.subr.mxu1 %v7222_v47  ;;  %6790 = vmatpush1.msra.mxu0 %v6537_v48  ;;  %v7550_v47 = vld [vmem:[#allocation5 + $0x70] sm:$0xff]  ;;  %v7208_v48 = vld [vmem:[#allocation2 + $0x778] sm:$0xff] }
0x131e   : > { %7395 = vmatpush1.msra.mxu1 %v7221_v49  ;;  %6791 = vmatprep.subr.mxu0 %v6530_v50  ;;  %v7549_v49 = vld [vmem:[#allocation5 + $0x68] sm:$0xff]  ;;  %v7207_v50 = vld [vmem:[#allocation2 + $0x770] sm:$0xff] }
0x131f   : > { %7396 = vmatprep.subr.mxu1 %v7214_v17  ;;  %6792 = vmatpush1.msra.mxu0 %v6529_v53  ;;  %v7548_v17 = vld [vmem:[#allocation5 + $0x60] sm:$0xff]  ;;  %v7200_v53 = vld [vmem:[#allocation2 + $0x738] sm:$0xff] }
0x1320   : > { %7397 = vmatpush1.msra.mxu1 %v7213_v54  ;;  %6793 = vmatprep.subr.mxu0 %v6522_v55  ;;  %v7547_v54 = vld [vmem:[#allocation5 + $0x58] sm:$0xff]  ;;  %v7199_v55 = vld [vmem:[#allocation2 + $0x730] sm:$0xff] }
0x1321   : > { %7398 = vmatprep.subr.mxu1 %v7206_v39  ;;  %6794 = vmatpush1.msra.mxu0 %v6521_v56  ;;  %v7546_v39 = vld [vmem:[#allocation5 + $0x50] sm:$0xff]  ;;  %v7545_v56 = vld [vmem:[#allocation5 + $0x48] sm:$0xff] }
0x1322   : > { %6827 = vmatprep.mubr.f32.mxu0 %v9575_v7  ;;  %7399 = vmatpush1.msra.mxu1 %v7205_v57  ;;  %v7544_v57 = vld [vmem:[#allocation5 + $0x40] sm:$0xff] }
0x1323   : > { %8580 = vmatmul.mubr.msk.f32.vlgmr.msra.gmra.mxu0 %vm468_vm0, %v10802_v40  ;;  %6984 = vmatprep.subr.mxu0 %v6881_v51  ;;  %v7565_v40 = vld [vmem:[#allocation5 + $0xe8] sm:$0xff]  ;;  %v7543_v51 = vld [vmem:[#allocation5 + $0x38] sm:$0xff] }
0x1324   : > { %7400 = vmatprep.subr.mxu1 %v7198_v58  ;;  %6985 = vmatpush1.msra.mxu0 %v6880_v59  ;;  %v7630_v58 = vld [vmem:[#allocation5 + $0x2f0] sm:$0xff] }
0x1325   : > { %7401 = vmatpush1.msra.mxu1 %v7197_v23  ;;  %7434 = vmatprep.mubr.f32.mxu1 %v9575_v7  ;;  %v7542_v59 = vld [vmem:[#allocation5 + $0x30] sm:$0xff]  ;;  %v7629_v23 = vld [vmem:[#allocation5 + $0x2e8] sm:$0xff] }
0x1326   : > { %6986 = vmatprep.subr.mxu0 %v6873_v60  ;;  %8587 = vmatmul.mubr.msk.f32.vlgmr.msra.gmra.mxu1 %vm468_vm0, %v10832_v46  ;;  %v7541_v60 = vld [vmem:[#allocation5 + $0x28] sm:$0xff] }
0x1327   : > { %6987 = vmatpush1.msra.mxu0 %v6872_v28  ;;  %7024 = vmatprep.mubr.f32.mxu0 %v9575_v7  ;;  %v7628_v28 = vld [vmem:[#allocation5 + $0x2e0] sm:$0xff] }
0x1328   : > { %6988 = vmatprep.subr.mxu0 %v6865_v30  ;;  %7847 = vmatprep.subr.mxu1 %v7567_v62  ;;  %v7540_v30 = vld [vmem:[#allocation5 + $0x20] sm:$0xff]  ;;  %v7627_v62 = vld [vmem:[#allocation5 + $0x2d8] sm:$0xff] }
0x1329   : > { %6989 = vmatpush1.msra.mxu0 %v6864_v63  ;;  %7848 = vmatpush1.msra.mxu1 %v7566_v1  ;;  %v7539_v63 = vld [vmem:[#allocation5 + $0x18] sm:$0xff]  ;;  %v7626_v1 = vld [vmem:[#allocation5 + $0x2d0] sm:$0xff] }
0x132a   : > { %6990 = vmatprep.subr.mxu0 %v6857_v2  ;;  %7849 = vmatprep.subr.mxu1 %v7565_v40  ;;  %v7538_v2 = vld [vmem:[#allocation5 + $0x10] sm:$0xff]  ;;  %v7625_v40 = vld [vmem:[#allocation5 + $0x2c8] sm:$0xff] }
0x132b   : > { %6991 = vmatpush1.msra.mxu0 %v6856_v3  ;;  %7850 = vmatpush1.msra.mxu1 %v7564_v5  ;;  %v7536_v3 = vld [vmem:[#allocation5] sm:$0xff] }
0x132c   : > { %8582 = vmatmul.mubr.msk.f32.vlgmr.msra.gmra.mxu0 %vm468_vm0, %v10817_v6  ;;  %7126 = vmatprep.subr.mxu0 %v6885_v8  ;;  %v7624_v5 = vld [vmem:[#allocation5 + $0x2c0] sm:$0xff]  ;;  %v7599_v8 = vld [vmem:[#allocation5 + $0x1f8] sm:$0xff] }
0x132d   : > { %7127 = vmatpush1.msra.mxu0 %v6884_v9  ;;  %7166 = vmatprep.mubr.f32.mxu0 %v9575_v7  ;;  %v7623_v9 = vld [vmem:[#allocation5 + $0x2b8] sm:$0xff] }
0x132e   : > { %7128 = vmatprep.subr.mxu0 %v6877_v11  ;;  %7851 = vmatprep.subr.mxu1 %v7563_v12  ;;  %v7598_v11 = vld [vmem:[#allocation5 + $0x1f0] sm:$0xff]  ;;  %v7597_v12 = vld [vmem:[#allocation5 + $0x1e8] sm:$0xff] }
0x132f   : > { %7129 = vmatpush1.msra.mxu0 %v6876_v38  ;;  %7852 = vmatpush1.msra.mxu1 %v7562_v13  ;;  %v7622_v38 = vld [vmem:[#allocation5 + $0x2b0] sm:$0xff]  ;;  %v7596_v13 = vld [vmem:[#allocation5 + $0x1e0] sm:$0xff] }
0x1330   : > { %7130 = vmatprep.subr.mxu0 %v6869_v15  ;;  %7853 = vmatprep.subr.mxu1 %v7561_v16  ;;  %v7621_v15 = vld [vmem:[#allocation5 + $0x2a8] sm:$0xff]  ;;  %v7620_v16 = vld [vmem:[#allocation5 + $0x2a0] sm:$0xff] }
0x1331   : > { %7131 = vmatpush1.msra.mxu0 %v6868_v14  ;;  %7854 = vmatpush1.msra.mxu1 %v7560_v18  ;;  %v7595_v14 = vld [vmem:[#allocation5 + $0x1d8] sm:$0xff] }
0x1332   : > { %7132 = vmatprep.subr.mxu0 %v6861_v19  ;;  %7855 = vmatprep.subr.mxu1 %v7559_v20  ;;  %v7619_v18 = vld [vmem:[#allocation5 + $0x298] sm:$0xff]  ;;  %v7594_v19 = vld [vmem:[#allocation5 + $0x1d0] sm:$0xff] }
0x1333   : > { %7133 = vmatpush1.msra.mxu0 %v6860_v21  ;;  %7856 = vmatpush1.msra.mxu1 %v7558_v52  ;;  %v7618_v20 = vld [vmem:[#allocation5 + $0x290] sm:$0xff]  ;;  %v7617_v21 = vld [vmem:[#allocation5 + $0x288] sm:$0xff] }
0x1334   : > { %8584 = vmatmul.mubr.msk.f32.vlgmr.msra.gmra.mxu0 %vm468_vm0, %v10817_v6  ;;  %7323 = vmatprep.subr.mxu0 %v7220_v22  ;;  %v7552_v6 = vld [vmem:[#allocation5 + $0x80] sm:$0xff]  ;;  %v7593_v52 = vld [vmem:[#allocation5 + $0x1c8] sm:$0xff] }
0x1335   : > { %7324 = vmatpush1.msra.mxu0 %v7219_v27  ;;  %7363 = vmatprep.mubr.f32.mxu0 %v9575_v7  ;;  %v7592_v22 = vld [vmem:[#allocation5 + $0x1c0] sm:$0xff]  ;;  %v7591_v27 = vld [vmem:[#allocation5 + $0x1b8] sm:$0xff] }
0x1336   : > { %7325 = vmatprep.subr.mxu0 %v7212_v31  ;;  %7857 = vmatprep.subr.mxu1 %v7557_v32  ;;  %v7590_v31 = vld [vmem:[#allocation5 + $0x1b0] sm:$0xff]  ;;  %v7616_v32 = vld [vmem:[#allocation5 + $0x280] sm:$0xff] }
0x1337   : > { %7326 = vmatpush1.msra.mxu0 %v7211_v0  ;;  %7858 = vmatpush1.msra.mxu1 %v7556_v33  ;;  %v7589_v0 = vld [vmem:[#allocation5 + $0x1a8] sm:$0xff]  ;;  %v7615_v33 = vld [vmem:[#allocation5 + $0x278] sm:$0xff] }
0x1338   : > { %7327 = vmatprep.subr.mxu0 %v7204_v34  ;;  %7859 = vmatprep.subr.mxu1 %v7555_v35  ;;  %v7588_v34 = vld [vmem:[#allocation5 + $0x1a0] sm:$0xff]  ;;  %v7587_v35 = vld [vmem:[#allocation5 + $0x198] sm:$0xff] }
0x1339   : > { %7328 = vmatpush1.msra.mxu0 %v7203_v61  ;;  %7860 = vmatpush1.msra.mxu1 %v7554_v37  ;;  %v7614_v61 = vld [vmem:[#allocation5 + $0x270] sm:$0xff] }
0x133a   : > { %7329 = vmatprep.subr.mxu0 %v7196_v24  ;;  %7861 = vmatprep.subr.mxu1 %v7553_v41  ;;  %v7586_v37 = vld [vmem:[#allocation5 + $0x190] sm:$0xff]  ;;  %v7613_v24 = vld [vmem:[#allocation5 + $0x268] sm:$0xff]  ;;  %v7612_v41 = vld [vmem:[#allocation5 + $0x260] sm:$0xff] }
0x133b   : > { %7330 = vmatpush1.msra.mxu0 %v7195_v36  ;;  %7862 = vmatpush1.msra.mxu1 %v7552_v6  ;;  %v7585_v36 = vld [vmem:[#allocation5 + $0x188] sm:$0xff]  ;;  %v7611_v6 = vld [vmem:[#allocation5 + $0x258] sm:$0xff] }
0x133c   : > { %8586 = vmatmul.mubr.msk.f32.vlgmr.msra.gmra.mxu0 %vm468_vm0, %v10832_v46  ;;  %7465 = vmatprep.subr.mxu0 %v7224_v42  ;;  %v7584_v42 = vld [vmem:[#allocation5 + $0x180] sm:$0xff] }
0x133d   : > { %7466 = vmatpush1.msra.mxu0 %v7223_v43  ;;  %7505 = vmatprep.mubr.f32.mxu0 %v9575_v7  ;;  %v7631_v7 = vld [vmem:[#allocation5 + $0x2f8] sm:$0xff]  ;;  %v7610_v43 = vld [vmem:[#allocation5 + $0x250] sm:$0xff] }
0x133e   : > { %7467 = vmatprep.subr.mxu0 %v7216_v44  ;;  %7863 = vmatprep.subr.mxu1 %v7551_v10  ;;  %v7609_v44 = vld [vmem:[#allocation5 + $0x248] sm:$0xff]  ;;  %v7583_v10 = vld [vmem:[#allocation5 + $0x178] sm:$0xff] }
0x133f   : > { %7468 = vmatpush1.msra.mxu0 %v7215_v45  ;;  %7864 = vmatpush1.msra.mxu1 %v7550_v47  ;;  %v7582_v45 = vld [vmem:[#allocation5 + $0x170] sm:$0xff]  ;;  %v7581_v47 = vld [vmem:[#allocation5 + $0x168] sm:$0xff] }
0x1340   : > { %7469 = vmatprep.subr.mxu0 %v7208_v48  ;;  %7865 = vmatprep.subr.mxu1 %v7549_v49  ;;  %v7608_v48 = vld [vmem:[#allocation5 + $0x240] sm:$0xff] }
0x1341   : > { %7470 = vmatpush1.msra.mxu0 %v7207_v50  ;;  %7866 = vmatpush1.msra.mxu1 %v7548_v17  ;;  %v7580_v49 = vld [vmem:[#allocation5 + $0x160] sm:$0xff]  ;;  %v7607_v50 = vld [vmem:[#allocation5 + $0x238] sm:$0xff] }
0x1342   : > { %7471 = vmatprep.subr.mxu0 %v7200_v53  ;;  %7867 = vmatprep.subr.mxu1 %v7547_v54  ;;  %v7579_v17 = vld [vmem:[#allocation5 + $0x158] sm:$0xff]  ;;  %v7606_v53 = vld [vmem:[#allocation5 + $0x230] sm:$0xff] }
0x1343   : > { %7472 = vmatpush1.msra.mxu0 %v7199_v55  ;;  %7868 = vmatpush1.msra.mxu1 %v7546_v39  ;;  %v7578_v54 = vld [vmem:[#allocation5 + $0x150] sm:$0xff]  ;;  %v7605_v55 = vld [vmem:[#allocation5 + $0x228] sm:$0xff] }
0x1344   : > { %8588 = vmatmul.mubr.msk.f32.vlgmr.msra.gmra.mxu0 %vm468_vm0, %v10832_v46  ;;  %7869 = vmatprep.subr.mxu1 %v7545_v56  ;;  %v7537_v46 = vld [vmem:[#allocation5 + $0x8] sm:$0xff]  ;;  %v7604_v56 = vld [vmem:[#allocation5 + $0x220] sm:$0xff]  ;;  %vm8282_vm0 = vcmask 23552  }
0x1345   : > { %7870 = vmatpush1.msra.mxu1 %v7544_v57  ;;  %7918 = vmatprep.subr.mxu0 %v7631_v7  ;;  %v7577_v39 = vld [vmem:[#allocation5 + $0x148] sm:$0xff]  ;;  %v7576_v57 = vld [vmem:[#allocation5 + $0x140] sm:$0xff]  ;;  %v7603_v7 = vld [vmem:[#allocation5 + $0x218] sm:$0xff] }
0x1346   : > { %7871 = vmatprep.subr.mxu1 %v7543_v51  ;;  %7919 = vmatpush1.msra.mxu0 %v7630_v58  ;;  %v7575_v51 = vld [vmem:[#allocation5 + $0x138] sm:$0xff]  ;;  %v7602_v58 = vld [vmem:[#allocation5 + $0x210] sm:$0xff] }
0x1347   : > { %7872 = vmatpush1.msra.mxu1 %v7542_v59  ;;  %7920 = vmatprep.subr.mxu0 %v7629_v23  ;;  %v7574_v59 = vld [vmem:[#allocation5 + $0x130] sm:$0xff]  ;;  %v7601_v23 = vld [vmem:[#allocation5 + $0x208] sm:$0xff] }
0x1348   : > { %7873 = vmatprep.subr.mxu1 %v7541_v60  ;;  %7921 = vmatpush1.msra.mxu0 %v7628_v28  ;;  %v7573_v60 = vld [vmem:[#allocation5 + $0x128] sm:$0xff]  ;;  %v7600_v28 = vld [vmem:[#allocation5 + $0x200] sm:$0xff] }
0x1349   : > { %7874 = vmatpush1.msra.mxu1 %v7540_v30  ;;  %7922 = vmatprep.subr.mxu0 %v7627_v62  ;;  %v7572_v30 = vld [vmem:[#allocation5 + $0x120] sm:$0xff]  ;;  %v7663_v62 = vld [vmem:[#allocation5 + $0x3f8] sm:$0xff] }
0x134a   : > { %7875 = vmatprep.subr.mxu1 %v7539_v63  ;;  %7923 = vmatpush1.msra.mxu0 %v7626_v1  ;;  %v7571_v63 = vld [vmem:[#allocation5 + $0x118] sm:$0xff]  ;;  %v7662_v1 = vld [vmem:[#allocation5 + $0x3f0] sm:$0xff] }
0x134b   : > { %7876 = vmatpush1.msra.mxu1 %v7538_v2  ;;  %7924 = vmatprep.subr.mxu0 %v7625_v40  ;;  %v7570_v2 = vld [vmem:[#allocation5 + $0x110] sm:$0xff]  ;;  %v7661_v40 = vld [vmem:[#allocation5 + $0x3e8] sm:$0xff] }
0x134c   : > { %7877 = vmatprep.subr.mxu1 %v7537_v46  ;;  %7925 = vmatpush1.msra.mxu0 %v7624_v5  ;;  %v7569_v46 = vld [vmem:[#allocation5 + $0x108] sm:$0xff]  ;;  %v7568_v5 = vld [vmem:[#allocation5 + $0x100] sm:$0xff] }
0x134d   : > { %7878 = vmatpush1.msra.mxu1 %v7536_v3  ;;  %7926 = vmatprep.subr.mxu0 %v7623_v9  ;;  %v7660_v3 = vld [vmem:[#allocation5 + $0x3e0] sm:$0xff]  ;;  %v7695_v9 = vld [vmem:[#allocation5 + $0x4f8] sm:$0xff] }
0x134e   : > { %7879 = vmatprep.subr.mxu1 %v7599_v8  ;;  %7927 = vmatpush1.msra.mxu0 %v7622_v38  ;;  %v7659_v8 = vld [vmem:[#allocation5 + $0x3d8] sm:$0xff]  ;;  %v7656_v38 = vld [vmem:[#allocation5 + $0x3c0] sm:$0xff] }
0x134f   : > { %7880 = vmatpush2.msra.mxu1 %v7598_v11  ;;  %7928 = vmatprep.subr.mxu0 %v7621_v15  ;;  %v7658_v11 = vld [vmem:[#allocation5 + $0x3d0] sm:$0xff] }
0x1350   : > { %7881 = vmatprep.subr.mxu1 %v7597_v12  ;;  %7929 = vmatpush1.msra.mxu0 %v7620_v16  ;;  %v7657_v12 = vld [vmem:[#allocation5 + $0x3c8] sm:$0xff]  ;;  %v7654_v15 = vld [vmem:[#allocation5 + $0x3b0] sm:$0xff] }
0x1351   : > { %7882 = vmatpush2.msra.mxu1 %v7596_v13  ;;  %7930 = vmatprep.subr.mxu0 %v7619_v18  ;;  %v7655_v13 = vld [vmem:[#allocation5 + $0x3b8] sm:$0xff]  ;;  %v7653_v16 = vld [vmem:[#allocation5 + $0x3a8] sm:$0xff] }
0x1352   : > { %7883 = vmatprep.subr.mxu1 %v7595_v14  ;;  %7931 = vmatpush1.msra.mxu0 %v7618_v20  ;;  %v7652_v14 = vld [vmem:[#allocation5 + $0x3a0] sm:$0xff]  ;;  %v7651_v18 = vld [vmem:[#allocation5 + $0x398] sm:$0xff]  ;;  %v7649_v20 = vld [vmem:[#allocation5 + $0x388] sm:$0xff] }
0x1353   : > { %7884 = vmatpush2.msra.mxu1 %v7594_v19  ;;  %7932 = vmatprep.subr.mxu0 %v7617_v21  ;;  %v7650_v19 = vld [vmem:[#allocation5 + $0x390] sm:$0xff]  ;;  %v7648_v21 = vld [vmem:[#allocation5 + $0x380] sm:$0xff] }
0x1354   : > { %7885 = vmatprep.subr.mxu1 %v7593_v52  ;;  %7933 = vmatpush1.msra.mxu0 %v7616_v32  ;;  %v7647_v52 = vld [vmem:[#allocation5 + $0x378] sm:$0xff] }
0x1355   : > { %7886 = vmatpush2.msra.mxu1 %v7592_v22  ;;  %7934 = vmatprep.subr.mxu0 %v7615_v33  ;;  %v7646_v22 = vld [vmem:[#allocation5 + $0x370] sm:$0xff]  ;;  %v7643_v32 = vld [vmem:[#allocation5 + $0x358] sm:$0xff]  ;;  %v7641_v33 = vld [vmem:[#allocation5 + $0x348] sm:$0xff] }
0x1356   : > { %7887 = vmatprep.subr.mxu1 %v7591_v27  ;;  %7935 = vmatpush1.msra.mxu0 %v7614_v61  ;;  %v7645_v27 = vld [vmem:[#allocation5 + $0x368] sm:$0xff]  ;;  %v7638_v61 = vld [vmem:[#allocation5 + $0x330] sm:$0xff] }
0x1357   : > { %7888 = vmatpush2.msra.mxu1 %v7590_v31  ;;  %7936 = vmatprep.subr.mxu0 %v7613_v24  ;;  %v7644_v31 = vld [vmem:[#allocation5 + $0x360] sm:$0xff] }
0x1358   : > { %7889 = vmatprep.subr.mxu1 %v7589_v0  ;;  %7937 = vmatpush1.msra.mxu0 %v7612_v41  ;;  %v7642_v0 = vld [vmem:[#allocation5 + $0x350] sm:$0xff]  ;;  %v7636_v24 = vld [vmem:[#allocation5 + $0x320] sm:$0xff]  ;;  %v7635_v41 = vld [vmem:[#allocation5 + $0x318] sm:$0xff] }
0x1359   : > { %7890 = vmatpush2.msra.mxu1 %v7588_v34  ;;  %7938 = vmatprep.subr.mxu0 %v7611_v6  ;;  %v7640_v34 = vld [vmem:[#allocation5 + $0x340] sm:$0xff]  ;;  %v7633_v6 = vld [vmem:[#allocation5 + $0x308] sm:$0xff] }
0x135a   : > { %7891 = vmatprep.subr.mxu1 %v7587_v35  ;;  %7939 = vmatpush1.msra.mxu0 %v7610_v43  ;;  %v7639_v35 = vld [vmem:[#allocation5 + $0x338] sm:$0xff] }
0x135b   : > { %7892 = vmatpush2.msra.mxu1 %v7586_v37  ;;  %7940 = vmatprep.subr.mxu0 %v7609_v44  ;;  %v7637_v37 = vld [vmem:[#allocation5 + $0x328] sm:$0xff]  ;;  %v7759_v43 = vld [vmem:[#allocation5 + $0x6f8] sm:$0xff] }
0x135c   : > { %7893 = vmatprep.subr.mxu1 %v7585_v36  ;;  %7941 = vmatpush1.msra.mxu0 %v7608_v48  ;;  %v7634_v36 = vld [vmem:[#allocation5 + $0x310] sm:$0xff] }
0x135d   : > { %7894 = vmatpush2.msra.mxu1 %v7584_v42  ;;  %7942 = vmatprep.subr.mxu0 %v7607_v50  ;;  %v7632_v42 = vld [vmem:[#allocation5 + $0x300] sm:$0xff] }
0x135e   : > { %7895 = vmatprep.subr.mxu1 %v7583_v10  ;;  %7943 = vmatpush1.msra.mxu0 %v7606_v53 }
0x135f   : > { %7896 = vmatpush2.msra.mxu1 %v7582_v45  ;;  %7944 = vmatprep.subr.mxu0 %v7605_v55 }
0x1360   : > { %7897 = vmatprep.subr.mxu1 %v7581_v47  ;;  %7945 = vmatpush1.msra.mxu0 %v7604_v56 }
0x1361   : > { %7898 = vmatpush2.msra.mxu1 %v7580_v49  ;;  %7946 = vmatprep.subr.mxu0 %v7603_v7 }
0x1362   : > { %7899 = vmatprep.subr.mxu1 %v7579_v17  ;;  %7947 = vmatpush1.msra.mxu0 %v7602_v58 }
0x1363   : > { %7900 = vmatpush2.msra.mxu1 %v7578_v54  ;;  %7948 = vmatprep.subr.mxu0 %v7601_v23  ;;  %v4921_v47 = vpop.f32.mrf.mxu0 }
0x1364   : > { %7901 = vmatprep.subr.mxu1 %v7577_v39  ;;  %7949 = vmatpush1.msra.mxu0 %v7600_v28 }
0x1365   : > { %7902 = vmatpush2.msra.mxu1 %v7576_v57  ;;  %7950 = vmatprep.subr.mxu0 %v7663_v62  ;;  %v5260_v44 = vpop.f32.mrf.mxu1  ;;  %v4923_v49 = vpop.f32.mrf.mxu0 }
0x1366   : > { %7903 = vmatprep.subr.mxu1 %v7575_v51  ;;  %7951 = vmatpush2.msra.mxu0 %v7662_v1 }
0x1367   : > { %7904 = vmatpush2.msra.mxu1 %v7574_v59  ;;  %7952 = vmatprep.subr.mxu0 %v7661_v40  ;;  %v5262_v10 = vpop.f32.mrf.mxu1 }
0x1368   : > { %7905 = vmatprep.subr.mxu1 %v7573_v60  ;;  %7953 = vmatpush2.msra.mxu0 %v7660_v3 }
0x1369   : > { %7906 = vmatpush2.msra.mxu1 %v7572_v30  ;;  %7954 = vmatprep.subr.mxu0 %v7659_v8 }
0x136a   : > { %7907 = vmatprep.subr.mxu1 %v7571_v63  ;;  %7955 = vmatpush2.msra.mxu0 %v7658_v11 }
0x136b   : > { %7908 = vmatpush2.msra.mxu1 %v7570_v2  ;;  %7956 = vmatprep.subr.mxu0 %v7657_v12  ;;  %v10859_v17 = vpop.f32.mrf.mxu0 }
0x136c   : > { %7909 = vmatprep.subr.mxu1 %v7569_v46  ;;  %7957 = vmatpush2.msra.mxu0 %v7656_v38 }
0x136d   : > { %7910 = vmatpush2.msra.mxu1 %v7568_v5  ;;  %7958 = vmatprep.subr.mxu0 %v7655_v13  ;;  %v10861_v54 = vpop.f32.mrf.mxu0 }
0x136e   : > { %7989 = vmatprep.subr.mxu1 %v7695_v9  ;;  %7959 = vmatpush2.msra.mxu0 %v7654_v15  ;;  %v10855_v45 = vpop.f32.mrf.mxu1  ;;  %v5147_v15 = vcombine.low %v4921_v47, %v4923_v49 }
0x136f   : > { %7960 = vmatprep.subr.mxu0 %v7653_v16  ;;  %v10890_v16 = vld [vmem:[%s11137_s12] sm:$0x77] }
0x1370   : > { %7961 = vmatpush2.msra.mxu0 %v7652_v14  ;;  %v10857_v48 = vpop.f32.mrf.mxu1 }
0x1371   : > { %7962 = vmatprep.subr.mxu0 %v7651_v18  ;;  %v5488_v49 = vcombine.low %v10855_v45, %v10857_v48 }
0x1372   : > { %7963 = vmatpush2.msra.mxu0 %v7650_v19 }
0x1373   : > { %7964 = vmatprep.subr.mxu0 %v7649_v20  ;;  %v5155_v20 = vadd.f32 %v5147_v15, %v10890_v16 }
0x1374   : > { %7965 = vmatpush2.msra.mxu0 %v7648_v21  ;;  %v5486_v21 = vcombine.low %v5260_v44, %v5262_v10 }
0x1375   : > { %7966 = vmatprep.subr.mxu0 %v7647_v52  ;;  %v5063_v39 = vpop.f32.mrf.mxu0 }
0x1376   : > { %7967 = vmatpush2.msra.mxu0 %v7646_v22 }
0x1377   : > { %7968 = vmatprep.subr.mxu0 %v7645_v27  ;;  %v5065_v57 = vpop.f32.mrf.mxu0 }
0x1378   : > { %7969 = vmatpush2.msra.mxu0 %v7644_v31  ;;  %v5599_v50 = vpop.f32.mrf.mxu1  ;;  %v5494_v31 = vadd.f32 %v5486_v21, %v5155_v20 }
0x1379   : > { %7970 = vmatprep.subr.mxu0 %v7643_v32 }
0x137a   : > { %7971 = vmatpush2.msra.mxu0 %v7642_v0  ;;  %v5601_v53 = vpop.f32.mrf.mxu1 }
0x137b   : > { %7972 = vmatprep.subr.mxu0 %v7641_v33  ;;  %v5825_v22 = vcombine.low %v5599_v50, %v5601_v53 }
0x137c   : > { %7973 = vmatpush2.msra.mxu0 %v7640_v34  ;;  %v5149_v34 = vcombine.low %v5063_v39, %v5065_v57 }
0x137d   : > { %7974 = vmatprep.subr.mxu0 %v7639_v35  ;;  %v5833_v35 = vadd.f32 %v5825_v22, %v5494_v31  ;;  %v7694_v31 = vld [vmem:[#allocation5 + $0x4f0] sm:$0xff] }
0x137e   : > { %7975 = vmatpush2.msra.mxu0 %v7638_v61 }
0x137f   : > { %7976 = vmatprep.subr.mxu0 %v7637_v37  ;;  %v10865_v51 = vpop.f32.mrf.mxu0  ;;  %v4818_v37 = vld [vmem:[%s11137_s12 + $0x10] sm:$0x77] }
0x1380   : > { %7977 = vmatpush2.msra.mxu0 %v7636_v24 }
0x1381   : > { %7978 = vmatprep.subr.mxu0 %v7635_v41  ;;  %v10867_v59 = vpop.f32.mrf.mxu0 }
0x1382   : > { %7979 = vmatpush2.msra.mxu0 %v7634_v36  ;;  %v10863_v55 = vpop.f32.mrf.mxu1 }
0x1383   : > { %7980 = vmatprep.subr.mxu0 %v7633_v6 }
0x1384   : > { %7981 = vmatpush2.msra.mxu0 %v7632_v42  ;;  %v5743_v56 = vpop.f32.mrf.mxu1  ;;  %v5157_v42 = vadd.f32 %v5149_v34, %v4818_v37 }
0x1385   : > { %8060 = vmatprep.subr.mxu0 %v7759_v43  ;;  %v5827_v50 = vcombine.low %v10863_v55, %v5743_v56 }
0x1389   : > { %v10869_v60 = vpop.f32.mrf.mxu0 }
0x138b   : > { %v10871_v30 = vpop.f32.mrf.mxu0 }
0x138c   : > { %v5938_v7 = vpop.f32.mrf.mxu1 }
0x138e   : > { %v5940_v58 = vpop.f32.mrf.mxu1 }
0x138f   : > { %v6164_v32 = vcombine.low %v5938_v7, %v5940_v58  ;;  %v5496_v7 = vadd.f32 %v5488_v49, %v5157_v42  ;;  %v5148_v49 = vcombine.low %v10859_v17, %v10861_v54  ;;  %v7682_v17 = vld [vmem:[#allocation5 + $0x490] sm:$0xff] }
0x1391   : > { %v6172_v41 = vadd.f32 %v6164_v32, %v5833_v35  ;;  %v7692_v35 = vld [vmem:[#allocation5 + $0x4e0] sm:$0xff] }
0x1393   : > { %v10873_v63 = vpop.f32.mrf.mxu0 }
0x1395   : > { %v10875_v2 = vpop.f32.mrf.mxu0 }
0x1396   : > { %v6080_v23 = vpop.f32.mrf.mxu1 }
0x1398   : > { %v6082_v28 = vpop.f32.mrf.mxu1 }
0x1399   : > { %v6166_v58 = vcombine.low %v6080_v23, %v6082_v28 }
0x139d   : > { %v10877_v46 = vpop.f32.mrf.mxu0 }
0x139f   : > { %v10879_v5 = vpop.f32.mrf.mxu0 }
0x13a0   : > { %v6277_v62 = vpop.f32.mrf.mxu1 }
0x13a2   : > { %v6279_v1 = vpop.f32.mrf.mxu1 }
0x13a3   : > { %v6503_v61 = vcombine.low %v6277_v62, %v6279_v1 }
0x13a5   : > { %v6511_v43 = vadd.f32 %v6503_v61, %v6172_v41  ;;  %v7691_v61 = vld [vmem:[#allocation5 + $0x4d8] sm:$0xff] }
0x13a7   : > { %v10881_v9 = vpop.f32.mrf.mxu0 }
0x13a9   : > { %v10883_v12 = vpop.f32.mrf.mxu0 }
0x13aa   : > { %v6419_v40 = vpop.f32.mrf.mxu1 }
0x13ac   : > { %v6421_v3 = vpop.f32.mrf.mxu1 }
0x13b1   : > { %v10885_v13 = vpop.f32.mrf.mxu0 }
0x13b3   : > { %v10892_v18 = vpop.f32.mrf.mxu0 }
0x13b4   : > { %v6616_v8 = vpop.f32.mrf.mxu1 }
0x13b6   : > { %v6618_v11 = vpop.f32.mrf.mxu1 }
0x13b7   : > { %v6842_v36 = vcombine.low %v6616_v8, %v6618_v11  ;;  %v5835_v8 = vadd.f32 %v5827_v50, %v5496_v7  ;;  %v6505_v11 = vcombine.low %v6419_v40, %v6421_v3  ;;  %v7693_v3 = vld [vmem:[#allocation5 + $0x4e8] sm:$0xff] }
0x13b9   : > { %v6850_v53 = vadd.f32 %v6842_v36, %v6511_v43  ;;  %v6174_v21 = vadd.f32 %v6166_v58, %v5835_v8  ;;  %v7689_v36 = vld [vmem:[#allocation5 + $0x4c8] sm:$0xff]  ;;  %v7687_v43 = vld [vmem:[#allocation5 + $0x4b8] sm:$0xff]  ;;  %v7684_v58 = vld [vmem:[#allocation5 + $0x4a0] sm:$0xff]  ;;  %v5826_v8 = vcombine.low %v10877_v46, %v10879_v5 }
0x13ba   : > { %v7677_v5 = vld [vmem:[#allocation5 + $0x468] sm:$0xff] }
0x13bb   : > { %v10895_v52 = vpop.f32.mrf.mxu0  ;;  %v6513_v56 = vadd.f32 %v6505_v11, %v6174_v21  ;;  %v7681_v11 = vld [vmem:[#allocation5 + $0x488] sm:$0xff]  ;;  %v7680_v21 = vld [vmem:[#allocation5 + $0x480] sm:$0xff] }
0x13bd   : > { %v10897_v0 = vpop.f32.mrf.mxu0 }
0x13be   : > { %v6758_v38 = vpop.f32.mrf.mxu1 }
0x13c0   : > { %v6760_v14 = vpop.f32.mrf.mxu1 }
0x13c1   : > { %v6844_v45 = vcombine.low %v6758_v38, %v6760_v14 }
0x13c3   : > { %v6852_v40 = vadd.f32 %v6844_v45, %v6513_v56  ;;  %v7678_v56 = vld [vmem:[#allocation5 + $0x470] sm:$0xff] }
0x13c5   : > { %v10902_v24 = vpop.f32.mrf.mxu0 }
0x13c7   : > { %v10904_v10 = vpop.f32.mrf.mxu0 }
0x13c8   : > { %v6955_v19 = vpop.f32.mrf.mxu1  ;;  %v6504_v46 = vcombine.low %v10902_v24, %v10904_v10  ;;  %v7674_v24 = vld [vmem:[#allocation5 + $0x450] sm:$0xff] }
0x13ca   : > { %v6957_v27 = vpop.f32.mrf.mxu1 }
0x13cb   : > { %v7181_v44 = vcombine.low %v6955_v19, %v6957_v27  ;;  %v10912_v19 = vsub.s32 4, %v9788_v25 }
0x13cd   : > { %v7189_v62 = vadd.f32 %v7181_v44, %v6850_v53  ;;  %v7685_v53 = vld [vmem:[#allocation5 + $0x4a8] sm:$0xff] }
0x13cf   : > { %v10909_v39 = vpop.f32.mrf.mxu0 }
0x13d1   : > { %v10914_v20 = vpop.f32.mrf.mxu0 }
0x13d2   : > { %v7097_v33 = vpop.f32.mrf.mxu1 }
0x13d4   : > { %v7099_v6 = vpop.f32.mrf.mxu1 }
0x13d5   : > { %v7183_v22 = vcombine.low %v7097_v33, %v7099_v6  ;;  %v7690_v33 = vld [vmem:[#allocation5 + $0x4d0] sm:$0xff]  ;;  %v7688_v6 = vld [vmem:[#allocation5 + $0x4c0] sm:$0xff] }
0x13d7   : > { %v7191_v38 = vadd.f32 %v7183_v22, %v6852_v40  ;;  %v5150_v22 = vcombine.low %v10865_v51, %v10867_v59  ;;  %v7675_v51 = vld [vmem:[#allocation5 + $0x458] sm:$0xff]  ;;  %v5828_v40 = vcombine.low %v10881_v9, %v10883_v12  ;;  %v6506_v9 = vcombine.low %v10909_v39, %v10914_v20  ;;  %v7665_v39 = vld [vmem:[#allocation5 + $0x408] sm:$0xff] }
0x13d9   : > { %v10916_v55 = vpop.f32.mrf.mxu0 }
0x13db   : > { %v10920_v32 = vpop.f32.mrf.mxu0 }
0x13dc   : > { %v7294_v47 = vpop.f32.mrf.mxu1 }
0x13de   : > { %v7296_v57 = vpop.f32.mrf.mxu1 }
0x13df   : > { %v7520_v1 = vcombine.low %v7294_v47, %v7296_v57  ;;  %v7686_v47 = vld [vmem:[#allocation5 + $0x4b0] sm:$0xff]  ;;  %v4817_v57 = vld [vmem:[%s11137_s12 + $0x8] sm:$0x77] }
0x13e0   : > { %v5156_v54 = vadd.f32 %v5148_v49, %v4817_v57 }
0x13e1   : > { %v7528_v15 = vadd.f32 %v7520_v1, %v7189_v62  ;;  %v5487_v62 = vcombine.low %v10869_v60, %v10871_v30  ;;  %v7683_v1 = vld [vmem:[#allocation5 + $0x498] sm:$0xff] }
0x13e2   : > { %v7679_v60 = vld [vmem:[#allocation5 + $0x478] sm:$0xff] }
0x13e3   : > { %v7532_v48 = vmax.f32 %v7528_v15, 0.0  ;;  %v10922_v37 = vpop.f32.mrf.mxu0  ;;  %v5495_v45 = vadd.f32 %v5487_v62, %v5156_v54  ;;  %v7664_v62 = vld [vmem:[#allocation5 + $0x400] sm:$0xff] }
0x13e5   : > { %v7799_v27 = vrot.slane %v7532_v48, %v9791_v26  ;;  %v7803_v23 = vrot.slane %v7532_v48, %v10912_v19  ;;  %v10927_v44 = vpop.f32.mrf.mxu0  ;;  %v6165_v48 = vcombine.low %v10885_v13, %v10892_v18  ;;  %v7676_v13 = vld [vmem:[#allocation5 + $0x460] sm:$0xff]  ;;  %v5489_v18 = vcombine.low %v10873_v63, %v10875_v2 }
0x13e6   : > { %v7436_v28 = vpop.f32.mrf.mxu1  ;;  %v7672_v63 = vld [vmem:[#allocation5 + $0x440] sm:$0xff] }
0x13e7   : > { %7911 = vmatprep.mubr.f32.mxu1 %v7803_v23  ;;  %v4819_v23 = vld [vmem:[%s11137_s12 + $0x18] sm:$0x77] }
0x13e8   : > { %v7438_v34 = vpop.f32.mrf.mxu1  ;;  %7912 = vmatmul.mubr.f32.vlgmr.msra.gmra.mxu1 %v7799_v27  ;;  %v5834_v27 = vadd.f32 %v5826_v8, %v5495_v45  ;;  %v5158_v10 = vadd.f32 %v5150_v22, %v4819_v23  ;;  %v7758_v8 = vld [vmem:[#allocation5 + $0x6f0] sm:$0xff]  ;;  %v7757_v45 = vld [vmem:[#allocation5 + $0x6e8] sm:$0xff]  ;;  %v7755_v22 = vld [vmem:[#allocation5 + $0x6d8] sm:$0xff] }
0x13e9   : > { %v7522_v14 = vcombine.low %v7436_v28, %v7438_v34  ;;  %7990 = vmatpush1.msra.mxu1 %v7694_v31  ;;  %v6843_v31 = vcombine.low %v10916_v55, %v10920_v32  ;;  %v6167_v55 = vcombine.low %v10895_v52, %v10897_v0  ;;  %v6845_v52 = vcombine.low %v10922_v37, %v10927_v44  ;;  %v7727_v44 = vld [vmem:[#allocation5 + $0x5f8] sm:$0xff] }
0x13ea   : > { %7991 = vmatprep.subr.mxu1 %v7693_v3  ;;  %v6173_v28 = vadd.f32 %v6165_v48, %v5834_v27  ;;  %v5497_v2 = vadd.f32 %v5489_v18, %v5158_v10  ;;  %v7725_v48 = vld [vmem:[#allocation5 + $0x5e8] sm:$0xff]  ;;  %v7723_v27 = vld [vmem:[#allocation5 + $0x5d8] sm:$0xff] }
0x13eb   : > { %v10924_v41 = vadd.f32 %v7522_v14, %v7191_v38  ;;  %7992 = vmatpush1.msra.mxu1 %v7692_v35  ;;  %v7673_v35 = vld [vmem:[#allocation5 + $0x448] sm:$0xff]  ;;  %v7671_v14 = vld [vmem:[#allocation5 + $0x438] sm:$0xff] }
0x13ec   : > { %7993 = vmatprep.subr.mxu1 %v7691_v61  ;;  %v7026_v7 = vpop.f32.mrf.mxu0  ;;  %v6512_v3 = vadd.f32 %v6504_v46, %v6173_v28  ;;  %v7754_v46 = vld [vmem:[#allocation5 + $0x6d0] sm:$0xff]  ;;  %v7721_v18 = vld [vmem:[#allocation5 + $0x5c8] sm:$0xff]  ;;  %v7752_v28 = vld [vmem:[#allocation5 + $0x6c0] sm:$0xff] }
0x13ed   : > { %v7534_v42 = vmax.f32 %v10924_v41, 0.0  ;;  %7994 = vmatpush1.msra.mxu1 %v7690_v33  ;;  %v7670_v33 = vld [vmem:[#allocation5 + $0x430] sm:$0xff]  ;;  %v7719_v10 = vld [vmem:[#allocation5 + $0x5b8] sm:$0xff] }
0x13ee   : > { %7995 = vmatprep.subr.mxu1 %v7689_v36  ;;  %v7028_v15 = vpop.f32.mrf.mxu0  ;;  %v6851_v32 = vadd.f32 %v6843_v31, %v6512_v3  ;;  %v5836_v36 = vadd.f32 %v5828_v40, %v5497_v2  ;;  %v7751_v31 = vld [vmem:[#allocation5 + $0x6b8] sm:$0xff]  ;;  %v7749_v40 = vld [vmem:[#allocation5 + $0x6a8] sm:$0xff]  ;;  %v7718_v3 = vld [vmem:[#allocation5 + $0x5b0] sm:$0xff] }
0x13ef   : > { %7996 = vmatpush1.msra.mxu1 %v7688_v6  ;;  %v7819_v50 = vrot.slane %v7534_v42, %v10912_v19  ;;  %v7182_v34 = vcombine.low %v7026_v7, %v7028_v15  ;;  %v7715_v2 = vld [vmem:[#allocation5 + $0x598] sm:$0xff]  ;;  %v7782_v41 = vld [vmem:[#allocation5 + $0x7b0] sm:$0xff] }
0x13f0   : > { %7997 = vmatprep.subr.mxu1 %v7687_v43  ;;  %v7669_v43 = vld [vmem:[#allocation5 + $0x428] sm:$0xff]  ;;  %v6175_v49 = vadd.f32 %v6167_v55, %v5836_v36  ;;  %v7712_v36 = vld [vmem:[#allocation5 + $0x580] sm:$0xff] }
0x13f1   : > { %8053 = vmatprep.mubr.f32.mxu1 %v7819_v50  ;;  %7998 = vmatpush1.msra.mxu1 %v7686_v47  ;;  %v7190_v12 = vadd.f32 %v7182_v34, %v6851_v32  ;;  %v7668_v47 = vld [vmem:[#allocation5 + $0x420] sm:$0xff]  ;;  %v7667_v50 = vld [vmem:[#allocation5 + $0x418] sm:$0xff]  ;;  %v7745_v55 = vld [vmem:[#allocation5 + $0x688] sm:$0xff] }
0x13f2   : > { %7999 = vmatprep.subr.mxu1 %v7685_v53  ;;  %v7666_v53 = vld [vmem:[#allocation5 + $0x410] sm:$0xff]  ;;  %v6514_v57 = vadd.f32 %v6506_v9, %v6175_v49  ;;  %v7748_v34 = vld [vmem:[#allocation5 + $0x6a0] sm:$0xff]  ;;  %v7709_v49 = vld [vmem:[#allocation5 + $0x568] sm:$0xff] }
0x13f3   : > { %8000 = vmatpush1.msra.mxu1 %v7684_v58  ;;  %v7714_v32 = vld [vmem:[#allocation5 + $0x590] sm:$0xff] }
0x13f4   : > { %8001 = vmatprep.subr.mxu1 %v7683_v1  ;;  %v10943_v30 = vpop.f32.mrf.mxu0  ;;  %v6853_v1 = vadd.f32 %v6845_v52, %v6514_v57  ;;  %v7742_v9 = vld [vmem:[#allocation5 + $0x670] sm:$0xff]  ;;  %v7739_v52 = vld [vmem:[#allocation5 + $0x658] sm:$0xff]  ;;  %v7737_v57 = vld [vmem:[#allocation5 + $0x648] sm:$0xff] }
0x13f5   : > { %8002 = vmatpush1.msra.mxu1 %v7682_v17 }
0x13f6   : > { %8003 = vmatprep.subr.mxu1 %v7681_v11  ;;  %v7170_v59 = vpop.f32.mrf.mxu0  ;;  %v7726_v11 = vld [vmem:[#allocation5 + $0x5f0] sm:$0xff] }
0x13f7   : > { %8004 = vmatpush1.msra.mxu1 %v7680_v21  ;;  %v7184_v7 = vcombine.low %v10943_v30, %v7170_v59  ;;  %v7724_v30 = vld [vmem:[#allocation5 + $0x5e0] sm:$0xff] }
0x13f8   : > { %8005 = vmatprep.subr.mxu1 %v7679_v60  ;;  %v7756_v60 = vld [vmem:[#allocation5 + $0x6e0] sm:$0xff] }
0x13f9   : > { %8006 = vmatpush1.msra.mxu1 %v7678_v56  ;;  %v7192_v15 = vadd.f32 %v7184_v7, %v6853_v1  ;;  %v7720_v59 = vld [vmem:[#allocation5 + $0x5c0] sm:$0xff]  ;;  %v7706_v7 = vld [vmem:[#allocation5 + $0x550] sm:$0xff] }
0x13fa   : > { %8007 = vmatprep.subr.mxu1 %v7677_v5  ;;  %v7722_v5 = vld [vmem:[#allocation5 + $0x5d0] sm:$0xff] }
0x13fb   : > { %8008 = vmatpush1.msra.mxu1 %v7676_v13  ;;  %v7753_v13 = vld [vmem:[#allocation5 + $0x6c8] sm:$0xff]  ;;  %v7734_v1 = vld [vmem:[#allocation5 + $0x630] sm:$0xff] }
0x13fc   : > { %v7365_v38 = vpop.f32.mrf.mxu0  ;;  %8009 = vmatprep.subr.mxu1 %v7675_v51 }
0x13fd   : > { %8010 = vmatpush1.msra.mxu1 %v7674_v24  ;;  %v7750_v24 = vld [vmem:[#allocation5 + $0x6b0] sm:$0xff] }
0x13fe   : > { %v7367_v61 = vpop.f32.mrf.mxu0  ;;  %8011 = vmatprep.subr.mxu1 %v7673_v35  ;;  %v7717_v35 = vld [vmem:[#allocation5 + $0x5a8] sm:$0xff] }
0x13ff   : > { %v7521_v6 = vcombine.low %v7365_v38, %v7367_v61  ;;  %8012 = vmatpush1.msra.mxu1 %v7672_v63  ;;  %v7747_v38 = vld [vmem:[#allocation5 + $0x698] sm:$0xff]  ;;  %v7716_v63 = vld [vmem:[#allocation5 + $0x5a0] sm:$0xff]  ;;  %v7713_v61 = vld [vmem:[#allocation5 + $0x588] sm:$0xff] }
0x1400   : > { %8013 = vmatprep.subr.mxu1 %v7671_v14  ;;  %v7744_v14 = vld [vmem:[#allocation5 + $0x680] sm:$0xff] }
0x1401   : > { %v7529_v0 = vadd.f32 %v7521_v6, %v7190_v12  ;;  %8014 = vmatpush1.msra.mxu1 %v7670_v33  ;;  %v7743_v33 = vld [vmem:[#allocation5 + $0x678] sm:$0xff]  ;;  %v7741_v6 = vld [vmem:[#allocation5 + $0x668] sm:$0xff] }
0x1402   : > { %8015 = vmatprep.subr.mxu1 %v7669_v43  ;;  %v7711_v12 = vld [vmem:[#allocation5 + $0x578] sm:$0xff]  ;;  %v7710_v43 = vld [vmem:[#allocation5 + $0x570] sm:$0xff] }
0x1403   : > { %v7533_v58 = vmax.f32 %v7529_v0, 0.0  ;;  %8016 = vmatpush1.msra.mxu1 %v7668_v47  ;;  %v7740_v47 = vld [vmem:[#allocation5 + $0x660] sm:$0xff] }
0x1404   : > { %v7507_v20 = vpop.f32.mrf.mxu0  ;;  %8017 = vmatprep.subr.mxu1 %v7667_v50  ;;  %v7708_v0 = vld [vmem:[#allocation5 + $0x560] sm:$0xff]  ;;  %v7738_v50 = vld [vmem:[#allocation5 + $0x650] sm:$0xff] }
0x1405   : > { %v7807_v17 = vrot.slane %v7533_v58, %v9791_v26  ;;  %8018 = vmatpush1.msra.mxu1 %v7666_v53  ;;  %v7811_v37 = vrot.slane %v7533_v58, %v10912_v19  ;;  %v7707_v53 = vld [vmem:[#allocation5 + $0x558] sm:$0xff]  ;;  %v7736_v58 = vld [vmem:[#allocation5 + $0x640] sm:$0xff] }
0x1406   : > { %v7509_v54 = vpop.f32.mrf.mxu0  ;;  %8019 = vmatprep.subr.mxu1 %v7665_v39  ;;  %v7705_v39 = vld [vmem:[#allocation5 + $0x548] sm:$0xff] }
0x1407   : > { %v7523_v21 = vcombine.low %v7507_v20, %v7509_v54  ;;  %7982 = vmatprep.mubr.f32.mxu0 %v7811_v37  ;;  %8020 = vmatpush1.msra.mxu1 %v7664_v62  ;;  %v7735_v20 = vld [vmem:[#allocation5 + $0x638] sm:$0xff]  ;;  %v7704_v62 = vld [vmem:[#allocation5 + $0x540] sm:$0xff]  ;;  %v7733_v37 = vld [vmem:[#allocation5 + $0x628] sm:$0xff] }
0x1408   : > { %7983 = vmatmul.mubr.f32.vlgmr.msra.gmra.mxu0 %v7807_v17  ;;  %8021 = vmatprep.subr.mxu1 %v7727_v44  ;;  %v7703_v17 = vld [vmem:[#allocation5 + $0x538] sm:$0xff]  ;;  %v7702_v44 = vld [vmem:[#allocation5 + $0x530] sm:$0xff]  ;;  %v7732_v54 = vld [vmem:[#allocation5 + $0x620] sm:$0xff] }
0x1409   : > { %v10967_v56 = vadd.f32 %v7523_v21, %v7192_v15  ;;  %8061 = vmatpush1.msra.mxu0 %v7758_v8  ;;  %8022 = vmatpush2.msra.mxu1 %v7726_v11  ;;  %v7701_v8 = vld [vmem:[#allocation5 + $0x528] sm:$0xff]  ;;  %v7731_v11 = vld [vmem:[#allocation5 + $0x618] sm:$0xff]  ;;  %v7700_v15 = vld [vmem:[#allocation5 + $0x520] sm:$0xff] }
0x140a   : > { %8062 = vmatprep.subr.mxu0 %v7757_v45  ;;  %8023 = vmatprep.subr.mxu1 %v7725_v48  ;;  %v7730_v21 = vld [vmem:[#allocation5 + $0x610] sm:$0xff]  ;;  %v7699_v45 = vld [vmem:[#allocation5 + $0x518] sm:$0xff]  ;;  %v7729_v48 = vld [vmem:[#allocation5 + $0x608] sm:$0xff] }
0x140b   : > { %v7535_v23 = vmax.f32 %v10967_v56, 0.0  ;;  %8063 = vmatpush1.msra.mxu0 %v7756_v60  ;;  %8024 = vmatpush2.msra.mxu1 %v7724_v30  ;;  %v7698_v60 = vld [vmem:[#allocation5 + $0x510] sm:$0xff]  ;;  %v7728_v30 = vld [vmem:[#allocation5 + $0x600] sm:$0xff]  ;;  %v8160_v56 = vld [vmem:[%s11136_s11 + $0xe8] sm:$0xff] }
0x140c   : > { %8064 = vmatprep.subr.mxu0 %v7755_v22  ;;  %8025 = vmatprep.subr.mxu1 %v7723_v27  ;;  %v7697_v22 = vld [vmem:[#allocation5 + $0x508] sm:$0xff]  ;;  %v7791_v27 = vld [vmem:[#allocation5 + $0x7f8] sm:$0xff] }
0x140d   : > { %8065 = vmatpush1.msra.mxu0 %v7754_v46  ;;  %8026 = vmatpush2.msra.mxu1 %v7722_v5  ;;  %v7827_v51 = vrot.slane %v7535_v23, %v10912_v19  ;;  %v7746_v19 = vld [vmem:[#allocation5 + $0x690] sm:$0xff]  ;;  %v7696_v46 = vld [vmem:[#allocation5 + $0x500] sm:$0xff] }
0x140e   : > { %8066 = vmatprep.subr.mxu0 %v7753_v13  ;;  %8027 = vmatprep.subr.mxu1 %v7721_v18  ;;  %v7790_v5 = vld [vmem:[#allocation5 + $0x7f0] sm:$0xff]  ;;  %v7815_v13 = vrot.slane %v7534_v42, %v9791_v26  ;;  %v7789_v18 = vld [vmem:[#allocation5 + $0x7e8] sm:$0xff] }
0x140f   : > { %8067 = vmatpush1.msra.mxu0 %v7752_v28  ;;  %8124 = vmatprep.mubr.f32.mxu0 %v7827_v51  ;;  %v7788_v28 = vld [vmem:[#allocation5 + $0x7e0] sm:$0xff]  ;;  %v7786_v51 = vld [vmem:[#allocation5 + $0x7d0] sm:$0xff]  ;;  %v7781_v42 = vld [vmem:[#allocation5 + $0x7a8] sm:$0xff] }
0x1410   : > { %8068 = vmatprep.subr.mxu0 %v7751_v31  ;;  %8028 = vmatpush2.msra.mxu1 %v7720_v59  ;;  %v7787_v31 = vld [vmem:[#allocation5 + $0x7d8] sm:$0xff]  ;;  %v7785_v59 = vld [vmem:[#allocation5 + $0x7c8] sm:$0xff] }
0x1411   : > { %8069 = vmatpush1.msra.mxu0 %v7750_v24  ;;  %8029 = vmatprep.subr.mxu1 %v7719_v10  ;;  %v7784_v24 = vld [vmem:[#allocation5 + $0x7c0] sm:$0xff]  ;;  %v7783_v10 = vld [vmem:[#allocation5 + $0x7b8] sm:$0xff] }
0x1412   : > { %8070 = vmatprep.subr.mxu0 %v7749_v40  ;;  %8030 = vmatpush2.msra.mxu1 %v7718_v3  ;;  %v7780_v40 = vld [vmem:[#allocation5 + $0x7a0] sm:$0xff]  ;;  %v7779_v3 = vld [vmem:[#allocation5 + $0x798] sm:$0xff] }
0x1413   : > { %8071 = vmatpush1.msra.mxu0 %v7748_v34  ;;  %8031 = vmatprep.subr.mxu1 %v7717_v35  ;;  %v7778_v34 = vld [vmem:[#allocation5 + $0x790] sm:$0xff]  ;;  %v7777_v35 = vld [vmem:[#allocation5 + $0x788] sm:$0xff] }
0x1414   : > { %8072 = vmatprep.subr.mxu0 %v7747_v38  ;;  %8032 = vmatpush2.msra.mxu1 %v7716_v63  ;;  %v7776_v38 = vld [vmem:[#allocation5 + $0x780] sm:$0xff]  ;;  %v7775_v63 = vld [vmem:[#allocation5 + $0x778] sm:$0xff] }
0x1415   : > { %8073 = vmatpush1.msra.mxu0 %v7746_v19  ;;  %8033 = vmatprep.subr.mxu1 %v7715_v2  ;;  %v7774_v19 = vld [vmem:[#allocation5 + $0x770] sm:$0xff]  ;;  %v7773_v2 = vld [vmem:[#allocation5 + $0x768] sm:$0xff] }
0x1416   : > { %8074 = vmatprep.subr.mxu0 %v7745_v55  ;;  %8034 = vmatpush2.msra.mxu1 %v7714_v32  ;;  %v7772_v55 = vld [vmem:[#allocation5 + $0x760] sm:$0xff]  ;;  %v7771_v32 = vld [vmem:[#allocation5 + $0x758] sm:$0xff] }
0x1417   : > { %8075 = vmatpush1.msra.mxu0 %v7744_v14  ;;  %8035 = vmatprep.subr.mxu1 %v7713_v61  ;;  %v7770_v14 = vld [vmem:[#allocation5 + $0x750] sm:$0xff]  ;;  %v7769_v61 = vld [vmem:[#allocation5 + $0x748] sm:$0xff] }
0x1418   : > { %8076 = vmatprep.subr.mxu0 %v7743_v33  ;;  %8036 = vmatpush2.msra.mxu1 %v7712_v36  ;;  %v7768_v33 = vld [vmem:[#allocation5 + $0x740] sm:$0xff]  ;;  %v7767_v36 = vld [vmem:[#allocation5 + $0x738] sm:$0xff] }
0x1419   : > { %8077 = vmatpush1.msra.mxu0 %v7742_v9  ;;  %8037 = vmatprep.subr.mxu1 %v7711_v12  ;;  %v7766_v9 = vld [vmem:[#allocation5 + $0x730] sm:$0xff]  ;;  %v7765_v12 = vld [vmem:[#allocation5 + $0x728] sm:$0xff] }
0x141a   : > { %8078 = vmatprep.subr.mxu0 %v7741_v6  ;;  %8038 = vmatpush2.msra.mxu1 %v7710_v43  ;;  %v7764_v6 = vld [vmem:[#allocation5 + $0x720] sm:$0xff]  ;;  %v7763_v43 = vld [vmem:[#allocation5 + $0x718] sm:$0xff] }
0x141b   : > { %8079 = vmatpush1.msra.mxu0 %v7740_v47  ;;  %8039 = vmatprep.subr.mxu1 %v7709_v49  ;;  %v7762_v47 = vld [vmem:[#allocation5 + $0x710] sm:$0xff]  ;;  %v7761_v49 = vld [vmem:[#allocation5 + $0x708] sm:$0xff] }
0x141c   : > { %8080 = vmatprep.subr.mxu0 %v7739_v52  ;;  %8040 = vmatpush2.msra.mxu1 %v7708_v0  ;;  %v7760_v52 = vld [vmem:[#allocation5 + $0x700] sm:$0xff]  ;;  %v7823_v0 = vrot.slane %v7535_v23, %v9791_v26  ;;  %v8145_v26 = vld [vmem:[%s11136_s11 + $0x70] sm:$0xff]  ;;  %v8144_v23 = vld [vmem:[%s11136_s11 + $0x68] sm:$0xff] }
0x141d   : > { %8081 = vmatpush1.msra.mxu0 %v7738_v50  ;;  %8041 = vmatprep.subr.mxu1 %v7707_v53  ;;  %v8162_v50 = vld [vmem:[%s11136_s11 + $0xf8] sm:$0xff] }
0x141e   : > { %8082 = vmatprep.subr.mxu0 %v7737_v57  ;;  %8042 = vmatpush2.msra.mxu1 %v7706_v7  ;;  %v8146_v53 = vld [vmem:[%s11136_s11 + $0x78] sm:$0xff]  ;;  %v8161_v57 = vld [vmem:[%s11136_s11 + $0xf0] sm:$0xff]  ;;  %v8159_v7 = vld [vmem:[%s11136_s11 + $0xe0] sm:$0xff] }
0x141f   : > { %8083 = vmatpush1.msra.mxu0 %v7736_v58  ;;  %8043 = vmatprep.subr.mxu1 %v7705_v39  ;;  %v8143_v58 = vld [vmem:[%s11136_s11 + $0x60] sm:$0xff]  ;;  %v8158_v39 = vld [vmem:[%s11136_s11 + $0xd8] sm:$0xff] }
0x1420   : > { %8084 = vmatprep.subr.mxu0 %v7735_v20  ;;  %8044 = vmatpush2.msra.mxu1 %v7704_v62  ;;  %v8142_v20 = vld [vmem:[%s11136_s11 + $0x58] sm:$0xff]  ;;  %v8157_v62 = vld [vmem:[%s11136_s11 + $0xd0] sm:$0xff] }
0x1421   : > { %8085 = vmatpush1.msra.mxu0 %v7734_v1  ;;  %8045 = vmatprep.subr.mxu1 %v7703_v17  ;;  %v8141_v1 = vld [vmem:[%s11136_s11 + $0x50] sm:$0xff]  ;;  %v8156_v17 = vld [vmem:[%s11136_s11 + $0xc8] sm:$0xff] }
0x1422   : > { %8086 = vmatprep.subr.mxu0 %v7733_v37  ;;  %8046 = vmatpush2.msra.mxu1 %v7702_v44  ;;  %v8140_v37 = vld [vmem:[%s11136_s11 + $0x48] sm:$0xff]  ;;  %v8155_v44 = vld [vmem:[%s11136_s11 + $0xc0] sm:$0xff] }
0x1423   : > { %8087 = vmatpush1.msra.mxu0 %v7732_v54  ;;  %8047 = vmatprep.subr.mxu1 %v7701_v8  ;;  %v8139_v54 = vld [vmem:[%s11136_s11 + $0x40] sm:$0xff]  ;;  %v8154_v8 = vld [vmem:[%s11136_s11 + $0xb8] sm:$0xff] }
0x1424   : > { %8088 = vmatprep.subr.mxu0 %v7731_v11  ;;  %8048 = vmatpush2.msra.mxu1 %v7700_v15  ;;  %v8138_v11 = vld [vmem:[%s11136_s11 + $0x38] sm:$0xff]  ;;  %v8153_v15 = vld [vmem:[%s11136_s11 + $0xb0] sm:$0xff] }
0x1425   : > { %8089 = vmatpush1.msra.mxu0 %v7730_v21  ;;  %8049 = vmatprep.subr.mxu1 %v7699_v45  ;;  %v8137_v21 = vld [vmem:[%s11136_s11 + $0x30] sm:$0xff]  ;;  %v8152_v45 = vld [vmem:[%s11136_s11 + $0xa8] sm:$0xff] }
0x1426   : > { %8090 = vmatprep.subr.mxu0 %v7729_v48  ;;  %8050 = vmatpush2.msra.mxu1 %v7698_v60  ;;  %v8136_v48 = vld [vmem:[%s11136_s11 + $0x28] sm:$0xff]  ;;  %v8151_v60 = vld [vmem:[%s11136_s11 + $0xa0] sm:$0xff] }
0x1427   : > { %8091 = vmatpush1.msra.mxu0 %v7728_v30  ;;  %8051 = vmatprep.subr.mxu1 %v7697_v22  ;;  %v8135_v30 = vld [vmem:[%s11136_s11 + $0x20] sm:$0xff]  ;;  %v8150_v22 = vld [vmem:[%s11136_s11 + $0x98] sm:$0xff] }
0x1428   : > { %8092 = vmatprep.subr.mxu0 %v7791_v27  ;;  %8052 = vmatpush2.msra.mxu1 %v7696_v46  ;;  %v8134_v27 = vld [vmem:[%s11136_s11 + $0x18] sm:$0xff]  ;;  %v8149_v46 = vld [vmem:[%s11136_s11 + $0x90] sm:$0xff] }
0x1429   : > { %8093 = vmatpush2.msra.mxu0 %v7790_v5  ;;  %8054 = vmatmul.mubr.f32.vlgmr.msra.gmra.mxu1 %v7815_v13  ;;  %v8133_v5 = vld [vmem:[%s11136_s11 + $0x10] sm:$0xff]  ;;  %v8148_v13 = vld [vmem:[%s11136_s11 + $0x88] sm:$0xff] }
0x142a   : > { %8094 = vmatprep.subr.mxu0 %v7789_v18  ;;  %8804 = vmatprep.subr.mxu1 %v8162_v50  ;;  %v8132_v18 = vld [vmem:[%s11136_s11 + $0x8] sm:$0xff] }
0x142b   : > { %8095 = vmatpush2.msra.mxu0 %v7788_v28  ;;  %8805 = vmatpush3.msra.mxu1 %v8146_v53  ;;  %v8147_v28 = vld [vmem:[%s11136_s11 + $0x80] sm:$0xff] }
0x142c   : > { %8096 = vmatprep.subr.mxu0 %v7787_v31  ;;  %8806 = vmatprep.subr.mxu1 %v8161_v57  ;;  %v8131_v31 = vld [vmem:[%s11136_s11] sm:$0xff] }
0x142d   : > { %8097 = vmatpush2.msra.mxu0 %v7786_v51  ;;  %8807 = vmatpush3.msra.mxu1 %v8145_v26 }
0x142e   : > { %8098 = vmatprep.subr.mxu0 %v7785_v59  ;;  %8808 = vmatprep.subr.mxu1 %v8160_v56  ;;  %v7843_v59 = vsub.s32 5, %v9788_v25 }
0x142f   : > { %8099 = vmatpush2.msra.mxu0 %v7784_v24  ;;  %8809 = vmatpush3.msra.mxu1 %v8144_v23 }
0x1430   : > { %8100 = vmatprep.subr.mxu0 %v7783_v10  ;;  %8810 = vmatprep.subr.mxu1 %v8159_v7 }
0x1431   : > { %8101 = vmatpush2.msra.mxu0 %v7782_v41  ;;  %8811 = vmatpush3.msra.mxu1 %v8143_v58  ;;  %v7844_v41 = vrot.slane %v10890_v16, %v7843_v59 }
0x1432   : > { %8102 = vmatprep.subr.mxu0 %v7781_v42  ;;  %8812 = vmatprep.subr.mxu1 %v8158_v39  ;;  %v7840_v42 = vrot.slane %v10890_v16, %v9800_v29 }
0x1433   : > { %8103 = vmatpush2.msra.mxu0 %v7780_v40  ;;  %8813 = vmatpush3.msra.mxu1 %v8142_v20 }
0x1434   : > { %8104 = vmatprep.subr.mxu0 %v7779_v3  ;;  %8814 = vmatprep.subr.mxu1 %v8157_v62 }
0x1435   : > { %8105 = vmatpush2.msra.mxu0 %v7778_v34  ;;  %8815 = vmatpush3.msra.mxu1 %v8141_v1 }
0x1436   : > { %8106 = vmatprep.subr.mxu0 %v7777_v35  ;;  %8816 = vmatprep.subr.mxu1 %v8156_v17 }
0x1437   : > { %8107 = vmatpush2.msra.mxu0 %v7776_v38  ;;  %8817 = vmatpush3.msra.mxu1 %v8140_v37 }
0x1438   : > { %8108 = vmatprep.subr.mxu0 %v7775_v63  ;;  %8818 = vmatprep.subr.mxu1 %v8155_v44 }
0x1439   : > { %8109 = vmatpush2.msra.mxu0 %v7774_v19  ;;  %8819 = vmatpush3.msra.mxu1 %v8139_v54 }
0x143a   : > { %8110 = vmatprep.subr.mxu0 %v7773_v2  ;;  %8820 = vmatprep.subr.mxu1 %v8154_v8 }
0x143b   : > { %8111 = vmatpush2.msra.mxu0 %v7772_v55  ;;  %8821 = vmatpush3.msra.mxu1 %v8138_v11 }
0x143c   : > { %8112 = vmatprep.subr.mxu0 %v7771_v32  ;;  %8822 = vmatprep.subr.mxu1 %v8153_v15 }
0x143d   : > { %8113 = vmatpush2.msra.mxu0 %v7770_v14  ;;  %8823 = vmatpush3.msra.mxu1 %v8137_v21 }
0x143e   : > { %8114 = vmatprep.subr.mxu0 %v7769_v61  ;;  %8824 = vmatprep.subr.mxu1 %v8152_v45 }
0x143f   : > { %8115 = vmatpush2.msra.mxu0 %v7768_v33  ;;  %8825 = vmatpush3.msra.mxu1 %v8136_v48 }
0x1440   : > { %8116 = vmatprep.subr.mxu0 %v7767_v36  ;;  %8826 = vmatprep.subr.mxu1 %v8151_v60  ;;  %v8166_v36 = vrot.slane %v10890_v16, %v10241_v4 }
0x1441   : > { %8117 = vmatpush2.msra.mxu0 %v7766_v9  ;;  %8827 = vmatpush3.msra.mxu1 %v8135_v30 }
0x1442   : > { %8118 = vmatprep.subr.mxu0 %v7765_v12  ;;  %8828 = vmatprep.subr.mxu1 %v8150_v22 }
0x1443   : > { %8119 = vmatpush2.msra.mxu0 %v7764_v6  ;;  %8829 = vmatpush3.msra.mxu1 %v8134_v27 }
0x1444   : > { %8120 = vmatprep.subr.mxu0 %v7763_v43  ;;  %8830 = vmatprep.subr.mxu1 %v8149_v46 }
0x1445   : > { %8121 = vmatpush2.msra.mxu0 %v7762_v47  ;;  %8831 = vmatpush3.msra.mxu1 %v8133_v5 }
0x1446   : > { %8122 = vmatprep.subr.mxu0 %v7761_v49  ;;  %8832 = vmatprep.subr.mxu1 %v8148_v13 }
0x1447   : > { %8123 = vmatpush2.msra.mxu0 %v7760_v52  ;;  %8833 = vmatpush3.msra.mxu1 %v8132_v18 }
0x1448   : > { %8125 = vmatmul.mubr.f32.vlgmr.msra.gmra.mxu0 %v7823_v0  ;;  %8834 = vmatprep.subr.mxu1 %v8147_v28 }
0x1449   : > { %8835 = vmatpush3.msra.mxu1 %v8131_v31 }
0x14a8   : > { %v7913_v51 = vpop.f32.mrf.mxu1 }
0x14a9   : > { %v7914_v35 = vadd.f32 %v7913_v51, %v7840_v42 }
0x14aa   : > { %v7915_v24 = vpop.f32.mrf.mxu1 }
0x14ab   : > { %v7916_v34 = vadd.f32 %v7915_v24, %v7844_v41 }
0x14c8   : > { %v7984_v10 = vpop.f32.mrf.mxu0 }
0x14c9   : > { %v7985_v19 = vadd.f32 %v7984_v10, %v7914_v35 }
0x14ca   : > { %v7986_v3 = vpop.f32.mrf.mxu0 }
0x14cb   : > { %v7987_v63 = vadd.f32 %v7986_v3, %v7916_v34 }
0x14e9   : > { %v8055_v40 = vpop.f32.mrf.mxu1 }
0x14ea   : > { %v8056_v32 = vadd.f32 %v8055_v40, %v7985_v19 }
0x14eb   : > { %v8057_v38 = vpop.f32.mrf.mxu1 }
0x14ec   : > { %v8058_v55 = vadd.f32 %v8057_v38, %v7987_v63 }
0x1508   : > { %v8126_v2 = vpop.f32.mrf.mxu0 }
0x1509   : > { %v8127_v25 = vadd.f32 %v8126_v2, %v8056_v32 }
0x150a   : > { %v8128_v14 = vpop.f32.mrf.mxu0 }
0x150b   : > { %v8129_v61 = vadd.f32 %v8128_v14, %v8058_v55 }
0x150d   : > { %8232 = vmatprep.mubr.f32.mxu1 %v8129_v61 }
0x150e   : > { %8233 = vmatmul.mubr.f32.vlgmr.msra.gmra.mxu1 %v8127_v25 }
0x15ce   : > { %v8836_v33 = vpop.f32.mrf.mxu1 }
0x15d0   : > { %v8837_v29 = vpop.f32.mrf.mxu1 }
0x15d1   : > { %v8838_v9 = vadd.f32 %v8837_v29, %v8836_v33 }
0x15d3   : > { %v8235_v12 = vadd.f32 %v8838_v9, %v8166_v36 }
0x15d5   : > { %v8267_v6 = vsel %vm8266_vm13, %v8235_v12, -inf  ;;  %v8251_v43 = vsel %vm8250_vm14, %v8235_v12, -inf  ;;  %v8239_v47 = vsel %vm8238_vm15, %v8235_v12, -inf }
0x15d6   : > { %8268 = vmax.xlane.f32.xlu1 %v8267_v6  ;;  %8252 = vmax.xlane.f32.xlu0 %v8251_v43 }
0x15da   : > { %8240 = vmax.xlane.f32.xlu0 %v8239_v47 }
0x165f   : > { %v8269_v49 = vpop.xlane.xlu1 %8268  ;;  %v8253_v52 = vpop.xlane.xlu0 %8252 }
0x1660   : > { %v8270_v0 = vsub.f32 %v8235_v12, %v8269_v49  ;;  %v8254_v50 = vsub.f32 %v8235_v12, %v8253_v52 }
0x1662   : > { %v8271_v53 = vmul.f32 1.442695, %v8270_v0  ;;  %v8255_v57 = vmul.f32 1.442695, %v8254_v50 }
0x1663   : > { %v8241_v26 = vpop.xlane.xlu0 %8240 }
0x1664   : > { %9435 = vpow2.f32 %v8271_v53  ;;  %v8242_v56 = vsub.f32 %v8235_v12, %v8241_v26 }
0x1665   : > { %9437 = vpow2.f32 %v8255_v57 }
0x1666   : > { %v8243_v23 = vmul.f32 1.442695, %v8242_v56 }
0x1668   : > { %9439 = vpow2.f32 %v8243_v23 }
0x1671   : > { %v9436_v4 = vpop.eup %9435 }
0x1672   : > { %v9438_v16 = vpop.eup %9437  ;;  %8274 = vrot.lane.b32.xlu0 %v9436_v4, %s9577_s16 }
0x1673   : > { %8258 = vrot.lane.b32.xlu1 %v9438_v16, %s9578_s21 }
0x1675   : > { %v9440_v7 = vpop.eup %9439 }
0x1676   : > { %v8245_v58 = vsel %vm8238_vm15, %v9440_v7, 0.0 }
0x1697   : > { %8246 = vadd.xlane.f32.xlu1 %v8245_v58 }
0x16e4   : > { %v8275_v39 = vpop.permute.xlu0 %8274 }
0x16e5   : > { %v8259_v20 = vpop.permute.xlu1 %8258  ;;  %v8277_v62 = vsel %vm8238_vm15, %v8275_v39, 0.0 }
0x16e6   : > { %v8261_v1 = vsel %vm8238_vm15, %v8259_v20, 0.0  ;;  %8278 = vadd.xlane.f32.xlu1 %v8277_v62 }
0x16e7   : > { %8262 = vadd.xlane.f32.xlu0 %v8261_v1 }
0x1720   : > { %v8247_v17 = vpop.xlane.xlu1 %8246 }
0x1721   : > { %9441 = vrcp.f32 %v8247_v17 }
0x172e   : > { %v9442_v54 = vpop.eup %9441 }
0x172f   : > { %v8249_v21 = vmul.f32 %v9442_v54, %v9440_v7 }
0x176f   : > { %v8279_v37 = vpop.xlane.xlu1 %8278 }
0x1770   : > { %9443 = vrcp.f32 %v8279_v37  ;;  %v8263_v44 = vpop.xlane.xlu0 %8262 }
0x1771   : > { %9445 = vrcp.f32 %v8263_v44 }
0x177d   : > { %v9444_v8 = vpop.eup %9443 }
0x177e   : > { %v9446_v11 = vpop.eup %9445  ;;  %v8281_v15 = vmul.f32 %v9444_v8, %v9436_v4 }
0x177f   : > { %v8265_v45 = vmul.f32 %v9446_v11, %v9438_v16 }
0x1781   : > { %v8283_v48 = vsel %vm8282_vm0, %v8249_v21, %v8265_v45 }
0x1782   : > { %v8285_v60 = vsel %vm8284_vm1, %v8283_v48, %v8281_v15 }
0x1783   : > { %v8287_v30 = vsel %vm8286_vm2, %v8285_v60, %v8235_v12 }
0x1784   : > { %8289 = vst.msk [vmem:[%s460_s25] sm:$0x1] %vm8288_vm3, %v8287_v30 }
0x1785   : > { %9512 = shalt.err (!%p9509_p3)
}
0x1786   : > { %s9513_s16 = scalar_lea.hbm %s11090_s19, 16  ;;  %s9517_s15 = scalar_lea.hbm %s11138_s13, 32 }
0x1787   : > { %p9514_p2 = scmp.ne.s32.totalorder %s11090_s19, %s9513_s16  ;;  %p9518_p6 = scmp.lt.s32.totalorder %s11090_s19, %s11138_s13 }
0x1788   : > { %p9519_p9 = scmp.lt.s32.totalorder %s9517_s15, %s9513_s16 }
0x1789   : > { %p9515_p4 = pnand %p9514_p2, %p9688_p5 }
0x178a   : > { %p9520_p7 = por %p9519_p9, %p9518_p6 }
0x178b   : > { %p9516_p13 = pneg %p9515_p4 }
0x178d   : > { %p9521_p10 = pnand %p9520_p7, %p9516_p13 }
0x178f   : > { %9524 = shalt.err (!%p9521_p10)
}
0x1790   : > { %9323 = dma.vmem_to_hbm [thread:$0]  (%p9688_p5), %s8304_s27, 16, %s11090_s19, %s8291_s20  }
0x1791 PF: > { %s11158_s17 = sld [smem:[#allocation11_spill]]  ;;  %p9340_p12 = scmp.ge.s32.totalorder %s9567_s28, 2 }
0x1792   : > { %s11159_s22 = sld [smem:[#allocation15_spill]] }
0x1797   : > { %s8315_s29 = sand.u32 1, %s11158_s17  }
0x1798   : > { %p11160_p8 = scmp.ne.s32.totalorder %s11159_s22, 0  ;;  %s8316_s23 = scalar_lea.sflag [#allocation4], %s8315_s29 }
0x179a   : > { %p9333_p11 = pnand %p9340_p12, %p11160_p8 }
0x179c   : > { %p9334_p0 = pneg %p9333_p11 }
0x179e   : > { %9550 = dma.done.wait (%p9334_p0), %s8316_s23, 16  }
0x179f   : > { %9552 = vsyncadd (%p9334_p0), %s8316_s23, 4294967280  ;;  %s11161_s28 = sld [smem:[#allocation13_spill]]  ;;  %s11164_s25 = smov %s9559_s26 }
0x17a0   : > { %s11162_s30 = sld [smem:[#allocation12_spill]] }
0x17a1   : > { %s11163_s27 = sld [smem:[#allocation14_spill]] }
0x17a5   : > { %p25_p1 = scmp.ge.s32.totalorder %s11161_s28, 4  }
0x17a6   : > { %s11165_s26 = smov %s11162_s30 }
0x17a7   :  { %27 = sbr.rel (!%p25_p1) target bundleno = 5 (0x5), region = 123 }
0x17ac   :  { %8320 = vsyncpa [#allocation3], 1 }
0x17ad   :  { %8322 = vsyncpa [#allocation3 + $0x1], 1 }
0x17ae   :  { %8323 = vsyncpa [#allocation6], 1 }
0x17af   :  { %8324 = vsyncpa [#allocation4], 1 }
0x17b0   :  { %8326 = vsyncpa [#allocation4 + $0x1], 1 }

</bundles_post_ra>
